<compile_context>
chip_gen: v5e
topology: v5e:2x2
jax: 0.10.0
libtpu: 0.0.40
codegen_flags: <defaults>
</compile_context>

<pallas_src>
import functools

import jax
import jax.numpy as jnp
from jax.experimental import pallas as pl
from jax.experimental.pallas import tpu as pltpu


# ---------------------------------------------------------------------------
# Fused kernel. One grid step == one batch element.
#   x_ref    : (1, Hp*Wp, C_in)  padded input, flattened spatial grid (f32)
#   w{l}     : (9*Ci_l, Co_l)    pre-packed conv weights (bf16)
#   b{l}     : (1, Co_l)         conv biases (f32)
#   fcw_ref  : (256, num_out)    bf16
#   fcb_ref  : (1, num_out)      f32
#   o_ref    : (1, 1, num_out)
# ---------------------------------------------------------------------------
def _fused_cnn_kernel(x_ref, w0, b0, w1, b1, w2, b2, w3, b3, w4, b4,
                      fcw_ref, fcb_ref, o_ref, *, Wp):
    conv_ws = (w0, w1, w2, w3, w4)
    conv_bs = (b0, b1, b2, b3, b4)

    act = x_ref[0].astype(jnp.float32)          # (Hp*Wp, C_in), lives in VMEM/vregs
    rows = act.shape[0]
    shrink = 2 * Wp + 2                         # max tap shift of a 3x3 conv

    for l in range(5):
        w_all = conv_ws[l][...]                 # (9*Ci, Co) bf16
        bias = conv_bs[l][...]                  # (1, Co) f32
        kc, co = w_all.shape
        ci = kc // 9
        rows_out = rows - shrink
        acc = jnp.zeros((rows_out, co), jnp.float32)
        for ki in range(3):
            for kj in range(3):
                kidx = ki * 3 + kj
                shift = ki * Wp + kj
                xs = act[shift:shift + rows_out, :].astype(jnp.bfloat16)
                wk = w_all[kidx * ci:(kidx + 1) * ci, :]
                acc = acc + jnp.dot(xs, wk, preferred_element_type=jnp.float32)
        act = jnp.maximum(acc + bias, 0.0)      # bias + ReLU epilogue on f32 acc
        rows = rows_out

    # Valid output of the conv stack is the single row 0 -> (1, 256) features.
    feat = act[0:1, :].astype(jnp.bfloat16)
    out = jnp.dot(feat, fcw_ref[...], preferred_element_type=jnp.float32)
    out = out + fcb_ref[...]
    o_ref[0] = out.astype(o_ref.dtype)


def _full_spec(arr):
    nd = arr.ndim
    return pl.BlockSpec(arr.shape, lambda b, _nd=nd: (0,) * _nd)


@jax.jit
def cnn_forward(x_nchw, packed):
    B, C_in, H, W = x_nchw.shape
    # conv0 uses padding=1; conv1..4 are valid.  Linear(256, .) requires the
    # stack to end at 1x1 spatial, i.e. 9x9 input (as the module implies).
    assert H == 9 and W == 9, (H, W)
    Hp, Wp = H + 2, W + 2
    num_output = packed["fc_w"].shape[1]

    x = jnp.transpose(x_nchw, (0, 2, 3, 1))                    # NCHW -> NHWC
    x = jnp.pad(x, ((0, 0), (1, 1), (1, 1), (0, 0)))
    x = x.reshape(B, Hp * Wp, C_in).astype(jnp.float32)

    in_specs = [pl.BlockSpec((1, Hp * Wp, C_in), lambda b: (b, 0, 0))]
    args = [x]
    for l in range(5):
        w = packed[f"conv{l}_w"]
        bb = packed[f"conv{l}_b"]
        in_specs += [_full_spec(w), _full_spec(bb)]
        args += [w, bb]
    in_specs += [_full_spec(packed["fc_w"]), _full_spec(packed["fc_b"])]
    args += [packed["fc_w"], packed["fc_b"]]

    out = pl.pallas_call(
        functools.partial(_fused_cnn_kernel, Wp=Wp),
        out_shape=jax.ShapeDtypeStruct((B, 1, num_output), jnp.float32),
        grid_spec=pl.GridSpec(
            grid=(B,),
            in_specs=in_specs,
            out_specs=pl.BlockSpec((1, 1, num_output), lambda b: (b, 0, 0)),
        ),
        compiler_params=pltpu.CompilerParams(
            dimension_semantics=("parallel",),       # v7x: shard batch over 2 TCs
            vmem_limit_bytes=32 * 1024 * 1024),
    )(*args)
    return out.reshape(B, num_output)


# ---------------------------------------------------------------------------
# Parameters (PyTorch layout) + one-time packing into kernel layout
# ---------------------------------------------------------------------------
def init_params(key, num_input_layers, num_output):
    conv_cfgs = [(num_input_layers, 16), (16, 32), (32, 64), (64, 128), (128, 256)]
    params = {}
    for idx, (ci, co) in enumerate(conv_cfgs):
        key, k1, k2 = jax.random.split(key, 3)
        bound = 1.0 / float(jnp.sqrt(ci * 9.0))
        params[f"conv{idx}_w"] = jax.random.uniform(
            k1, (co, ci, 3, 3), jnp.float32, -bound, bound)
        params[f"conv{idx}_b"] = jax.random.uniform(
            k2, (co,), jnp.float32, -bound, bound)
    key, k1, k2 = jax.random.split(key, 3)
    bound = 1.0 / float(jnp.sqrt(256.0))
    params["fc_w"] = jax.random.uniform(
        k1, (256, num_output), jnp.float32, -bound, bound)
    params["fc_b"] = jax.random.uniform(
        k2, (num_output,), jnp.float32, -bound, bound)
    return params


def pack_params(params):
    """Hoist all weight transposes/reshapes out of the forward path.

    Conv weights (O, C, 3, 3) -> (3, 3, C, O) -> (9*C, O) bf16 so that rows
    [k*C:(k+1)*C] are the (Ci, Co) matrix of tap k = ki*3+kj.
    """
    packed = {}
    for l in range(5):
        w = params[f"conv{l}_w"]
        o, c, kh, kw = w.shape
        packed[f"conv{l}_w"] = jnp.transpose(w, (2, 3, 1, 0)).reshape(
            kh * kw * c, o).astype(jnp.bfloat16)
        packed[f"conv{l}_b"] = params[f"conv{l}_b"].reshape(1, o).astype(jnp.float32)
    packed["fc_w"] = params["fc_w"].astype(jnp.bfloat16)
    packed["fc_b"] = params["fc_b"].reshape(1, -1).astype(jnp.float32)
    return packed


# ---------------------------------------------------------------------------
# Pure-JAX f32 reference (matches CNN.forward)
# ---------------------------------------------------------------------------
def cnn_ref(x_nchw, params):
    x = x_nchw
    paddings = [1, 0, 0, 0, 0]
    for idx in range(5):
        w = params[f"conv{idx}_w"]
        b = params[f"conv{idx}_b"]
        p = paddings[idx]
        x = jax.lax.conv_general_dilated(
            x, w, window_strides=(1, 1), padding=[(p, p), (p, p)],
            dimension_numbers=("NCHW", "OIHW", "NCHW"))
        x = jnp.maximum(x + b.reshape(1, -1, 1, 1), 0.0)
    B = x.shape[0]
    x = x.reshape(B, -1)
    return x @ params["fc_w"] + params["fc_b"]


if __name__ == "__main__":
    num_input_layers = 4
    num_output = 10
    # Linear(256, num_output) implies conv5 output is 1x1 spatially -> 9x9 input
    B, H, W = 2, 9, 9

    key = jax.random.PRNGKey(0)
    k_x, k_p = jax.random.split(key)
    x = jax.random.normal(k_x, (B, num_input_layers, H, W), jnp.float32)
    params = init_params(k_p, num_input_layers, num_output)
    packed = pack_params(params)

    y = jax.block_until_ready(cnn_forward(x, packed))

    assert y.shape == (B, num_output), y.shape
    y_ref = cnn_ref(x, params)
    assert bool(jnp.all(jnp.isfinite(y)))
    # bf16 MXU operands (f32 accumulation) vs the all-f32 reference -> loose tol.
    assert bool(jnp.allclose(y, y_ref, atol=5e-2, rtol=5e-2)), (
        float(jnp.max(jnp.abs(y - y_ref))))
    print("KERNEL_OK")
</pallas_src>

<mosaic_0001>
module attributes {stable_mosaic.version = 11 : i64} {
  func.func @_fused_cnn_kernel(%arg0: i32, %arg1: memref<1x121x4xf32, #tpu.memory_space<vmem>>, %arg2: memref<36x16xbf16, #tpu.memory_space<vmem>>, %arg3: memref<1x16xf32, #tpu.memory_space<vmem>>, %arg4: memref<144x32xbf16, #tpu.memory_space<vmem>>, %arg5: memref<1x32xf32, #tpu.memory_space<vmem>>, %arg6: memref<288x64xbf16, #tpu.memory_space<vmem>>, %arg7: memref<1x64xf32, #tpu.memory_space<vmem>>, %arg8: memref<576x128xbf16, #tpu.memory_space<vmem>>, %arg9: memref<1x128xf32, #tpu.memory_space<vmem>>, %arg10: memref<1152x256xbf16, #tpu.memory_space<vmem>>, %arg11: memref<1x256xf32, #tpu.memory_space<vmem>>, %arg12: memref<256x10xbf16, #tpu.memory_space<vmem>>, %arg13: memref<1x10xf32, #tpu.memory_space<vmem>>, %arg14: memref<1x1x10xf32, #tpu.memory_space<vmem>>) attributes {dimension_semantics = [#tpu.dimension_semantics<parallel>], iteration_bounds = array<i64: 2>, scalar_prefetch = 0 : i64, scratch_operands = 0 : i64, tpu.core_type = #tpu.core_type<tc>, window_params = [{transform_indices = @transform_0, window_bounds = array<i64: 1, 121, 4>}, {pipeline_mode = #tpu.pipeline_mode<synchronous>, transform_indices = @transform_1, window_bounds = array<i64: 36, 16>}, {pipeline_mode = #tpu.pipeline_mode<synchronous>, transform_indices = @transform_2, window_bounds = array<i64: 1, 16>}, {pipeline_mode = #tpu.pipeline_mode<synchronous>, transform_indices = @transform_3, window_bounds = array<i64: 144, 32>}, {pipeline_mode = #tpu.pipeline_mode<synchronous>, transform_indices = @transform_4, window_bounds = array<i64: 1, 32>}, {pipeline_mode = #tpu.pipeline_mode<synchronous>, transform_indices = @transform_5, window_bounds = array<i64: 288, 64>}, {pipeline_mode = #tpu.pipeline_mode<synchronous>, transform_indices = @transform_6, window_bounds = array<i64: 1, 64>}, {pipeline_mode = #tpu.pipeline_mode<synchronous>, transform_indices = @transform_7, window_bounds = array<i64: 576, 128>}, {pipeline_mode = #tpu.pipeline_mode<synchronous>, transform_indices = @transform_8, window_bounds = array<i64: 1, 128>}, {pipeline_mode = #tpu.pipeline_mode<synchronous>, transform_indices = @transform_9, window_bounds = array<i64: 1152, 256>}, {pipeline_mode = #tpu.pipeline_mode<synchronous>, transform_indices = @transform_10, window_bounds = array<i64: 1, 256>}, {pipeline_mode = #tpu.pipeline_mode<synchronous>, transform_indices = @transform_11, window_bounds = array<i64: 256, 10>}, {pipeline_mode = #tpu.pipeline_mode<synchronous>, transform_indices = @transform_12, window_bounds = array<i64: 1, 10>}, {transform_indices = @transform_13, window_bounds = array<i64: 1, 1, 10>}]} {
    %c0 = arith.constant 0 : index
    %c0_0 = arith.constant 0 : index
    %c0_1 = arith.constant 0 : index
    %0 = vector.load %arg1[%c0, %c0_0, %c0_1] : memref<1x121x4xf32, #tpu.memory_space<vmem>>, vector<1x121x4xf32>
    %1 = vector.shape_cast %0 : vector<1x121x4xf32> to vector<121x4xf32>
    %c0_2 = arith.constant 0 : index
    %c0_3 = arith.constant 0 : index
    %2 = vector.load %arg2[%c0_2, %c0_3] : memref<36x16xbf16, #tpu.memory_space<vmem>>, vector<36x16xbf16>
    %c0_4 = arith.constant 0 : index
    %c0_5 = arith.constant 0 : index
    %3 = vector.load %arg3[%c0_4, %c0_5] : memref<1x16xf32, #tpu.memory_space<vmem>>, vector<1x16xf32>
    %cst = arith.constant 0.000000e+00 : f32
    %4 = vector.broadcast %cst : f32 to vector<97x16xf32>
    %5 = vector.extract_strided_slice %1 {offsets = [0, 0], sizes = [97, 4], strides = [1, 1]} : vector<121x4xf32> to vector<97x4xf32>
    %6 = arith.truncf %5 : vector<97x4xf32> to vector<97x4xbf16>
    %7 = vector.extract_strided_slice %2 {offsets = [0, 0], sizes = [4, 16], strides = [1, 1]} : vector<36x16xbf16> to vector<4x16xbf16>
    %cst_6 = arith.constant dense<0.000000e+00> : vector<97x16xf32>
    %8 = tpu.matmul %6, %7, %cst_6 {dimension_numbers = #tpu.dot_dimension_numbers<[1], [0], [0], [1], [0, 0, 1, 1], [], []>} : vector<97x4xbf16>, vector<4x16xbf16>, vector<97x16xf32> -> vector<97x16xf32>
    %9 = arith.addf %4, %8 : vector<97x16xf32>
    %10 = vector.extract_strided_slice %1 {offsets = [1, 0], sizes = [97, 4], strides = [1, 1]} : vector<121x4xf32> to vector<97x4xf32>
    %11 = arith.truncf %10 : vector<97x4xf32> to vector<97x4xbf16>
    %12 = vector.extract_strided_slice %2 {offsets = [4, 0], sizes = [4, 16], strides = [1, 1]} : vector<36x16xbf16> to vector<4x16xbf16>
    %cst_7 = arith.constant dense<0.000000e+00> : vector<97x16xf32>
    %13 = tpu.matmul %11, %12, %cst_7 {dimension_numbers = #tpu.dot_dimension_numbers<[1], [0], [0], [1], [0, 0, 1, 1], [], []>} : vector<97x4xbf16>, vector<4x16xbf16>, vector<97x16xf32> -> vector<97x16xf32>
    %14 = arith.addf %9, %13 : vector<97x16xf32>
    %15 = vector.extract_strided_slice %1 {offsets = [2, 0], sizes = [97, 4], strides = [1, 1]} : vector<121x4xf32> to vector<97x4xf32>
    %16 = arith.truncf %15 : vector<97x4xf32> to vector<97x4xbf16>
    %17 = vector.extract_strided_slice %2 {offsets = [8, 0], sizes = [4, 16], strides = [1, 1]} : vector<36x16xbf16> to vector<4x16xbf16>
    %cst_8 = arith.constant dense<0.000000e+00> : vector<97x16xf32>
    %18 = tpu.matmul %16, %17, %cst_8 {dimension_numbers = #tpu.dot_dimension_numbers<[1], [0], [0], [1], [0, 0, 1, 1], [], []>} : vector<97x4xbf16>, vector<4x16xbf16>, vector<97x16xf32> -> vector<97x16xf32>
    %19 = arith.addf %14, %18 : vector<97x16xf32>
    %20 = vector.extract_strided_slice %1 {offsets = [11, 0], sizes = [97, 4], strides = [1, 1]} : vector<121x4xf32> to vector<97x4xf32>
    %21 = arith.truncf %20 : vector<97x4xf32> to vector<97x4xbf16>
    %22 = vector.extract_strided_slice %2 {offsets = [12, 0], sizes = [4, 16], strides = [1, 1]} : vector<36x16xbf16> to vector<4x16xbf16>
    %cst_9 = arith.constant dense<0.000000e+00> : vector<97x16xf32>
    %23 = tpu.matmul %21, %22, %cst_9 {dimension_numbers = #tpu.dot_dimension_numbers<[1], [0], [0], [1], [0, 0, 1, 1], [], []>} : vector<97x4xbf16>, vector<4x16xbf16>, vector<97x16xf32> -> vector<97x16xf32>
    %24 = arith.addf %19, %23 : vector<97x16xf32>
    %25 = vector.extract_strided_slice %1 {offsets = [12, 0], sizes = [97, 4], strides = [1, 1]} : vector<121x4xf32> to vector<97x4xf32>
    %26 = arith.truncf %25 : vector<97x4xf32> to vector<97x4xbf16>
    %27 = vector.extract_strided_slice %2 {offsets = [16, 0], sizes = [4, 16], strides = [1, 1]} : vector<36x16xbf16> to vector<4x16xbf16>
    %cst_10 = arith.constant dense<0.000000e+00> : vector<97x16xf32>
    %28 = tpu.matmul %26, %27, %cst_10 {dimension_numbers = #tpu.dot_dimension_numbers<[1], [0], [0], [1], [0, 0, 1, 1], [], []>} : vector<97x4xbf16>, vector<4x16xbf16>, vector<97x16xf32> -> vector<97x16xf32>
    %29 = arith.addf %24, %28 : vector<97x16xf32>
    %30 = vector.extract_strided_slice %1 {offsets = [13, 0], sizes = [97, 4], strides = [1, 1]} : vector<121x4xf32> to vector<97x4xf32>
    %31 = arith.truncf %30 : vector<97x4xf32> to vector<97x4xbf16>
    %32 = vector.extract_strided_slice %2 {offsets = [20, 0], sizes = [4, 16], strides = [1, 1]} : vector<36x16xbf16> to vector<4x16xbf16>
    %cst_11 = arith.constant dense<0.000000e+00> : vector<97x16xf32>
    %33 = tpu.matmul %31, %32, %cst_11 {dimension_numbers = #tpu.dot_dimension_numbers<[1], [0], [0], [1], [0, 0, 1, 1], [], []>} : vector<97x4xbf16>, vector<4x16xbf16>, vector<97x16xf32> -> vector<97x16xf32>
    %34 = arith.addf %29, %33 : vector<97x16xf32>
    %35 = vector.extract_strided_slice %1 {offsets = [22, 0], sizes = [97, 4], strides = [1, 1]} : vector<121x4xf32> to vector<97x4xf32>
    %36 = arith.truncf %35 : vector<97x4xf32> to vector<97x4xbf16>
    %37 = vector.extract_strided_slice %2 {offsets = [24, 0], sizes = [4, 16], strides = [1, 1]} : vector<36x16xbf16> to vector<4x16xbf16>
    %cst_12 = arith.constant dense<0.000000e+00> : vector<97x16xf32>
    %38 = tpu.matmul %36, %37, %cst_12 {dimension_numbers = #tpu.dot_dimension_numbers<[1], [0], [0], [1], [0, 0, 1, 1], [], []>} : vector<97x4xbf16>, vector<4x16xbf16>, vector<97x16xf32> -> vector<97x16xf32>
    %39 = arith.addf %34, %38 : vector<97x16xf32>
    %40 = vector.extract_strided_slice %1 {offsets = [23, 0], sizes = [97, 4], strides = [1, 1]} : vector<121x4xf32> to vector<97x4xf32>
    %41 = arith.truncf %40 : vector<97x4xf32> to vector<97x4xbf16>
    %42 = vector.extract_strided_slice %2 {offsets = [28, 0], sizes = [4, 16], strides = [1, 1]} : vector<36x16xbf16> to vector<4x16xbf16>
    %cst_13 = arith.constant dense<0.000000e+00> : vector<97x16xf32>
    %43 = tpu.matmul %41, %42, %cst_13 {dimension_numbers = #tpu.dot_dimension_numbers<[1], [0], [0], [1], [0, 0, 1, 1], [], []>} : vector<97x4xbf16>, vector<4x16xbf16>, vector<97x16xf32> -> vector<97x16xf32>
    %44 = arith.addf %39, %43 : vector<97x16xf32>
    %45 = vector.extract_strided_slice %1 {offsets = [24, 0], sizes = [97, 4], strides = [1, 1]} : vector<121x4xf32> to vector<97x4xf32>
    %46 = arith.truncf %45 : vector<97x4xf32> to vector<97x4xbf16>
    %47 = vector.extract_strided_slice %2 {offsets = [32, 0], sizes = [4, 16], strides = [1, 1]} : vector<36x16xbf16> to vector<4x16xbf16>
    %cst_14 = arith.constant dense<0.000000e+00> : vector<97x16xf32>
    %48 = tpu.matmul %46, %47, %cst_14 {dimension_numbers = #tpu.dot_dimension_numbers<[1], [0], [0], [1], [0, 0, 1, 1], [], []>} : vector<97x4xbf16>, vector<4x16xbf16>, vector<97x16xf32> -> vector<97x16xf32>
    %49 = arith.addf %44, %48 : vector<97x16xf32>
    %50 = vector.broadcast %3 : vector<1x16xf32> to vector<97x16xf32>
    %51 = arith.addf %49, %50 : vector<97x16xf32>
    %cst_15 = arith.constant 0.000000e+00 : f32
    %52 = vector.broadcast %cst_15 : f32 to vector<97x16xf32>
    %53 = arith.maximumf %51, %52 : vector<97x16xf32>
    %c0_16 = arith.constant 0 : index
    %c0_17 = arith.constant 0 : index
    %54 = vector.load %arg4[%c0_16, %c0_17] : memref<144x32xbf16, #tpu.memory_space<vmem>>, vector<144x32xbf16>
    %c0_18 = arith.constant 0 : index
    %c0_19 = arith.constant 0 : index
    %55 = vector.load %arg5[%c0_18, %c0_19] : memref<1x32xf32, #tpu.memory_space<vmem>>, vector<1x32xf32>
    %cst_20 = arith.constant 0.000000e+00 : f32
    %56 = vector.broadcast %cst_20 : f32 to vector<73x32xf32>
    %57 = vector.extract_strided_slice %53 {offsets = [0, 0], sizes = [73, 16], strides = [1, 1]} : vector<97x16xf32> to vector<73x16xf32>
    %58 = arith.truncf %57 : vector<73x16xf32> to vector<73x16xbf16>
    %59 = vector.extract_strided_slice %54 {offsets = [0, 0], sizes = [16, 32], strides = [1, 1]} : vector<144x32xbf16> to vector<16x32xbf16>
    %cst_21 = arith.constant dense<0.000000e+00> : vector<73x32xf32>
    %60 = tpu.matmul %58, %59, %cst_21 {dimension_numbers = #tpu.dot_dimension_numbers<[1], [0], [0], [1], [0, 0, 1, 1], [], []>} : vector<73x16xbf16>, vector<16x32xbf16>, vector<73x32xf32> -> vector<73x32xf32>
    %61 = arith.addf %56, %60 : vector<73x32xf32>
    %62 = vector.extract_strided_slice %53 {offsets = [1, 0], sizes = [73, 16], strides = [1, 1]} : vector<97x16xf32> to vector<73x16xf32>
    %63 = arith.truncf %62 : vector<73x16xf32> to vector<73x16xbf16>
    %64 = vector.extract_strided_slice %54 {offsets = [16, 0], sizes = [16, 32], strides = [1, 1]} : vector<144x32xbf16> to vector<16x32xbf16>
    %cst_22 = arith.constant dense<0.000000e+00> : vector<73x32xf32>
    %65 = tpu.matmul %63, %64, %cst_22 {dimension_numbers = #tpu.dot_dimension_numbers<[1], [0], [0], [1], [0, 0, 1, 1], [], []>} : vector<73x16xbf16>, vector<16x32xbf16>, vector<73x32xf32> -> vector<73x32xf32>
    %66 = arith.addf %61, %65 : vector<73x32xf32>
    %67 = vector.extract_strided_slice %53 {offsets = [2, 0], sizes = [73, 16], strides = [1, 1]} : vector<97x16xf32> to vector<73x16xf32>
    %68 = arith.truncf %67 : vector<73x16xf32> to vector<73x16xbf16>
    %69 = vector.extract_strided_slice %54 {offsets = [32, 0], sizes = [16, 32], strides = [1, 1]} : vector<144x32xbf16> to vector<16x32xbf16>
    %cst_23 = arith.constant dense<0.000000e+00> : vector<73x32xf32>
    %70 = tpu.matmul %68, %69, %cst_23 {dimension_numbers = #tpu.dot_dimension_numbers<[1], [0], [0], [1], [0, 0, 1, 1], [], []>} : vector<73x16xbf16>, vector<16x32xbf16>, vector<73x32xf32> -> vector<73x32xf32>
    %71 = arith.addf %66, %70 : vector<73x32xf32>
    %72 = vector.extract_strided_slice %53 {offsets = [11, 0], sizes = [73, 16], strides = [1, 1]} : vector<97x16xf32> to vector<73x16xf32>
    %73 = arith.truncf %72 : vector<73x16xf32> to vector<73x16xbf16>
    %74 = vector.extract_strided_slice %54 {offsets = [48, 0], sizes = [16, 32], strides = [1, 1]} : vector<144x32xbf16> to vector<16x32xbf16>
    %cst_24 = arith.constant dense<0.000000e+00> : vector<73x32xf32>
    %75 = tpu.matmul %73, %74, %cst_24 {dimension_numbers = #tpu.dot_dimension_numbers<[1], [0], [0], [1], [0, 0, 1, 1], [], []>} : vector<73x16xbf16>, vector<16x32xbf16>, vector<73x32xf32> -> vector<73x32xf32>
    %76 = arith.addf %71, %75 : vector<73x32xf32>
    %77 = vector.extract_strided_slice %53 {offsets = [12, 0], sizes = [73, 16], strides = [1, 1]} : vector<97x16xf32> to vector<73x16xf32>
    %78 = arith.truncf %77 : vector<73x16xf32> to vector<73x16xbf16>
    %79 = vector.extract_strided_slice %54 {offsets = [64, 0], sizes = [16, 32], strides = [1, 1]} : vector<144x32xbf16> to vector<16x32xbf16>
    %cst_25 = arith.constant dense<0.000000e+00> : vector<73x32xf32>
    %80 = tpu.matmul %78, %79, %cst_25 {dimension_numbers = #tpu.dot_dimension_numbers<[1], [0], [0], [1], [0, 0, 1, 1], [], []>} : vector<73x16xbf16>, vector<16x32xbf16>, vector<73x32xf32> -> vector<73x32xf32>
    %81 = arith.addf %76, %80 : vector<73x32xf32>
    %82 = vector.extract_strided_slice %53 {offsets = [13, 0], sizes = [73, 16], strides = [1, 1]} : vector<97x16xf32> to vector<73x16xf32>
    %83 = arith.truncf %82 : vector<73x16xf32> to vector<73x16xbf16>
    %84 = vector.extract_strided_slice %54 {offsets = [80, 0], sizes = [16, 32], strides = [1, 1]} : vector<144x32xbf16> to vector<16x32xbf16>
    %cst_26 = arith.constant dense<0.000000e+00> : vector<73x32xf32>
    %85 = tpu.matmul %83, %84, %cst_26 {dimension_numbers = #tpu.dot_dimension_numbers<[1], [0], [0], [1], [0, 0, 1, 1], [], []>} : vector<73x16xbf16>, vector<16x32xbf16>, vector<73x32xf32> -> vector<73x32xf32>
    %86 = arith.addf %81, %85 : vector<73x32xf32>
    %87 = vector.extract_strided_slice %53 {offsets = [22, 0], sizes = [73, 16], strides = [1, 1]} : vector<97x16xf32> to vector<73x16xf32>
    %88 = arith.truncf %87 : vector<73x16xf32> to vector<73x16xbf16>
    %89 = vector.extract_strided_slice %54 {offsets = [96, 0], sizes = [16, 32], strides = [1, 1]} : vector<144x32xbf16> to vector<16x32xbf16>
    %cst_27 = arith.constant dense<0.000000e+00> : vector<73x32xf32>
    %90 = tpu.matmul %88, %89, %cst_27 {dimension_numbers = #tpu.dot_dimension_numbers<[1], [0], [0], [1], [0, 0, 1, 1], [], []>} : vector<73x16xbf16>, vector<16x32xbf16>, vector<73x32xf32> -> vector<73x32xf32>
    %91 = arith.addf %86, %90 : vector<73x32xf32>
    %92 = vector.extract_strided_slice %53 {offsets = [23, 0], sizes = [73, 16], strides = [1, 1]} : vector<97x16xf32> to vector<73x16xf32>
    %93 = arith.truncf %92 : vector<73x16xf32> to vector<73x16xbf16>
    %94 = vector.extract_strided_slice %54 {offsets = [112, 0], sizes = [16, 32], strides = [1, 1]} : vector<144x32xbf16> to vector<16x32xbf16>
    %cst_28 = arith.constant dense<0.000000e+00> : vector<73x32xf32>
    %95 = tpu.matmul %93, %94, %cst_28 {dimension_numbers = #tpu.dot_dimension_numbers<[1], [0], [0], [1], [0, 0, 1, 1], [], []>} : vector<73x16xbf16>, vector<16x32xbf16>, vector<73x32xf32> -> vector<73x32xf32>
    %96 = arith.addf %91, %95 : vector<73x32xf32>
    %97 = vector.extract_strided_slice %53 {offsets = [24, 0], sizes = [73, 16], strides = [1, 1]} : vector<97x16xf32> to vector<73x16xf32>
    %98 = arith.truncf %97 : vector<73x16xf32> to vector<73x16xbf16>
    %99 = vector.extract_strided_slice %54 {offsets = [128, 0], sizes = [16, 32], strides = [1, 1]} : vector<144x32xbf16> to vector<16x32xbf16>
    %cst_29 = arith.constant dense<0.000000e+00> : vector<73x32xf32>
    %100 = tpu.matmul %98, %99, %cst_29 {dimension_numbers = #tpu.dot_dimension_numbers<[1], [0], [0], [1], [0, 0, 1, 1], [], []>} : vector<73x16xbf16>, vector<16x32xbf16>, vector<73x32xf32> -> vector<73x32xf32>
    %101 = arith.addf %96, %100 : vector<73x32xf32>
    %102 = vector.broadcast %55 : vector<1x32xf32> to vector<73x32xf32>
    %103 = arith.addf %101, %102 : vector<73x32xf32>
    %cst_30 = arith.constant 0.000000e+00 : f32
    %104 = vector.broadcast %cst_30 : f32 to vector<73x32xf32>
    %105 = arith.maximumf %103, %104 : vector<73x32xf32>
    %c0_31 = arith.constant 0 : index
    %c0_32 = arith.constant 0 : index
    %106 = vector.load %arg6[%c0_31, %c0_32] : memref<288x64xbf16, #tpu.memory_space<vmem>>, vector<288x64xbf16>
    %c0_33 = arith.constant 0 : index
    %c0_34 = arith.constant 0 : index
    %107 = vector.load %arg7[%c0_33, %c0_34] : memref<1x64xf32, #tpu.memory_space<vmem>>, vector<1x64xf32>
    %cst_35 = arith.constant 0.000000e+00 : f32
    %108 = vector.broadcast %cst_35 : f32 to vector<49x64xf32>
    %109 = vector.extract_strided_slice %105 {offsets = [0, 0], sizes = [49, 32], strides = [1, 1]} : vector<73x32xf32> to vector<49x32xf32>
    %110 = arith.truncf %109 : vector<49x32xf32> to vector<49x32xbf16>
    %111 = vector.extract_strided_slice %106 {offsets = [0, 0], sizes = [32, 64], strides = [1, 1]} : vector<288x64xbf16> to vector<32x64xbf16>
    %cst_36 = arith.constant dense<0.000000e+00> : vector<49x64xf32>
    %112 = tpu.matmul %110, %111, %cst_36 {dimension_numbers = #tpu.dot_dimension_numbers<[1], [0], [0], [1], [0, 0, 1, 1], [], []>} : vector<49x32xbf16>, vector<32x64xbf16>, vector<49x64xf32> -> vector<49x64xf32>
    %113 = arith.addf %108, %112 : vector<49x64xf32>
    %114 = vector.extract_strided_slice %105 {offsets = [1, 0], sizes = [49, 32], strides = [1, 1]} : vector<73x32xf32> to vector<49x32xf32>
    %115 = arith.truncf %114 : vector<49x32xf32> to vector<49x32xbf16>
    %116 = vector.extract_strided_slice %106 {offsets = [32, 0], sizes = [32, 64], strides = [1, 1]} : vector<288x64xbf16> to vector<32x64xbf16>
    %cst_37 = arith.constant dense<0.000000e+00> : vector<49x64xf32>
    %117 = tpu.matmul %115, %116, %cst_37 {dimension_numbers = #tpu.dot_dimension_numbers<[1], [0], [0], [1], [0, 0, 1, 1], [], []>} : vector<49x32xbf16>, vector<32x64xbf16>, vector<49x64xf32> -> vector<49x64xf32>
    %118 = arith.addf %113, %117 : vector<49x64xf32>
    %119 = vector.extract_strided_slice %105 {offsets = [2, 0], sizes = [49, 32], strides = [1, 1]} : vector<73x32xf32> to vector<49x32xf32>
    %120 = arith.truncf %119 : vector<49x32xf32> to vector<49x32xbf16>
    %121 = vector.extract_strided_slice %106 {offsets = [64, 0], sizes = [32, 64], strides = [1, 1]} : vector<288x64xbf16> to vector<32x64xbf16>
    %cst_38 = arith.constant dense<0.000000e+00> : vector<49x64xf32>
    %122 = tpu.matmul %120, %121, %cst_38 {dimension_numbers = #tpu.dot_dimension_numbers<[1], [0], [0], [1], [0, 0, 1, 1], [], []>} : vector<49x32xbf16>, vector<32x64xbf16>, vector<49x64xf32> -> vector<49x64xf32>
    %123 = arith.addf %118, %122 : vector<49x64xf32>
    %124 = vector.extract_strided_slice %105 {offsets = [11, 0], sizes = [49, 32], strides = [1, 1]} : vector<73x32xf32> to vector<49x32xf32>
    %125 = arith.truncf %124 : vector<49x32xf32> to vector<49x32xbf16>
    %126 = vector.extract_strided_slice %106 {offsets = [96, 0], sizes = [32, 64], strides = [1, 1]} : vector<288x64xbf16> to vector<32x64xbf16>
    %cst_39 = arith.constant dense<0.000000e+00> : vector<49x64xf32>
    %127 = tpu.matmul %125, %126, %cst_39 {dimension_numbers = #tpu.dot_dimension_numbers<[1], [0], [0], [1], [0, 0, 1, 1], [], []>} : vector<49x32xbf16>, vector<32x64xbf16>, vector<49x64xf32> -> vector<49x64xf32>
    %128 = arith.addf %123, %127 : vector<49x64xf32>
    %129 = vector.extract_strided_slice %105 {offsets = [12, 0], sizes = [49, 32], strides = [1, 1]} : vector<73x32xf32> to vector<49x32xf32>
    %130 = arith.truncf %129 : vector<49x32xf32> to vector<49x32xbf16>
    %131 = vector.extract_strided_slice %106 {offsets = [128, 0], sizes = [32, 64], strides = [1, 1]} : vector<288x64xbf16> to vector<32x64xbf16>
    %cst_40 = arith.constant dense<0.000000e+00> : vector<49x64xf32>
    %132 = tpu.matmul %130, %131, %cst_40 {dimension_numbers = #tpu.dot_dimension_numbers<[1], [0], [0], [1], [0, 0, 1, 1], [], []>} : vector<49x32xbf16>, vector<32x64xbf16>, vector<49x64xf32> -> vector<49x64xf32>
    %133 = arith.addf %128, %132 : vector<49x64xf32>
    %134 = vector.extract_strided_slice %105 {offsets = [13, 0], sizes = [49, 32], strides = [1, 1]} : vector<73x32xf32> to vector<49x32xf32>
    %135 = arith.truncf %134 : vector<49x32xf32> to vector<49x32xbf16>
    %136 = vector.extract_strided_slice %106 {offsets = [160, 0], sizes = [32, 64], strides = [1, 1]} : vector<288x64xbf16> to vector<32x64xbf16>
    %cst_41 = arith.constant dense<0.000000e+00> : vector<49x64xf32>
    %137 = tpu.matmul %135, %136, %cst_41 {dimension_numbers = #tpu.dot_dimension_numbers<[1], [0], [0], [1], [0, 0, 1, 1], [], []>} : vector<49x32xbf16>, vector<32x64xbf16>, vector<49x64xf32> -> vector<49x64xf32>
    %138 = arith.addf %133, %137 : vector<49x64xf32>
    %139 = vector.extract_strided_slice %105 {offsets = [22, 0], sizes = [49, 32], strides = [1, 1]} : vector<73x32xf32> to vector<49x32xf32>
    %140 = arith.truncf %139 : vector<49x32xf32> to vector<49x32xbf16>
    %141 = vector.extract_strided_slice %106 {offsets = [192, 0], sizes = [32, 64], strides = [1, 1]} : vector<288x64xbf16> to vector<32x64xbf16>
    %cst_42 = arith.constant dense<0.000000e+00> : vector<49x64xf32>
    %142 = tpu.matmul %140, %141, %cst_42 {dimension_numbers = #tpu.dot_dimension_numbers<[1], [0], [0], [1], [0, 0, 1, 1], [], []>} : vector<49x32xbf16>, vector<32x64xbf16>, vector<49x64xf32> -> vector<49x64xf32>
    %143 = arith.addf %138, %142 : vector<49x64xf32>
    %144 = vector.extract_strided_slice %105 {offsets = [23, 0], sizes = [49, 32], strides = [1, 1]} : vector<73x32xf32> to vector<49x32xf32>
    %145 = arith.truncf %144 : vector<49x32xf32> to vector<49x32xbf16>
    %146 = vector.extract_strided_slice %106 {offsets = [224, 0], sizes = [32, 64], strides = [1, 1]} : vector<288x64xbf16> to vector<32x64xbf16>
    %cst_43 = arith.constant dense<0.000000e+00> : vector<49x64xf32>
    %147 = tpu.matmul %145, %146, %cst_43 {dimension_numbers = #tpu.dot_dimension_numbers<[1], [0], [0], [1], [0, 0, 1, 1], [], []>} : vector<49x32xbf16>, vector<32x64xbf16>, vector<49x64xf32> -> vector<49x64xf32>
    %148 = arith.addf %143, %147 : vector<49x64xf32>
    %149 = vector.extract_strided_slice %105 {offsets = [24, 0], sizes = [49, 32], strides = [1, 1]} : vector<73x32xf32> to vector<49x32xf32>
    %150 = arith.truncf %149 : vector<49x32xf32> to vector<49x32xbf16>
    %151 = vector.extract_strided_slice %106 {offsets = [256, 0], sizes = [32, 64], strides = [1, 1]} : vector<288x64xbf16> to vector<32x64xbf16>
    %cst_44 = arith.constant dense<0.000000e+00> : vector<49x64xf32>
    %152 = tpu.matmul %150, %151, %cst_44 {dimension_numbers = #tpu.dot_dimension_numbers<[1], [0], [0], [1], [0, 0, 1, 1], [], []>} : vector<49x32xbf16>, vector<32x64xbf16>, vector<49x64xf32> -> vector<49x64xf32>
    %153 = arith.addf %148, %152 : vector<49x64xf32>
    %154 = vector.broadcast %107 : vector<1x64xf32> to vector<49x64xf32>
    %155 = arith.addf %153, %154 : vector<49x64xf32>
    %cst_45 = arith.constant 0.000000e+00 : f32
    %156 = vector.broadcast %cst_45 : f32 to vector<49x64xf32>
    %157 = arith.maximumf %155, %156 : vector<49x64xf32>
    %c0_46 = arith.constant 0 : index
    %c0_47 = arith.constant 0 : index
    %158 = vector.load %arg8[%c0_46, %c0_47] : memref<576x128xbf16, #tpu.memory_space<vmem>>, vector<576x128xbf16>
    %c0_48 = arith.constant 0 : index
    %c0_49 = arith.constant 0 : index
    %159 = vector.load %arg9[%c0_48, %c0_49] : memref<1x128xf32, #tpu.memory_space<vmem>>, vector<1x128xf32>
    %cst_50 = arith.constant 0.000000e+00 : f32
    %160 = vector.broadcast %cst_50 : f32 to vector<25x128xf32>
    %161 = vector.extract_strided_slice %157 {offsets = [0, 0], sizes = [25, 64], strides = [1, 1]} : vector<49x64xf32> to vector<25x64xf32>
    %162 = arith.truncf %161 : vector<25x64xf32> to vector<25x64xbf16>
    %163 = vector.extract_strided_slice %158 {offsets = [0, 0], sizes = [64, 128], strides = [1, 1]} : vector<576x128xbf16> to vector<64x128xbf16>
    %cst_51 = arith.constant dense<0.000000e+00> : vector<25x128xf32>
    %164 = tpu.matmul %162, %163, %cst_51 {dimension_numbers = #tpu.dot_dimension_numbers<[1], [0], [0], [1], [0, 0, 1, 1], [], []>} : vector<25x64xbf16>, vector<64x128xbf16>, vector<25x128xf32> -> vector<25x128xf32>
    %165 = arith.addf %160, %164 : vector<25x128xf32>
    %166 = vector.extract_strided_slice %157 {offsets = [1, 0], sizes = [25, 64], strides = [1, 1]} : vector<49x64xf32> to vector<25x64xf32>
    %167 = arith.truncf %166 : vector<25x64xf32> to vector<25x64xbf16>
    %168 = vector.extract_strided_slice %158 {offsets = [64, 0], sizes = [64, 128], strides = [1, 1]} : vector<576x128xbf16> to vector<64x128xbf16>
    %cst_52 = arith.constant dense<0.000000e+00> : vector<25x128xf32>
    %169 = tpu.matmul %167, %168, %cst_52 {dimension_numbers = #tpu.dot_dimension_numbers<[1], [0], [0], [1], [0, 0, 1, 1], [], []>} : vector<25x64xbf16>, vector<64x128xbf16>, vector<25x128xf32> -> vector<25x128xf32>
    %170 = arith.addf %165, %169 : vector<25x128xf32>
    %171 = vector.extract_strided_slice %157 {offsets = [2, 0], sizes = [25, 64], strides = [1, 1]} : vector<49x64xf32> to vector<25x64xf32>
    %172 = arith.truncf %171 : vector<25x64xf32> to vector<25x64xbf16>
    %173 = vector.extract_strided_slice %158 {offsets = [128, 0], sizes = [64, 128], strides = [1, 1]} : vector<576x128xbf16> to vector<64x128xbf16>
    %cst_53 = arith.constant dense<0.000000e+00> : vector<25x128xf32>
    %174 = tpu.matmul %172, %173, %cst_53 {dimension_numbers = #tpu.dot_dimension_numbers<[1], [0], [0], [1], [0, 0, 1, 1], [], []>} : vector<25x64xbf16>, vector<64x128xbf16>, vector<25x128xf32> -> vector<25x128xf32>
    %175 = arith.addf %170, %174 : vector<25x128xf32>
    %176 = vector.extract_strided_slice %157 {offsets = [11, 0], sizes = [25, 64], strides = [1, 1]} : vector<49x64xf32> to vector<25x64xf32>
    %177 = arith.truncf %176 : vector<25x64xf32> to vector<25x64xbf16>
    %178 = vector.extract_strided_slice %158 {offsets = [192, 0], sizes = [64, 128], strides = [1, 1]} : vector<576x128xbf16> to vector<64x128xbf16>
    %cst_54 = arith.constant dense<0.000000e+00> : vector<25x128xf32>
    %179 = tpu.matmul %177, %178, %cst_54 {dimension_numbers = #tpu.dot_dimension_numbers<[1], [0], [0], [1], [0, 0, 1, 1], [], []>} : vector<25x64xbf16>, vector<64x128xbf16>, vector<25x128xf32> -> vector<25x128xf32>
    %180 = arith.addf %175, %179 : vector<25x128xf32>
    %181 = vector.extract_strided_slice %157 {offsets = [12, 0], sizes = [25, 64], strides = [1, 1]} : vector<49x64xf32> to vector<25x64xf32>
    %182 = arith.truncf %181 : vector<25x64xf32> to vector<25x64xbf16>
    %183 = vector.extract_strided_slice %158 {offsets = [256, 0], sizes = [64, 128], strides = [1, 1]} : vector<576x128xbf16> to vector<64x128xbf16>
    %cst_55 = arith.constant dense<0.000000e+00> : vector<25x128xf32>
    %184 = tpu.matmul %182, %183, %cst_55 {dimension_numbers = #tpu.dot_dimension_numbers<[1], [0], [0], [1], [0, 0, 1, 1], [], []>} : vector<25x64xbf16>, vector<64x128xbf16>, vector<25x128xf32> -> vector<25x128xf32>
    %185 = arith.addf %180, %184 : vector<25x128xf32>
    %186 = vector.extract_strided_slice %157 {offsets = [13, 0], sizes = [25, 64], strides = [1, 1]} : vector<49x64xf32> to vector<25x64xf32>
    %187 = arith.truncf %186 : vector<25x64xf32> to vector<25x64xbf16>
    %188 = vector.extract_strided_slice %158 {offsets = [320, 0], sizes = [64, 128], strides = [1, 1]} : vector<576x128xbf16> to vector<64x128xbf16>
    %cst_56 = arith.constant dense<0.000000e+00> : vector<25x128xf32>
    %189 = tpu.matmul %187, %188, %cst_56 {dimension_numbers = #tpu.dot_dimension_numbers<[1], [0], [0], [1], [0, 0, 1, 1], [], []>} : vector<25x64xbf16>, vector<64x128xbf16>, vector<25x128xf32> -> vector<25x128xf32>
    %190 = arith.addf %185, %189 : vector<25x128xf32>
    %191 = vector.extract_strided_slice %157 {offsets = [22, 0], sizes = [25, 64], strides = [1, 1]} : vector<49x64xf32> to vector<25x64xf32>
    %192 = arith.truncf %191 : vector<25x64xf32> to vector<25x64xbf16>
    %193 = vector.extract_strided_slice %158 {offsets = [384, 0], sizes = [64, 128], strides = [1, 1]} : vector<576x128xbf16> to vector<64x128xbf16>
    %cst_57 = arith.constant dense<0.000000e+00> : vector<25x128xf32>
    %194 = tpu.matmul %192, %193, %cst_57 {dimension_numbers = #tpu.dot_dimension_numbers<[1], [0], [0], [1], [0, 0, 1, 1], [], []>} : vector<25x64xbf16>, vector<64x128xbf16>, vector<25x128xf32> -> vector<25x128xf32>
    %195 = arith.addf %190, %194 : vector<25x128xf32>
    %196 = vector.extract_strided_slice %157 {offsets = [23, 0], sizes = [25, 64], strides = [1, 1]} : vector<49x64xf32> to vector<25x64xf32>
    %197 = arith.truncf %196 : vector<25x64xf32> to vector<25x64xbf16>
    %198 = vector.extract_strided_slice %158 {offsets = [448, 0], sizes = [64, 128], strides = [1, 1]} : vector<576x128xbf16> to vector<64x128xbf16>
    %cst_58 = arith.constant dense<0.000000e+00> : vector<25x128xf32>
    %199 = tpu.matmul %197, %198, %cst_58 {dimension_numbers = #tpu.dot_dimension_numbers<[1], [0], [0], [1], [0, 0, 1, 1], [], []>} : vector<25x64xbf16>, vector<64x128xbf16>, vector<25x128xf32> -> vector<25x128xf32>
    %200 = arith.addf %195, %199 : vector<25x128xf32>
    %201 = vector.extract_strided_slice %157 {offsets = [24, 0], sizes = [25, 64], strides = [1, 1]} : vector<49x64xf32> to vector<25x64xf32>
    %202 = arith.truncf %201 : vector<25x64xf32> to vector<25x64xbf16>
    %203 = vector.extract_strided_slice %158 {offsets = [512, 0], sizes = [64, 128], strides = [1, 1]} : vector<576x128xbf16> to vector<64x128xbf16>
    %cst_59 = arith.constant dense<0.000000e+00> : vector<25x128xf32>
    %204 = tpu.matmul %202, %203, %cst_59 {dimension_numbers = #tpu.dot_dimension_numbers<[1], [0], [0], [1], [0, 0, 1, 1], [], []>} : vector<25x64xbf16>, vector<64x128xbf16>, vector<25x128xf32> -> vector<25x128xf32>
    %205 = arith.addf %200, %204 : vector<25x128xf32>
    %206 = vector.broadcast %159 : vector<1x128xf32> to vector<25x128xf32>
    %207 = arith.addf %205, %206 : vector<25x128xf32>
    %cst_60 = arith.constant 0.000000e+00 : f32
    %208 = vector.broadcast %cst_60 : f32 to vector<25x128xf32>
    %209 = arith.maximumf %207, %208 : vector<25x128xf32>
    %c0_61 = arith.constant 0 : index
    %c0_62 = arith.constant 0 : index
    %210 = vector.load %arg10[%c0_61, %c0_62] : memref<1152x256xbf16, #tpu.memory_space<vmem>>, vector<1152x256xbf16>
    %c0_63 = arith.constant 0 : index
    %c0_64 = arith.constant 0 : index
    %211 = vector.load %arg11[%c0_63, %c0_64] : memref<1x256xf32, #tpu.memory_space<vmem>>, vector<1x256xf32>
    %cst_65 = arith.constant 0.000000e+00 : f32
    %212 = vector.broadcast %cst_65 : f32 to vector<1x256xf32>
    %213 = vector.extract_strided_slice %209 {offsets = [0, 0], sizes = [1, 128], strides = [1, 1]} : vector<25x128xf32> to vector<1x128xf32>
    %214 = arith.truncf %213 : vector<1x128xf32> to vector<1x128xbf16>
    %215 = vector.extract_strided_slice %210 {offsets = [0, 0], sizes = [128, 256], strides = [1, 1]} : vector<1152x256xbf16> to vector<128x256xbf16>
    %cst_66 = arith.constant dense<0.000000e+00> : vector<1x256xf32>
    %216 = tpu.matmul %214, %215, %cst_66 {dimension_numbers = #tpu.dot_dimension_numbers<[1], [0], [0], [1], [0, 0, 1, 1], [], []>} : vector<1x128xbf16>, vector<128x256xbf16>, vector<1x256xf32> -> vector<1x256xf32>
    %217 = arith.addf %212, %216 : vector<1x256xf32>
    %218 = vector.extract_strided_slice %209 {offsets = [1, 0], sizes = [1, 128], strides = [1, 1]} : vector<25x128xf32> to vector<1x128xf32>
    %219 = arith.truncf %218 : vector<1x128xf32> to vector<1x128xbf16>
    %220 = vector.extract_strided_slice %210 {offsets = [128, 0], sizes = [128, 256], strides = [1, 1]} : vector<1152x256xbf16> to vector<128x256xbf16>
    %cst_67 = arith.constant dense<0.000000e+00> : vector<1x256xf32>
    %221 = tpu.matmul %219, %220, %cst_67 {dimension_numbers = #tpu.dot_dimension_numbers<[1], [0], [0], [1], [0, 0, 1, 1], [], []>} : vector<1x128xbf16>, vector<128x256xbf16>, vector<1x256xf32> -> vector<1x256xf32>
    %222 = arith.addf %217, %221 : vector<1x256xf32>
    %223 = vector.extract_strided_slice %209 {offsets = [2, 0], sizes = [1, 128], strides = [1, 1]} : vector<25x128xf32> to vector<1x128xf32>
    %224 = arith.truncf %223 : vector<1x128xf32> to vector<1x128xbf16>
    %225 = vector.extract_strided_slice %210 {offsets = [256, 0], sizes = [128, 256], strides = [1, 1]} : vector<1152x256xbf16> to vector<128x256xbf16>
    %cst_68 = arith.constant dense<0.000000e+00> : vector<1x256xf32>
    %226 = tpu.matmul %224, %225, %cst_68 {dimension_numbers = #tpu.dot_dimension_numbers<[1], [0], [0], [1], [0, 0, 1, 1], [], []>} : vector<1x128xbf16>, vector<128x256xbf16>, vector<1x256xf32> -> vector<1x256xf32>
    %227 = arith.addf %222, %226 : vector<1x256xf32>
    %228 = vector.extract_strided_slice %209 {offsets = [11, 0], sizes = [1, 128], strides = [1, 1]} : vector<25x128xf32> to vector<1x128xf32>
    %229 = arith.truncf %228 : vector<1x128xf32> to vector<1x128xbf16>
    %230 = vector.extract_strided_slice %210 {offsets = [384, 0], sizes = [128, 256], strides = [1, 1]} : vector<1152x256xbf16> to vector<128x256xbf16>
    %cst_69 = arith.constant dense<0.000000e+00> : vector<1x256xf32>
    %231 = tpu.matmul %229, %230, %cst_69 {dimension_numbers = #tpu.dot_dimension_numbers<[1], [0], [0], [1], [0, 0, 1, 1], [], []>} : vector<1x128xbf16>, vector<128x256xbf16>, vector<1x256xf32> -> vector<1x256xf32>
    %232 = arith.addf %227, %231 : vector<1x256xf32>
    %233 = vector.extract_strided_slice %209 {offsets = [12, 0], sizes = [1, 128], strides = [1, 1]} : vector<25x128xf32> to vector<1x128xf32>
    %234 = arith.truncf %233 : vector<1x128xf32> to vector<1x128xbf16>
    %235 = vector.extract_strided_slice %210 {offsets = [512, 0], sizes = [128, 256], strides = [1, 1]} : vector<1152x256xbf16> to vector<128x256xbf16>
    %cst_70 = arith.constant dense<0.000000e+00> : vector<1x256xf32>
    %236 = tpu.matmul %234, %235, %cst_70 {dimension_numbers = #tpu.dot_dimension_numbers<[1], [0], [0], [1], [0, 0, 1, 1], [], []>} : vector<1x128xbf16>, vector<128x256xbf16>, vector<1x256xf32> -> vector<1x256xf32>
    %237 = arith.addf %232, %236 : vector<1x256xf32>
    %238 = vector.extract_strided_slice %209 {offsets = [13, 0], sizes = [1, 128], strides = [1, 1]} : vector<25x128xf32> to vector<1x128xf32>
    %239 = arith.truncf %238 : vector<1x128xf32> to vector<1x128xbf16>
    %240 = vector.extract_strided_slice %210 {offsets = [640, 0], sizes = [128, 256], strides = [1, 1]} : vector<1152x256xbf16> to vector<128x256xbf16>
    %cst_71 = arith.constant dense<0.000000e+00> : vector<1x256xf32>
    %241 = tpu.matmul %239, %240, %cst_71 {dimension_numbers = #tpu.dot_dimension_numbers<[1], [0], [0], [1], [0, 0, 1, 1], [], []>} : vector<1x128xbf16>, vector<128x256xbf16>, vector<1x256xf32> -> vector<1x256xf32>
    %242 = arith.addf %237, %241 : vector<1x256xf32>
    %243 = vector.extract_strided_slice %209 {offsets = [22, 0], sizes = [1, 128], strides = [1, 1]} : vector<25x128xf32> to vector<1x128xf32>
    %244 = arith.truncf %243 : vector<1x128xf32> to vector<1x128xbf16>
    %245 = vector.extract_strided_slice %210 {offsets = [768, 0], sizes = [128, 256], strides = [1, 1]} : vector<1152x256xbf16> to vector<128x256xbf16>
    %cst_72 = arith.constant dense<0.000000e+00> : vector<1x256xf32>
    %246 = tpu.matmul %244, %245, %cst_72 {dimension_numbers = #tpu.dot_dimension_numbers<[1], [0], [0], [1], [0, 0, 1, 1], [], []>} : vector<1x128xbf16>, vector<128x256xbf16>, vector<1x256xf32> -> vector<1x256xf32>
    %247 = arith.addf %242, %246 : vector<1x256xf32>
    %248 = vector.extract_strided_slice %209 {offsets = [23, 0], sizes = [1, 128], strides = [1, 1]} : vector<25x128xf32> to vector<1x128xf32>
    %249 = arith.truncf %248 : vector<1x128xf32> to vector<1x128xbf16>
    %250 = vector.extract_strided_slice %210 {offsets = [896, 0], sizes = [128, 256], strides = [1, 1]} : vector<1152x256xbf16> to vector<128x256xbf16>
    %cst_73 = arith.constant dense<0.000000e+00> : vector<1x256xf32>
    %251 = tpu.matmul %249, %250, %cst_73 {dimension_numbers = #tpu.dot_dimension_numbers<[1], [0], [0], [1], [0, 0, 1, 1], [], []>} : vector<1x128xbf16>, vector<128x256xbf16>, vector<1x256xf32> -> vector<1x256xf32>
    %252 = arith.addf %247, %251 : vector<1x256xf32>
    %253 = vector.extract_strided_slice %209 {offsets = [24, 0], sizes = [1, 128], strides = [1, 1]} : vector<25x128xf32> to vector<1x128xf32>
    %254 = arith.truncf %253 : vector<1x128xf32> to vector<1x128xbf16>
    %255 = vector.extract_strided_slice %210 {offsets = [1024, 0], sizes = [128, 256], strides = [1, 1]} : vector<1152x256xbf16> to vector<128x256xbf16>
    %cst_74 = arith.constant dense<0.000000e+00> : vector<1x256xf32>
    %256 = tpu.matmul %254, %255, %cst_74 {dimension_numbers = #tpu.dot_dimension_numbers<[1], [0], [0], [1], [0, 0, 1, 1], [], []>} : vector<1x128xbf16>, vector<128x256xbf16>, vector<1x256xf32> -> vector<1x256xf32>
    %257 = arith.addf %252, %256 : vector<1x256xf32>
    %258 = arith.addf %257, %211 : vector<1x256xf32>
    %cst_75 = arith.constant 0.000000e+00 : f32
    %259 = vector.broadcast %cst_75 : f32 to vector<1x256xf32>
    %260 = arith.maximumf %258, %259 : vector<1x256xf32>
    %261 = arith.truncf %260 : vector<1x256xf32> to vector<1x256xbf16>
    %c0_76 = arith.constant 0 : index
    %c0_77 = arith.constant 0 : index
    %262 = vector.load %arg12[%c0_76, %c0_77] : memref<256x10xbf16, #tpu.memory_space<vmem>>, vector<256x10xbf16>
    %cst_78 = arith.constant dense<0.000000e+00> : vector<1x10xf32>
    %263 = tpu.matmul %261, %262, %cst_78 {dimension_numbers = #tpu.dot_dimension_numbers<[1], [0], [0], [1], [0, 0, 1, 1], [], []>} : vector<1x256xbf16>, vector<256x10xbf16>, vector<1x10xf32> -> vector<1x10xf32>
    %c0_79 = arith.constant 0 : index
    %c0_80 = arith.constant 0 : index
    %264 = vector.load %arg13[%c0_79, %c0_80] : memref<1x10xf32, #tpu.memory_space<vmem>>, vector<1x10xf32>
    %265 = arith.addf %263, %264 : vector<1x10xf32>
    %c0_81 = arith.constant 0 : index
    %c0_82 = arith.constant 0 : index
    %c0_83 = arith.constant 0 : index
    %266 = vector.load %arg14[%c0_81, %c0_82, %c0_83] : memref<1x1x10xf32, #tpu.memory_space<vmem>>, vector<1x1x10xf32>
    %267 = vector.shape_cast %266 : vector<1x1x10xf32> to vector<1x10xf32>
    %268 = vector.shape_cast %265 : vector<1x10xf32> to vector<1x1x10xf32>
    tpu.vector_store %arg14[%c0_81, %c0_82, %c0_83], %268 {strides = array<i32>} : memref<1x1x10xf32, #tpu.memory_space<vmem>>, vector<1x1x10xf32>,
    return
  }
  func.func @transform_0(%arg0: i32) -> (i32, i32, i32) {
    %c0_i32 = arith.constant 0 : i32
    %c0_i32_0 = arith.constant 0 : i32
    %c0_i32_1 = arith.constant 0 : i32
    return %arg0, %c0_i32, %c0_i32_0 : i32, i32, i32
  }
  func.func @transform_1(%arg0: i32) -> (i32, i32) {
    %c0_i32 = arith.constant 0 : i32
    %c0_i32_0 = arith.constant 0 : i32
    %c0_i32_1 = arith.constant 0 : i32
    return %c0_i32, %c0_i32_0 : i32, i32
  }
  func.func @transform_2(%arg0: i32) -> (i32, i32) {
    %c0_i32 = arith.constant 0 : i32
    %c0_i32_0 = arith.constant 0 : i32
    %c0_i32_1 = arith.constant 0 : i32
    return %c0_i32, %c0_i32_0 : i32, i32
  }
  func.func @transform_3(%arg0: i32) -> (i32, i32) {
    %c0_i32 = arith.constant 0 : i32
    %c0_i32_0 = arith.constant 0 : i32
    %c0_i32_1 = arith.constant 0 : i32
    return %c0_i32, %c0_i32_0 : i32, i32
  }
  func.func @transform_4(%arg0: i32) -> (i32, i32) {
    %c0_i32 = arith.constant 0 : i32
    %c0_i32_0 = arith.constant 0 : i32
    %c0_i32_1 = arith.constant 0 : i32
    return %c0_i32, %c0_i32_0 : i32, i32
  }
  func.func @transform_5(%arg0: i32) -> (i32, i32) {
    %c0_i32 = arith.constant 0 : i32
    %c0_i32_0 = arith.constant 0 : i32
    %c0_i32_1 = arith.constant 0 : i32
    return %c0_i32, %c0_i32_0 : i32, i32
  }
  func.func @transform_6(%arg0: i32) -> (i32, i32) {
    %c0_i32 = arith.constant 0 : i32
    %c0_i32_0 = arith.constant 0 : i32
    %c0_i32_1 = arith.constant 0 : i32
    return %c0_i32, %c0_i32_0 : i32, i32
  }
  func.func @transform_7(%arg0: i32) -> (i32, i32) {
    %c0_i32 = arith.constant 0 : i32
    %c0_i32_0 = arith.constant 0 : i32
    %c0_i32_1 = arith.constant 0 : i32
    return %c0_i32, %c0_i32_0 : i32, i32
  }
  func.func @transform_8(%arg0: i32) -> (i32, i32) {
    %c0_i32 = arith.constant 0 : i32
    %c0_i32_0 = arith.constant 0 : i32
    %c0_i32_1 = arith.constant 0 : i32
    return %c0_i32, %c0_i32_0 : i32, i32
  }
  func.func @transform_9(%arg0: i32) -> (i32, i32) {
    %c0_i32 = arith.constant 0 : i32
    %c0_i32_0 = arith.constant 0 : i32
    %c0_i32_1 = arith.constant 0 : i32
    return %c0_i32, %c0_i32_0 : i32, i32
  }
  func.func @transform_10(%arg0: i32) -> (i32, i32) {
    %c0_i32 = arith.constant 0 : i32
    %c0_i32_0 = arith.constant 0 : i32
    %c0_i32_1 = arith.constant 0 : i32
    return %c0_i32, %c0_i32_0 : i32, i32
  }
  func.func @transform_11(%arg0: i32) -> (i32, i32) {
    %c0_i32 = arith.constant 0 : i32
    %c0_i32_0 = arith.constant 0 : i32
    %c0_i32_1 = arith.constant 0 : i32
    return %c0_i32, %c0_i32_0 : i32, i32
  }
  func.func @transform_12(%arg0: i32) -> (i32, i32) {
    %c0_i32 = arith.constant 0 : i32
    %c0_i32_0 = arith.constant 0 : i32
    %c0_i32_1 = arith.constant 0 : i32
    return %c0_i32, %c0_i32_0 : i32, i32
  }
  func.func @transform_13(%arg0: i32) -> (i32, i32, i32) {
    %c0_i32 = arith.constant 0 : i32
    %c0_i32_0 = arith.constant 0 : i32
    %c0_i32_1 = arith.constant 0 : i32
    return %arg0, %c0_i32, %c0_i32_0 : i32, i32, i32
  }
}

</mosaic_0001>

<bundles_post_ra>
// kernel: cnn_forward.1
= control target key start
LH: loop header
LB: loop body
LE: loop exit
PB: predicated region body
PF: predicated region fallthrough
CT: control target
= control target key end

     0   :  { %s7973_s0 = inlined_call_operand.vmem [shape: f32[2,121,4], index: 0, kind: input, shape index: {}]   ;;  %s7974_s1 = inlined_call_operand.vmem [shape: bf16[36,16], index: 1, kind: input, shape index: {}]   ;;  %s7975_s2 = inlined_call_operand.vmem [shape: f32[1,16], index: 2, kind: input, shape index: {}]   ;;  %s7976_s3 = inlined_call_operand.vmem [shape: bf16[144,32], index: 3, kind: input, shape index: {}]   ;;  %s7977_s4 = inlined_call_operand.vmem [shape: f32[1,32], index: 4, kind: input, shape index: {}]   ;;  %s7978_s5 = inlined_call_operand.vmem [shape: bf16[288,64], index: 5, kind: input, shape index: {}]   ;;  %s7979_s6 = inlined_call_operand.vmem [shape: f32[1,64], index: 6, kind: input, shape index: {}]   ;;  %s7980_s7 = inlined_call_operand.vmem [shape: bf16[576,128], index: 7, kind: input, shape index: {}]   ;;  %s7981_s8 = inlined_call_operand.vmem [shape: f32[1,128], index: 8, kind: input, shape index: {}]   ;;  %s7982_s9 = inlined_call_operand.hbm [shape: bf16[1152,256], index: 9, kind: input, shape index: {}]   ;;  %s7983_s10 = inlined_call_operand.vmem [shape: f32[1,256], index: 10, kind: input, shape index: {}]   ;;  %s7984_s11 = inlined_call_operand.vmem [shape: bf16[256,10], index: 11, kind: input, shape index: {}]   ;;  %s7985_s12 = inlined_call_operand.vmem [shape: f32[1,10], index: 12, kind: input, shape index: {}]   ;;  %s7986_s13 = inlined_call_operand.hbm [shape: f32[2,1,10], index: 13, kind: output, shape index: {}]  }
   0x1   :  { %7987 = sst [smem:[#allocation8_spill]] %s7973_s0 }
   0x2   :  { %7988 = sst [smem:[#allocation9_spill]] %s7974_s1 }
   0x3   :  { %7989 = sst [smem:[#allocation10_spill]] %s7982_s9 }
   0x4   :  { %18 = vsyncpa [#allocation3], 0 }
   0x5   :  { %19 = vsyncpa [#allocation4], 0 }
   0x6   :  { %21 = vsyncpa [#allocation4 + $0x1], 0  ;;  %s6483_s25 = smov 0   ;;  %s6485_s26 = smov 0  }
   0x7   :  { %s6487_s27 = smov 0   ;;  %s6489_s28 = smov 0  }
   0x8 LB: > { %s6504_s29 = sadd.s32 4294967295, %s6408_s28   ;;  %s4968_s30 = sadd.s32 4294967294, %s6408_s28   ;;  %s6408_s28 = sphi %s6489_s28, %s7998_s28   ;;  %s6404_s27 = sphi %s6487_s27, %s7997_s27   ;;  %s6400_s26 = sphi %s6485_s26, %s7996_s26   ;;  %s6396_s25 = sphi %s6483_s25, %s7995_s25  }
   0x9   : > { %s6508_s14 = sadd.s32 1, %s6408_s28   ;;  %s312_s15 = sadd.s32 1, %s6404_s27 }
   0xa   : > { %s309_s16 = ssub.s32 %s6408_s28, %s6508_s14  ;;  %p322_p0 = scmp.ne.s32.totalorder %s6404_s27, %s6400_s26 }
   0xb   : > { %p310_p1 = scmp.eq.s32.totalorder %s309_s16, 0  ;;  %p323_p2 = scmp.eq.s32.totalorder %s6504_s29, 1 }
   0xc   : > { %p328_p3 = scmp.ne.s32.totalorder %s6400_s26, %s6396_s25  ;;  %p329_p4 = scmp.eq.s32.totalorder %s4968_s30, 1 }
   0xd   : > { %s6519_s17 = scalar_select %p310_p1, %s6404_s27, %s312_s15  }
   0xe   : > { %p6521_p5 = por %p323_p2, %p322_p0  ;;  %p6525_p6 = por %p329_p4, %p328_p3 }
   0xf   : > { %p4969_p7 = scmp.ge.s32.totalorder %s6408_s28, 1  ;;  %p336_p8 = scmp.lt.s32.totalorder %s6408_s28, 3 }
  0x10   : > { %p6270_p9 = scmp.eq.s32.totalorder %s6504_s29, 0  ;;  %s7992_s9 = sld [smem:[#allocation10_spill]] }
  0x11   : > { %p337_p10 = pnand %p4969_p7, %p336_p8  ;;  %s6410_s23 = smov [#allocation2]  }
  0x12   : > { %s373_s24 = sshll.u32 %s6410_s23, 4  ;;  %s6411_s30 = smov 128   ;;  %s374_s24 = int_to_ptr.vmem [resolvable:$true] %s373_s24 }
  0x13   : > { %p6262_p11 = pneg %p337_p10  ;;  %s6412_s15 = smov 8  }
  0x14   : > { %406 = sbr.rel (%p337_p10) target bundleno = 1641 (0x669), region = 72 }
  0x15   : > { %p6263_p12 = pnand %p6270_p9, %p6262_p11 }
  0x16   : > { %s371_s22 = sshll.u32 %s7992_s9, 4  ;;  %s372_s22 = int_to_ptr.hbm [resolvable:$true] %s371_s22 }
  0x17   : > { %6265 = dma.hbm_to_vmem [thread:$0]  (!%p6263_p12), %s372_s22, 18432, %s374_s24, [#allocation3], %s6411_s30, %s6411_s30, %s6412_s15  }
  0x19   : > { %6387 = dma.done.wait (%p6270_p9), [#allocation3], 18432  }
  0x1a   : > { %6389 = vsyncadd (%p6270_p9), [#allocation3], 4294948864  ;;  %p450_p13 = scmp.lt.s32.totalorder %s6504_s29, 1  ;;  %vm566_vm0 = vcmask 1041408   ;;  %s7993_s0 = sld [smem:[#allocation8_spill]]  ;;  %vm544_vm1 = vcmask 31744  }
  0x1b   : > { %s7994_s1 = sld [smem:[#allocation9_spill]]  ;;  %vm485_vm2 = vsmask.f32 7424  ;;  %vm680_vm3 = vcmask 1046528   ;;  %vm781_vm4 = vsmask.f32 6400  ;;  %s4897_s30 = scalar_lea.hbm %s7986_s13, %s6504_s29 }
  0x1c   : > { %s451_s16 = scalar_select %p450_p13, %s6504_s29, 1  ;;  %vm1145_vm5 = vcmask 1044480   ;;  %vm1029_vm6 = vsmask.f32 5376  ;;  %vm935_vm7 = vcmask 1045504   ;;  %vm1536_vm9 = vcmask 130048  }
  0x1d   : > { %vm1239_vm8 = vsmask.f32 4352  ;;  %vm2325_vm10 = vcmask 261120   ;;  %vm3070_vm11 = vcmask 523264   ;;  %s448_s23 = sand.u32 1, %s6400_s26   ;;  %s4901_s21 = sshll.u32 %s4897_s30, 4  ;;  %s4902_s21 = int_to_ptr.hbm [resolvable:$true] %s4901_s21 }
  0x1e   : > { %s6032_s20 = sshll.u32 %s451_s16, 7  ;;  %vm4886_vm12 = vcmask 73728   ;;  %s6362_s15 = scalar_lea.hbm %s7986_s13, 2 }
  0x20   : > { %s6546_s9 = scalar_lea.vmem %s7993_s0, %s6032_s20  ;;  %s449_s20 = scalar_lea.vmem [#allocation5], %s448_s23 }
  0x21   : > { %v473_v0 = vld [vmem:[%s7994_s1 + $0x4] sm:$0xf]  ;;  %v457_v2 = vld [vmem:[%s6546_s9 + $0x8] sm:$0xff]  ;;  %v458_v5 = vld [vmem:[%s6546_s9 + $0x10] sm:$0xff]  ;;  %s4889_s0 = scalar_lea.sflag [#allocation4], %s448_s23 }
  0x22   : > { %v456_v1 = vld [vmem:[%s6546_s9] sm:$0xff]  ;;  %v716_v3 = vsel %vm566_vm0, %v473_v0, 0  ;;  %v845_v4 = vunpack.c.l.b16 %v473_v0  ;;  %v459_v6 = vld [vmem:[%s6546_s9 + $0x18] sm:$0xff]  ;;  %v6563_v13 = vpack.c.bf16 %v458_v5, %v457_v2  ;;  %v461_v38 = vld [vmem:[%s6546_s9 + $0x28] sm:$0xff] }
  0x23   : > { %v478_v7 = vpack.c.bf16 %v457_v2, %v456_v1  ;;  %v472_v8 = vld [vmem:[%s7994_s1] sm:$0xf]  ;;  %725 = vmatpush.bf16.msra.mxu2 %v716_v3  ;;  %v6559_v9 = vpack.c.bf16 %v459_v6, %v458_v5  ;;  %v462_v39 = vld [vmem:[%s6546_s9 + $0x30] sm:$0xff]  ;;  %v6592_v40 = vld [vmem:[%s7994_s1 + $0x8] sm:$0xf] }
  0x24   : > { %v541_v10 = vunpack.c.l.b16 %v472_v8  ;;  %v628_v11 = vsel %vm566_vm0, %v472_v8, 0  ;;  %v460_v12 = vld [vmem:[%s6546_s9 + $0x20] sm:$0xff]  ;;  %v846_v15 = vpack.c.b16 %v845_v4, %v845_v4  ;;  %v783_v24 = vshrl.u32 %v6563_v13, 16  ;;  %v463_v60 = vld [vmem:[%s6546_s9 + $0x38] sm:$0xff] }
  0x25   : > { %v681_v14 = vrot.slane %v478_v7, 1  ;;  %637 = vmatpush.bf16.msra.mxu1 %v628_v11  ;;  %v487_v16 = vshrl.u32 %v478_v7, 16  ;;  %v489_v17 = vshll.u32 %v478_v7, 16  ;;  %v682_v18 = vrot.slane %v6559_v9, 1  ;;  %v464_v61 = vld [vmem:[%s6546_s9 + $0x40] sm:$0xff] }
  0x26   : > { %v542_v19 = vpack.c.b16 %v541_v10, %v541_v10  ;;  %v494_v20 = vshll.u32 %v6559_v9, 16  ;;  %v6567_v21 = vpack.c.bf16 %v460_v12, %v459_v6  ;;  %v847_v22 = vrot.slane %v846_v15, 2  ;;  %v465_v15 = vld [vmem:[%s6546_s9 + $0x48] sm:$0xff] }
  0x27   : > { %v491_v23 = vrot.slane %v489_v17, 1  ;;  %v786_v25 = vshll.u32 %v6563_v13, 16  ;;  %v683_v26 = vsel %vm680_vm3, %v681_v14, %v682_v18  ;;  %v785_v32 = vrot.slane %v783_v24, 1 }
  0x28   : > { %v543_v27 = vrot.slane %v542_v19, 2  ;;  %v496_v28 = vrot.slane %v494_v20, 1  ;;  %4983 = vmatmul.msk.bf16.vlgmr.msra.gmra.mxu1 %vm544_vm1, %v478_v7  ;;  %v791_v29 = vshrl.u32 %v6567_v21, 16  ;;  %4990 = vmatmul.msk.bf16.vlgmr.msra.gmra.mxu2 %vm544_vm1, %v683_v26  ;;  %v870_v30 = vsel %vm566_vm0, %v847_v22, 0 }
  0x29   : > { %v492_v31 = vor.u32 %v491_v23, %v487_v16  ;;  %v788_v33 = vrot.slane %v786_v25, 2  ;;  %879 = vmatpush.bf16.msra.mxu3 %v870_v30  ;;  %v794_v36 = vshll.u32 %v6567_v21, 16  ;;  %v971_v43 = vsel %vm566_vm0, %v6592_v40, 0  ;;  %v466_v16 = vld [vmem:[%s6546_s9 + $0x50] sm:$0xff] }
  0x2a   : > { %v568_v34 = vsel %vm566_vm0, %v543_v27, 0  ;;  %v793_v35 = vrot.slane %v791_v29, 1  ;;  %v6599_v45 = vpack.c.bf16 %v461_v38, %v460_v12  ;;  %v6601_v46 = vpack.c.bf16 %v462_v39, %v461_v38  ;;  %v467_v38 = vld [vmem:[%s6546_s9 + $0x58] sm:$0xff] }
  0x2b   : > { %577 = vmatpush.bf16.msra.mxu0 %v568_v34  ;;  %v497_v37 = vsel %vm485_vm2, %v492_v31, %v496_v28  ;;  %v789_v41 = vor.u32 %v788_v33, %v785_v32  ;;  %v796_v42 = vrot.slane %v794_v36, 2  ;;  %v498_v51 = vshrl.u32 %v6559_v9, 16 }
  0x2c   : > { %v684_v48 = vrot.slane %v6599_v45, 1  ;;  %v800_v49 = vshrl.u32 %v6601_v46, 16  ;;  %v803_v50 = vshll.u32 %v6601_v46, 16  ;;  %v502_v52 = vshll.u32 %v6599_v45, 16 }
  0x2d   : > { %v797_v44 = vor.u32 %v796_v42, %v793_v35  ;;  %v500_v56 = vor.u32 %v498_v51, %v496_v28  ;;  %v6627_v63 = vpack.c.bf16 %v463_v60, %v462_v39  ;;  %v6629_v0 = vpack.c.bf16 %v464_v61, %v463_v60  ;;  %v6679_v39 = vld [vmem:[%s6546_s9 + $0x60] sm:$0xff] }
  0x2e   : > { %4976 = vmatmul.msk.bf16.vlgmr.msra.gmra.mxu0 %vm544_vm1, %v497_v37  ;;  %v685_v53 = vsel %vm680_vm3, %v682_v18, %v684_v48  ;;  %v802_v54 = vrot.slane %v800_v49, 1  ;;  %v805_v55 = vrot.slane %v803_v50, 2  ;;  %v504_v57 = vrot.slane %v502_v52, 1 }
  0x2f   : > { %980 = vmatpush.bf16.msrb.mxu0 %v971_v43  ;;  %v798_v47 = vsel %vm781_vm4, %v789_v41, %v797_v44  ;;  %v686_v1 = vrot.slane %v6627_v63, 1  ;;  %v809_v2 = vshrl.u32 %v6629_v0, 16  ;;  %v812_v3 = vshll.u32 %v6629_v0, 16 }
  0x30   : > { %4997 = vmatmul.msk.bf16.vlgmr.msra.gmra.mxu3 %vm544_vm1, %v798_v47  ;;  %v806_v58 = vor.u32 %v805_v55, %v802_v54  ;;  %v505_v59 = vsel %vm485_vm2, %v500_v56, %v504_v57  ;;  %v506_v4 = vshrl.u32 %v6599_v45, 16  ;;  %v510_v5 = vshll.u32 %v6627_v63, 16 }
  0x31   : > { %v687_v6 = vsel %vm680_vm3, %v684_v48, %v686_v1  ;;  %v811_v7 = vrot.slane %v809_v2, 1  ;;  %v814_v8 = vrot.slane %v812_v3, 2  ;;  %v6654_v18 = vpack.c.bf16 %v465_v15, %v464_v61 }
  0x32   : > { %v807_v62 = vsel %vm781_vm4, %v797_v44, %v806_v58  ;;  %v508_v10 = vor.u32 %v506_v4, %v504_v57  ;;  %v512_v11 = vrot.slane %v510_v5, 1  ;;  %v6656_v19 = vpack.c.bf16 %v466_v16, %v465_v15 }
  0x33   : > { %v815_v12 = vor.u32 %v814_v8, %v811_v7  ;;  %v688_v22 = vrot.slane %v6654_v18, 1  ;;  %v514_v27 = vshrl.u32 %v6627_v63, 16  ;;  %v518_v28 = vshll.u32 %v6654_v18, 16 }
  0x34   : > { %v513_v14 = vsel %vm485_vm2, %v508_v10, %v512_v11  ;;  %v818_v23 = vshrl.u32 %v6656_v19, 16  ;;  %v821_v26 = vshll.u32 %v6656_v19, 16  ;;  %v6683_v42 = vpack.c.bf16 %v467_v38, %v466_v16  ;;  %v475_v10 = vld [vmem:[%s7994_s1 + $0xc] sm:$0xf] }
  0x35   : > { %v816_v17 = vsel %vm781_vm4, %v806_v58, %v815_v12  ;;  %v689_v30 = vsel %vm680_vm3, %v686_v1, %v688_v22  ;;  %v516_v33 = vor.u32 %v514_v27, %v512_v11  ;;  %v520_v34 = vrot.slane %v518_v28, 1 }
  0x36   : > { %v820_v31 = vrot.slane %v818_v23, 1  ;;  %v823_v32 = vrot.slane %v821_v26, 2  ;;  %v6686_v43 = vpack.c.bf16 %v6679_v39, %v467_v38  ;;  %v690_v44 = vrot.slane %v6683_v42, 1 }
  0x37   : > { %v521_v37 = vsel %vm485_vm2, %v516_v33, %v520_v34  ;;  %v526_v54 = vshll.u32 %v6683_v42, 16  ;;  %v484_v1 = vpack.c.bf16 %v6679_v39, %v6679_v39  ;;  %v1278_v15 = vunpack.c.l.b16 %v475_v10 }
  0x38   : > { %4984 = vmatmul.msk.bf16.gmra.mxu1 %vm544_vm1, %v6559_v9  ;;  %4991 = vmatmul.msk.bf16.gmra.mxu2 %vm544_vm1, %v685_v53  ;;  %v824_v35 = vor.u32 %v823_v32, %v820_v31  ;;  %v827_v47 = vshrl.u32 %v6686_v43, 16  ;;  %v830_v48 = vshll.u32 %v6686_v43, 16  ;;  %v522_v53 = vshrl.u32 %v6654_v18, 16 }
  0x39   : > { %v691_v55 = vsel %vm680_vm3, %v688_v22, %v690_v44  ;;  %v692_v8 = vrot.slane %v484_v1, 1  ;;  %v530_v16 = vshrl.u32 %v6683_v42, 16  ;;  %v1279_v22 = vpack.c.b16 %v1278_v15, %v1278_v15 }
  0x3a   : > { %v825_v41 = vsel %vm781_vm4, %v815_v12, %v824_v35  ;;  %v829_v56 = vrot.slane %v827_v47, 1  ;;  %v832_v57 = vrot.slane %v830_v48, 2  ;;  %v524_v58 = vor.u32 %v522_v53, %v520_v34 }
  0x3b   : > { %v693_v31 = vsel %vm680_vm3, %v690_v44, %v692_v8  ;;  %v1280_v34 = vrot.slane %v1279_v22, 2  ;;  %v1243_v15 = vrot.slane %v506_v4, 3  ;;  %v476_v22 = vld [vmem:[%s7994_s1 + $0x10] sm:$0x3]  ;;  %s6356_s1 = sshra.s32 %s4902_s21, 4  ;;  %s6357_s1 = int_to_ptr.hbm [resolvable:$true] %s6356_s1 }
  0x3c   : > { %v833_v60 = vor.u32 %v832_v57, %v829_v56  ;;  %s6358_s29 = scalar_lea.hbm %s6357_s1, 1  ;;  %p6363_p3 = scmp.lt.s32.totalorder %s6357_s1, %s7986_s13 }
  0x3d   : > { %v1303_v38 = vsel %vm566_vm0, %v1280_v34, 0  ;;  %p6359_p0 = scmp.ne.s32.totalorder %s6357_s1, %s6358_s29  ;;  %p6364_p4 = scmp.lt.s32.totalorder %s6362_s15, %s6358_s29 }
  0x3e   : > { %4977 = vmatmul.msk.bf16.gmra.mxu0 %vm544_vm1, %v505_v59  ;;  %v528_v59 = vrot.slane %v526_v54, 1  ;;  %1312 = vmatpush.bf16.msrb.mxu3 %v1303_v38  ;;  %v939_v38 = vrot.slane %v6601_v46, 2 }
  0x3f   : > { %p6360_p1 = pnand %p6359_p0, %p6521_p5  ;;  %p6365_p7 = por %p6364_p4, %p6363_p3 }
  0x40   : > { %4998 = vmatmul.msk.bf16.gmra.mxu3 %vm544_vm1, %v807_v62  ;;  %v529_v61 = vsel %vm485_vm2, %v524_v58, %v528_v59  ;;  %v6708_v62 = vld [vmem:[%s6546_s9 + $0x68] sm:$0xff]  ;;  %v538_v58 = vshrl.u32 %v484_v1, 16 }
  0x41   : > { %v6716_v7 = vpack.c.bf16 %v6708_v62, %v6708_v62  ;;  %p6361_p2 = pneg %p6360_p1 }
  0x43   : > { %v836_v11 = vshrl.u32 %v6716_v7, 16  ;;  %v839_v12 = vshll.u32 %v6716_v7, 16  ;;  %p6366_p8 = pnand %p6365_p7, %p6361_p2 }
  0x45   : > { %v838_v32 = vrot.slane %v836_v11, 1  ;;  %v841_v33 = vrot.slane %v839_v12, 2 }
  0x48   : > { %4985 = vmatmul.msk.bf16.gmra.mxu1 %vm544_vm1, %v6599_v45  ;;  %4992 = vmatmul.msk.bf16.gmra.mxu2 %vm544_vm1, %v687_v6  ;;  %v834_v6 = vsel %vm781_vm4, %v824_v35, %v833_v60  ;;  %v532_v35 = vor.u32 %v530_v16, %v528_v59  ;;  %v1030_v59 = vrot.slane %v783_v24, 2 }
  0x4e   : > { %4978 = vmatmul.msk.bf16.gmra.mxu0 %vm544_vm1, %v513_v14  ;;  %v1181_v14 = vsel %vm566_vm0, %v475_v10, 0  ;;  %v1146_v10 = vrot.slane %v6559_v9, 3 }
  0x4f   : > { %1190 = vmatpush.bf16.msrb.mxu2 %v1181_v14 }
  0x50   : > { %4999 = vmatmul.msk.bf16.gmra.mxu3 %vm544_vm1, %v816_v17  ;;  %v534_v17 = vshll.u32 %v484_v1, 16 }
  0x58   : > { %4986 = vmatmul.msk.bf16.gmra.mxu1 %vm544_vm1, %v6627_v63  ;;  %4993 = vmatmul.msk.bf16.gmra.mxu2 %vm544_vm1, %v689_v30  ;;  %v1058_v30 = vunpack.c.l.b16 %v6592_v40 }
  0x5a   : > { %v1059_v40 = vpack.c.b16 %v1058_v30, %v1058_v30  ;;  %v936_v30 = vrot.slane %v6563_v13, 2  ;;  %v1038_v13 = vrot.slane %v803_v50, 3  ;;  %v1248_v50 = vrot.slane %v510_v5, 4 }
  0x5e   : > { %4979 = vmatmul.msk.bf16.gmra.mxu0 %vm544_vm1, %v521_v37  ;;  %v536_v37 = vrot.slane %v534_v17, 1  ;;  %v1244_v17 = vrot.slane %v502_v52, 4 }
  0x60   : > { %5000 = vmatmul.msk.bf16.gmra.mxu3 %vm544_vm1, %v825_v41  ;;  %v842_v41 = vor.u32 %v841_v33, %v838_v32  ;;  %v537_v44 = vsel %vm485_vm2, %v532_v35, %v536_v37  ;;  %v1149_v33 = vrot.slane %v6627_v63, 3  ;;  %v1042_v63 = vrot.slane %v812_v3, 3 }
  0x62   : > { %v843_v57 = vsel %vm781_vm4, %v833_v60, %v842_v41  ;;  %v1034_v60 = vrot.slane %v794_v36, 3  ;;  %v1241_v36 = vrot.slane %v494_v20, 4  ;;  %v1245_v20 = vor.u32 %v1244_v17, %v1243_v15 }
  0x68   : > { %4987 = vmatmul.msk.bf16.gmra.mxu1 %vm544_vm1, %v6654_v18  ;;  %4994 = vmatmul.msk.bf16.gmra.mxu2 %vm544_vm1, %v691_v55  ;;  %v1060_v55 = vrot.slane %v1059_v40, 2 }
  0x6a   : > { %v1083_v56 = vsel %vm566_vm0, %v1060_v55, 0 }
  0x6b   : > { %1092 = vmatpush.bf16.msrb.mxu1 %v1083_v56 }
  0x6e   : > { %4980 = vmatmul.msk.bf16.gmra.mxu0 %vm544_vm1, %v529_v61  ;;  %v1031_v61 = vrot.slane %v786_v25, 3 }
  0x70   : > { %5001 = vmatmul.msk.bf16.gmra.mxu3 %vm544_vm1, %v834_v6  ;;  %v1033_v6 = vrot.slane %v791_v29, 2  ;;  %v1240_v29 = vrot.slane %v498_v51, 3  ;;  %v1037_v51 = vrot.slane %v800_v49, 2  ;;  %v1247_v49 = vrot.slane %v514_v27, 3 }
  0x72   : > { %v1035_v14 = vor.u32 %v1034_v60, %v1033_v6  ;;  %v1242_v9 = vor.u32 %v1241_v36, %v1240_v29  ;;  %v1039_v4 = vor.u32 %v1038_v13, %v1037_v51  ;;  %v1249_v40 = vor.u32 %v1248_v50, %v1247_v49 }
  0x73   : > { %v1252_v29 = vrot.slane %v518_v28, 4  ;;  %v941_v36 = vrot.slane %v6629_v0, 2  ;;  %v1046_v28 = vrot.slane %v821_v26, 3  ;;  %v1153_v13 = vrot.slane %v6683_v42, 3 }
  0x74   : > { %v1246_v52 = vsel %vm1239_vm8, %v1242_v9, %v1245_v20  ;;  %v1040_v35 = vsel %vm1029_vm6, %v1035_v14, %v1039_v4  ;;  %v1250_v27 = vsel %vm1239_vm8, %v1245_v20, %v1249_v40  ;;  %v1255_v50 = vrot.slane %v530_v16, 3 }
  0x78   : > { %4988 = vmatmul.msk.bf16.gmra.mxu1 %vm544_vm1, %v6683_v42  ;;  %4995 = vmatmul.msk.bf16.gmra.mxu2 %vm544_vm1, %v693_v31  ;;  %v937_v31 = vrot.slane %v6567_v21, 2  ;;  %v1049_v42 = vrot.slane %v827_v47, 2 }
  0x7e   : > { %4981 = vmatmul.msk.bf16.gmra.mxu0 %vm544_vm1, %v537_v44  ;;  %v940_v44 = vsel %vm935_vm7, %v937_v31, %v939_v38 }
  0x80   : > { %5002 = vmatmul.msk.bf16.gmra.mxu3 %vm544_vm1, %v843_v57 }
  0x88   : > { %4989 = vmatmul.msk.bf16.gmra.mxu1 %vm544_vm1, %v484_v1  ;;  %4996 = vmatmul.msk.bf16.gmra.mxu2 %vm544_vm1, %v692_v8  ;;  %v1147_v1 = vrot.slane %v6599_v45, 3  ;;  %v1032_v8 = vor.u32 %v1031_v61, %v1030_v59  ;;  %v938_v45 = vsel %vm935_vm7, %v936_v30, %v937_v31  ;;  %v1151_v61 = vrot.slane %v6654_v18, 3 }
  0x89   : > { %v1045_v18 = vrot.slane %v818_v23, 2 }
  0x8a   : > { %v1148_v24 = vsel %vm1145_vm5, %v1146_v10, %v1147_v1  ;;  %v1036_v25 = vsel %vm1029_vm6, %v1032_v8, %v1035_v14  ;;  %v1150_v37 = vsel %vm1145_vm5, %v1147_v1, %v1149_v33  ;;  %v1154_v49 = vsel %vm1145_vm5, %v1151_v61, %v1153_v13 }
  0x8b   : > { %v1047_v51 = vor.u32 %v1046_v28, %v1045_v18  ;;  %v1053_v18 = vrot.slane %v836_v11, 2  ;;  %v1054_v28 = vrot.slane %v839_v12, 3 }
  0x8e   : > { %4982 = vmatmul.msk.bf16.gmra.mxu0 %vm544_vm1, %v538_v58  ;;  %v1041_v58 = vrot.slane %v809_v2, 2 }
  0x90   : > { %5003 = vmatmul.msk.bf16.gmra.mxu3 %vm544_vm1, %v838_v32  ;;  %v1380_v32 = vsel %vm566_vm0, %v476_v22, 0  ;;  %v1043_v59 = vor.u32 %v1042_v63, %v1041_v58  ;;  %v942_v22 = vsel %vm935_vm7, %v939_v38, %v941_v36  ;;  %v1256_v38 = vrot.slane %v526_v54, 4 }
  0x91   : > { %1389 = vmatpush.bf16.msra.mxu0 %v1380_v32  ;;  %v1050_v54 = vrot.slane %v830_v48, 3 }
  0x92   : > { %v1044_v14 = vsel %vm1029_vm6, %v1039_v4, %v1043_v59 }
  0x98   : > { %5011 = vmatmul.msk.bf16.vlgmr.msrb.gmra.mxu1 %vm544_vm1, %v1036_v25  ;;  %5018 = vmatmul.msk.bf16.vlgmr.msrb.gmra.mxu2 %vm544_vm1, %v1148_v24  ;;  %v1152_v24 = vsel %vm1145_vm5, %v1149_v33, %v1151_v61  ;;  %v1251_v25 = vrot.slane %v522_v53, 3  ;;  %v1051_v61 = vor.u32 %v1050_v54, %v1049_v42 }
  0x9a   : > { %v1253_v15 = vor.u32 %v1252_v29, %v1251_v25  ;;  %v945_v29 = vrot.slane %v6686_v43, 2 }
  0x9e   : > { %5004 = vmatmul.msk.bf16.vlgmr.msrb.gmra.mxu0 %vm544_vm1, %v938_v45  ;;  %v1254_v45 = vsel %vm1239_vm8, %v1249_v40, %v1253_v15  ;;  %v943_v40 = vrot.slane %v6656_v19, 2 }
  0xa0   : > { %5025 = vmatmul.msk.bf16.vlgmr.msrb.gmra.mxu3 %vm544_vm1, %v1246_v52 }
  0xa5   : > { %v639_v34 = vpop.f32.mrf.mxu1 }
  0xa8   : > { %5012 = vmatmul.msk.bf16.gmra.mxu1 %vm544_vm1, %v1040_v35  ;;  %5019 = vmatmul.msk.bf16.gmra.mxu2 %vm544_vm1, %v1150_v37  ;;  %v1048_v37 = vsel %vm1029_vm6, %v1043_v59, %v1047_v51  ;;  %v1141_v59 = vpack.c.bf16 %v6708_v62, %v6679_v39 }
  0xab   : > { %v579_v41 = vpop.f32.mrf.mxu0  ;;  %v727_v56 = vpop.f32.mrf.mxu2 }
  0xac   : > { %v640_v55 = vadd.f32 %v639_v34, %v579_v41  ;;  %v1257_v41 = vor.u32 %v1256_v38, %v1255_v50 }
  0xad   : > { %v641_v57 = vpop.f32.mrf.mxu1 }
  0xae   : > { %v761_v5 = vadd.f32 %v727_v56, %v640_v55  ;;  %5005 = vmatmul.msk.bf16.gmra.mxu0 %vm544_vm1, %v940_v44  ;;  %v944_v55 = vsel %vm935_vm7, %v941_v36, %v943_v40 }
  0xb0   : > { %5026 = vmatmul.msk.bf16.gmra.mxu3 %vm544_vm1, %v1250_v27  ;;  %v1258_v27 = vsel %vm1239_vm8, %v1253_v15, %v1257_v41 }
  0xb3   : > { %v581_v6 = vpop.f32.mrf.mxu0  ;;  %v881_v60 = vpop.f32.mrf.mxu3 }
  0xb4   : > { %v642_v10 = vadd.f32 %v641_v57, %v581_v6  ;;  %v729_v1 = vpop.f32.mrf.mxu2  ;;  %v6802_v8 = vadd.f32 %v881_v60, %v761_v5  ;;  %v1155_v6 = vrot.slane %v1141_v59, 3  ;;  %v1260_v60 = vshrl.u32 %v1141_v59, 16 }
  0xb5   : > { %v644_v2 = vpop.f32.mrf.mxu1 }
  0xb6   : > { %v762_v3 = vadd.f32 %v729_v1, %v642_v10  ;;  %v1263_v10 = vshll.u32 %v1141_v59, 16  ;;  %v1262_v39 = vrot.slane %v1260_v60, 3 }
  0xb8   : > { %5013 = vmatmul.msk.bf16.gmra.mxu1 %vm544_vm1, %v1044_v14  ;;  %5020 = vmatmul.msk.bf16.gmra.mxu2 %vm544_vm1, %v1152_v24  ;;  %v1156_v24 = vsel %vm1145_vm5, %v1153_v13, %v1155_v6  ;;  %v1265_v25 = vrot.slane %v1263_v10, 4  ;;  %v1055_v13 = vor.u32 %v1054_v28, %v1053_v18 }
  0xba   : > { %v1266_v36 = vor.u32 %v1265_v25, %v1262_v39 }
  0xbb   : > { %v584_v17 = vpop.f32.mrf.mxu0  ;;  %v883_v30 = vpop.f32.mrf.mxu3 }
  0xbc   : > { %v645_v31 = vadd.f32 %v644_v2, %v584_v17  ;;  %v732_v32 = vpop.f32.mrf.mxu2  ;;  %v6814_v9 = vadd.f32 %v883_v30, %v762_v3  ;;  %v1052_v3 = vsel %vm1029_vm6, %v1047_v51, %v1051_v61  ;;  %v946_v17 = vsel %vm935_vm7, %v943_v40, %v945_v29 }
  0xbd   : > { %v646_v20 = vpop.f32.mrf.mxu1  ;;  %v947_v40 = vrot.slane %v6716_v7, 2 }
  0xbe   : > { %v763_v53 = vadd.f32 %v732_v32, %v645_v31  ;;  %5006 = vmatmul.msk.bf16.gmra.mxu0 %vm544_vm1, %v942_v22  ;;  %v6862_v22 = vld [vmem:[%s6546_s9 + $0x70] sm:$0xff] }
  0xbf   : > { %v1142_v51 = vpack.c.bf16 %v6862_v22, %v6862_v22 }
  0xc0   : > { %5027 = vmatmul.msk.bf16.gmra.mxu3 %vm544_vm1, %v1254_v45  ;;  %v1267_v45 = vsel %vm1239_vm8, %v1257_v41, %v1266_v36 }
  0xc3   : > { %v586_v52 = vpop.f32.mrf.mxu0  ;;  %v886_v4 = vpop.f32.mrf.mxu3 }
  0xc4   : > { %v647_v33 = vadd.f32 %v646_v20, %v586_v52  ;;  %v734_v34 = vpop.f32.mrf.mxu2  ;;  %v6824_v35 = vadd.f32 %v886_v4, %v763_v53  ;;  %v1157_v52 = vrot.slane %v1142_v51, 3  ;;  %v1269_v4 = vshrl.u32 %v1142_v51, 16 }
  0xc5   : > { %v649_v23 = vpop.f32.mrf.mxu1 }
  0xc6   : > { %v764_v26 = vadd.f32 %v734_v34, %v647_v33  ;;  %v1272_v33 = vshll.u32 %v1142_v51, 16  ;;  %v1271_v50 = vrot.slane %v1269_v4, 3 }
  0xc8   : > { %5014 = vmatmul.msk.bf16.gmra.mxu1 %vm544_vm1, %v1048_v37  ;;  %5021 = vmatmul.msk.bf16.gmra.mxu2 %vm544_vm1, %v1154_v49  ;;  %v1158_v49 = vsel %vm1145_vm5, %v1155_v6, %v1157_v52  ;;  %v1274_v38 = vrot.slane %v1272_v33, 4 }
  0xca   : > { %v1275_v41 = vor.u32 %v1274_v38, %v1271_v50 }
  0xcb   : > { %v589_v44 = vpop.f32.mrf.mxu0  ;;  %v888_v56 = vpop.f32.mrf.mxu3 }
  0xcc   : > { %v650_v57 = vadd.f32 %v649_v23, %v589_v44  ;;  %v737_v58 = vpop.f32.mrf.mxu2  ;;  %v6836_v63 = vadd.f32 %v888_v56, %v764_v26  ;;  %v1056_v26 = vsel %vm1029_vm6, %v1051_v61, %v1055_v13 }
  0xcd   : > { %v6838_v5 = vpop.f32.mrf.mxu1 }
  0xce   : > { %v765_v16 = vadd.f32 %v737_v58, %v650_v57  ;;  %5007 = vmatmul.msk.bf16.gmra.mxu0 %vm544_vm1, %v944_v55  ;;  %v948_v55 = vsel %vm935_vm7, %v945_v29, %v947_v40 }
  0xd0   : > { %5028 = vmatmul.msk.bf16.gmra.mxu3 %vm544_vm1, %v1258_v27 }
  0xd3   : > { %v6849_v1 = vpop.f32.mrf.mxu0  ;;  %v891_v47 = vpop.f32.mrf.mxu3 }
  0xd4   : > { %v6851_v2 = vpop.f32.mrf.mxu2  ;;  %v6853_v48 = vadd.f32 %v891_v47, %v765_v16  ;;  %v1276_v16 = vsel %vm1239_vm8, %v1266_v36, %v1275_v41 }
  0xd5   : > { %v654_v14 = vpop.f32.mrf.mxu1 }
  0xd8   : > { %5015 = vmatmul.msk.bf16.gmra.mxu1 %vm544_vm1, %v1052_v3  ;;  %5022 = vmatmul.msk.bf16.gmra.mxu2 %vm544_vm1, %v1156_v24 }
  0xdb   : > { %v594_v15 = vpop.f32.mrf.mxu0  ;;  %v6864_v30 = vpop.f32.mrf.mxu3 }
  0xdc   : > { %v655_v31 = vadd.f32 %v654_v14, %v594_v15  ;;  %v742_v32 = vpop.f32.mrf.mxu2 }
  0xdd   : > { %v6866_v20 = vpop.f32.mrf.mxu1 }
  0xde   : > { %v767_v53 = vadd.f32 %v742_v32, %v655_v31  ;;  %5008 = vmatmul.msk.bf16.gmra.mxu0 %vm544_vm1, %v946_v17 }
  0xe0   : > { %5029 = vmatmul.msk.bf16.gmra.mxu3 %vm544_vm1, %v1267_v45 }
  0xe3   : > { %v6877_v34 = vpop.f32.mrf.mxu0  ;;  %v896_v11 = vpop.f32.mrf.mxu3 }
  0xe4   : > { %v6879_v23 = vpop.f32.mrf.mxu2  ;;  %v6881_v12 = vadd.f32 %v896_v11, %v767_v53 }
  0xe5   : > { %v659_v37 = vpop.f32.mrf.mxu1 }
  0xe8   : > { %5016 = vmatmul.msk.bf16.gmra.mxu1 %vm544_vm1, %v1056_v26  ;;  %5023 = vmatmul.msk.bf16.gmra.mxu2 %vm544_vm1, %v1158_v49 }
  0xeb   : > { %v599_v44 = vpop.f32.mrf.mxu0  ;;  %v6889_v56 = vpop.f32.mrf.mxu3 }
  0xec   : > { %v660_v57 = vadd.f32 %v659_v37, %v599_v44  ;;  %v747_v58 = vpop.f32.mrf.mxu2 }
  0xed   : > { %v6891_v42 = vpop.f32.mrf.mxu1 }
  0xee   : > { %v769_v54 = vadd.f32 %v747_v58, %v660_v57  ;;  %5009 = vmatmul.msk.bf16.gmra.mxu0 %vm544_vm1, %v948_v55 }
  0xf0   : > { %5030 = vmatmul.msk.bf16.gmra.mxu3 %vm544_vm1, %v1276_v16 }
  0xf3   : > { %v6896_v7 = vpop.f32.mrf.mxu0  ;;  %v901_v27 = vpop.f32.mrf.mxu3 }
  0xf4   : > { %v6898_v59 = vpop.f32.mrf.mxu2  ;;  %v6900_v61 = vadd.f32 %v901_v27, %v769_v54 }
  0xf5   : > { %v664_v6 = vpop.f32.mrf.mxu1 }
  0xf8   : > { %5017 = vmatmul.msk.bf16.gmra.mxu1 %vm544_vm1, %v1053_v18  ;;  %5024 = vmatmul.msk.bf16.gmra.mxu2 %vm544_vm1, %v1157_v52 }
  0xfb   : > { %v604_v60 = vpop.f32.mrf.mxu0  ;;  %v6904_v10 = vpop.f32.mrf.mxu3 }
  0xfc   : > { %v665_v47 = vadd.f32 %v664_v6, %v604_v60  ;;  %v752_v14 = vpop.f32.mrf.mxu2 }
  0xfd   : > { %v6906_v3 = vpop.f32.mrf.mxu1 }
  0xfe   : > { %v771_v24 = vadd.f32 %v752_v14, %v665_v47  ;;  %5010 = vmatmul.msk.bf16.gmra.mxu0 %vm544_vm1, %v947_v40 }
 0x100   : > { %5031 = vmatmul.msk.bf16.gmra.mxu3 %vm544_vm1, %v1271_v50 }
 0x103   : > { %v6910_v39 = vpop.f32.mrf.mxu0  ;;  %v906_v25 = vpop.f32.mrf.mxu3 }
 0x104   : > { %v6912_v29 = vpop.f32.mrf.mxu2  ;;  %v6914_v36 = vadd.f32 %v906_v25, %v771_v24 }
 0x105   : > { %v669_v15 = vpop.f32.mrf.mxu1 }
 0x10b   : > { %v609_v17 = vpop.f32.mrf.mxu0  ;;  %v6916_v31 = vpop.f32.mrf.mxu3 }
 0x10c   : > { %v670_v32 = vadd.f32 %v669_v15, %v609_v17  ;;  %v757_v18 = vpop.f32.mrf.mxu2 }
 0x10d   : > { %v671_v28 = vpop.f32.mrf.mxu1 }
 0x10e   : > { %v773_v53 = vadd.f32 %v757_v18, %v670_v32  ;;  %5032 = vmatmul.msk.bf16.vlgmr.msra.gmra.mxu0 %vm544_vm1, %v6567_v21 }
 0x113   : > { %v611_v45 = vpop.f32.mrf.mxu0  ;;  %v911_v51 = vpop.f32.mrf.mxu3 }
 0x114   : > { %v759_v13 = vpop.f32.mrf.mxu2  ;;  %v6920_v52 = vadd.f32 %v911_v51, %v773_v53 }
 0x115   : > { %v1094_v4 = vpop.f32.mrf.mxu1 }
 0x11b   : > { %v982_v33 = vpop.f32.mrf.mxu0  ;;  %v913_v11 = vpop.f32.mrf.mxu3 }
 0x11c   : > { %v1016_v37 = vadd.f32 %v982_v33, %v6802_v8  ;;  %v1192_v26 = vpop.f32.mrf.mxu2 }
 0x11d   : > { %v6923_v49 = vpop.f32.mrf.mxu1 }
 0x11e   : > { %v1128_v50 = vadd.f32 %v1094_v4, %v1016_v37  ;;  %5033 = vmatmul.msk.bf16.gmra.mxu0 %vm544_vm1, %v6601_v46 }
 0x120   : > { %v1226_v38 = vadd.f32 %v1192_v26, %v1128_v50 }
 0x123   : > { %v984_v40 = vpop.f32.mrf.mxu0  ;;  %v1314_v21 = vpop.f32.mrf.mxu3 }
 0x124   : > { %v6928_v41 = vadd.f32 %v984_v40, %v6814_v9  ;;  %v6930_v44 = vpop.f32.mrf.mxu2  ;;  %v6932_v55 = vadd.f32 %v1314_v21, %v1226_v38 }
 0x125   : > { %v1099_v57 = vpop.f32.mrf.mxu1 }
 0x12b   : > { %v987_v58 = vpop.f32.mrf.mxu0  ;;  %v6934_v8 = vpop.f32.mrf.mxu3 }
 0x12c   : > { %v1018_v54 = vadd.f32 %v987_v58, %v6824_v35  ;;  %v1197_v16 = vpop.f32.mrf.mxu2  ;;  %v6033_v35 = vld [vmem:[%s7976_s3] sm:$0xff] }
 0x12d   : > { %v6937_v27 = vpop.f32.mrf.mxu1  ;;  %1609 = vmatpush.bf16.msra.mxu2 %v6033_v35 }
 0x12e   : > { %v1130_v46 = vadd.f32 %v1099_v57, %v1018_v54  ;;  %5034 = vmatmul.msk.bf16.gmra.mxu0 %vm544_vm1, %v6629_v0 }
 0x130   : > { %v1228_v6 = vadd.f32 %v1197_v16, %v1130_v46 }
 0x133   : > { %v989_v9 = vpop.f32.mrf.mxu0  ;;  %v1319_v60 = vpop.f32.mrf.mxu3 }
 0x134   : > { %v6942_v47 = vadd.f32 %v989_v9, %v6836_v63  ;;  %v6944_v14 = vpop.f32.mrf.mxu2  ;;  %v6946_v24 = vadd.f32 %v1319_v60, %v1228_v6  ;;  %v6034_v63 = vld [vmem:[%s7976_s3 + $0x8] sm:$0xff] }
 0x135   : > { %v1104_v25 = vpop.f32.mrf.mxu1  ;;  %1559 = vmatpush.bf16.msra.mxu1 %v6034_v63 }
 0x13b   : > { %v992_v15 = vpop.f32.mrf.mxu0  ;;  %v6951_v17 = vpop.f32.mrf.mxu3 }
 0x13c   : > { %v1020_v0 = vadd.f32 %v992_v15, %v6853_v48  ;;  %v1202_v32 = vpop.f32.mrf.mxu2 }
 0x13d   : > { %v6954_v18 = vpop.f32.mrf.mxu1 }
 0x13e   : > { %v1132_v28 = vadd.f32 %v1104_v25, %v1020_v0  ;;  %5035 = vmatmul.msk.bf16.gmra.mxu0 %vm544_vm1, %v6656_v19 }
 0x140   : > { %v1230_v53 = vadd.f32 %v1202_v32, %v1132_v28 }
 0x143   : > { %v6961_v45 = vpop.f32.mrf.mxu0  ;;  %v1324_v51 = vpop.f32.mrf.mxu3 }
 0x144   : > { %v6963_v13 = vpop.f32.mrf.mxu2  ;;  %v6965_v4 = vadd.f32 %v1324_v51, %v1230_v53 }
 0x145   : > { %v1109_v48 = vpop.f32.mrf.mxu1 }
 0x14b   : > { %v997_v33 = vpop.f32.mrf.mxu0  ;;  %v6967_v11 = vpop.f32.mrf.mxu3 }
 0x14c   : > { %v1022_v37 = vadd.f32 %v997_v33, %v6881_v12  ;;  %v1207_v26 = vpop.f32.mrf.mxu2  ;;  %v1361_v12 = vpack.c.bf16 %v6862_v22, %v6708_v62  ;;  %v471_v22 = vld [vmem:[%s6546_s9 + $0x78] sm:$0x1]  ;;  %s4899_s9 = sshll.u32 %s449_s20, 4  ;;  %s4900_s9 = int_to_ptr.vmem [resolvable:$true] %s4899_s9 }
 0x14d   : > { %v6970_v50 = vpop.f32.mrf.mxu1  ;;  %v1362_v63 = vpack.c.bf16 %v471_v22, %v471_v22 }
 0x14e   : > { %v1134_v38 = vadd.f32 %v1109_v48, %v1022_v37  ;;  %5036 = vmatmul.msk.bf16.gmra.mxu0 %vm544_vm1, %v6686_v43 }
 0x150   : > { %v1232_v19 = vadd.f32 %v1207_v26, %v1134_v38 }
 0x153   : > { %v6974_v40 = vpop.f32.mrf.mxu0  ;;  %v1329_v21 = vpop.f32.mrf.mxu3 }
 0x154   : > { %v6976_v57 = vpop.f32.mrf.mxu2  ;;  %v6978_v58 = vadd.f32 %v1329_v21, %v1232_v19 }
 0x155   : > { %v1114_v54 = vpop.f32.mrf.mxu1 }
 0x15b   : > { %v1002_v16 = vpop.f32.mrf.mxu0  ;;  %v6982_v46 = vpop.f32.mrf.mxu3 }
 0x15c   : > { %v1024_v6 = vadd.f32 %v1002_v16, %v6900_v61  ;;  %v1212_v9 = vpop.f32.mrf.mxu2 }
 0x15d   : > { %v6985_v43 = vpop.f32.mrf.mxu1 }
 0x15e   : > { %v1136_v60 = vadd.f32 %v1114_v54, %v1024_v6  ;;  %5037 = vmatmul.msk.bf16.gmra.mxu0 %vm544_vm1, %v1361_v12 }
 0x160   : > { %v1234_v25 = vadd.f32 %v1212_v9, %v1136_v60 }
 0x163   : > { %v6988_v35 = vpop.f32.mrf.mxu0  ;;  %v1334_v15 = vpop.f32.mrf.mxu3 }
 0x164   : > { %v6990_v0 = vpop.f32.mrf.mxu2  ;;  %v6992_v32 = vadd.f32 %v1334_v15, %v1234_v25 }
 0x165   : > { %v1119_v62 = vpop.f32.mrf.mxu1 }
 0x16b   : > { %v1007_v28 = vpop.f32.mrf.mxu0  ;;  %v6995_v53 = vpop.f32.mrf.mxu3 }
 0x16c   : > { %v1026_v61 = vadd.f32 %v1007_v28, %v6914_v36  ;;  %v1217_v51 = vpop.f32.mrf.mxu2  ;;  %v6035_v28 = vld [vmem:[%s7976_s3 + $0x10] sm:$0xff] }
 0x16d   : > { %v6998_v48 = vpop.f32.mrf.mxu1  ;;  %1678 = vmatpush.bf16.msra.mxu3 %v6035_v28 }
 0x16e   : > { %v1138_v33 = vadd.f32 %v1119_v62, %v1026_v61  ;;  %5038 = vmatmul.msk.bf16.gmra.mxu0 %vm544_vm1, %v1362_v63  ;;  %v1129_v61 = vadd.f32 %v6923_v49, %v6928_v41 }
 0x170   : > { %v1236_v37 = vadd.f32 %v1217_v51, %v1138_v33 }
 0x173   : > { %v7001_v26 = vpop.f32.mrf.mxu0  ;;  %v1339_v38 = vpop.f32.mrf.mxu3 }
 0x174   : > { %v7003_v19 = vpop.f32.mrf.mxu2  ;;  %v7005_v21 = vadd.f32 %v1339_v38, %v1236_v37  ;;  %v7022_v38 = vld [vmem:[%s7975_s2] ss:$0 sm:$0xff] }
 0x175   : > { %v1124_v54 = vpop.f32.mrf.mxu1 }
 0x17b   : > { %v1012_v12 = vpop.f32.mrf.mxu0  ;;  %v7007_v16 = vpop.f32.mrf.mxu3 }
 0x17c   : > { %v1028_v36 = vadd.f32 %v1012_v12, %v6920_v52  ;;  %v1222_v6 = vpop.f32.mrf.mxu2  ;;  %v1227_v52 = vadd.f32 %v6930_v44, %v1129_v61  ;;  %v1131_v44 = vadd.f32 %v6937_v27, %v6942_v47 }
 0x17d   : > { %v1126_v9 = vpop.f32.mrf.mxu1 }
 0x17e   : > { %v1140_v60 = vadd.f32 %v1124_v54, %v1028_v36  ;;  %v1349_v54 = vadd.f32 %v6934_v8, %v1227_v52  ;;  %v6039_v8 = vld [vmem:[%s7976_s3 + $0x30] sm:$0xff] }
 0x17f   : > { %2031 = vmatpush.bf16.msrb.mxu0 %v6039_v8 }
 0x180   : > { %v1238_v25 = vadd.f32 %v1222_v6, %v1140_v60 }
 0x183   : > { %v1014_v15 = vpop.f32.mrf.mxu0  ;;  %v1344_v62 = vpop.f32.mrf.mxu3 }
 0x184   : > { %v1224_v22 = vpop.f32.mrf.mxu2  ;;  %v7010_v63 = vadd.f32 %v1344_v62, %v1238_v25  ;;  %v652_v15 = vadd.f32 %v6838_v5, %v6849_v1  ;;  %v1229_v62 = vadd.f32 %v6944_v14, %v1131_v44 }
 0x186   : > { %v766_v27 = vadd.f32 %v6851_v2, %v652_v15  ;;  %v1351_v47 = vadd.f32 %v6951_v17, %v1229_v62  ;;  %v6037_v2 = vld [vmem:[%s7976_s3 + $0x20] sm:$0xff]  ;;  %v6036_v17 = vld [vmem:[%s7976_s3 + $0x18] sm:$0xff] }
 0x187   : > { %1871 = vmatpush.bf16.msrb.mxu2 %v6037_v2  ;;  %1792 = vmatpush.bf16.msrb.mxu1 %v6036_v17 }
 0x18b   : > { %v1391_v51 = vpop.f32.mrf.mxu0  ;;  %v1346_v33 = vpop.f32.mrf.mxu3 }
 0x18c   : > { %v1425_v37 = vadd.f32 %v1391_v51, %v6932_v55  ;;  %v920_v51 = vadd.f32 %v6864_v30, %v766_v27 }
 0x18e   : > { %v1441_v36 = vadd.f32 %v7022_v38, %v1425_v37  ;;  %v1021_v52 = vadd.f32 %v6961_v45, %v920_v51  ;;  %v657_v45 = vadd.f32 %v6866_v20, %v6877_v34 }
 0x190   : > { %v1454_v49 = vmax.f32 %v1441_v36, 0.0  ;;  %v1133_v14 = vadd.f32 %v6954_v18, %v1021_v52 }
 0x192   : > { %v1231_v44 = vadd.f32 %v6963_v13, %v1133_v14 }
 0x193   : > { %v1393_v12 = vpop.f32.mrf.mxu0 }
 0x194   : > { %v1426_v6 = vadd.f32 %v1393_v12, %v1349_v54 }
 0x196   : > { %v1442_v9 = vadd.f32 %v7022_v38, %v1426_v6 }
 0x198   : > { %v1455_v41 = vmax.f32 %v1442_v9, 0.0 }
 0x19a   : > { %v1486_v55 = vpack.c.bf16 %v1455_v41, %v1454_v49 }
 0x19b   : > { %v1396_v60 = vpop.f32.mrf.mxu0 }
 0x19c   : > { %v1427_v25 = vadd.f32 %v1396_v60, %v6946_v24  ;;  %5052 = vmatmul.msk.bf16.vlgmr.msra.gmra.mxu2 %vm1536_vm9, %v1486_v55  ;;  %v1494_v37 = vshll.u32 %v1486_v55, 16  ;;  %v1492_v36 = vshrl.u32 %v1486_v55, 16  ;;  %v1641_v18 = vrot.slane %v1486_v55, 1 }
 0x19e   : > { %v1443_v22 = vadd.f32 %v7022_v38, %v1427_v25  ;;  %v1496_v54 = vrot.slane %v1494_v37, 1 }
 0x1a0   : > { %v1456_v28 = vmax.f32 %v1443_v22, 0.0  ;;  %v1497_v25 = vor.u32 %v1496_v54, %v1492_v36 }
 0x1a2   : > { %v7040_v24 = vpack.c.bf16 %v1456_v28, %v1455_v41 }
 0x1a3   : > { %v1398_v61 = vpop.f32.mrf.mxu0 }
 0x1a4   : > { %v1428_v33 = vadd.f32 %v1398_v61, %v1351_v47 }
 0x1a6   : > { %v1444_v5 = vadd.f32 %v7022_v38, %v1428_v33 }
 0x1a8   : > { %v1457_v1 = vmax.f32 %v1444_v5, 0.0 }
 0x1aa   : > { %v1487_v12 = vpack.c.bf16 %v1457_v1, %v1456_v28  ;;  %v1353_v28 = vadd.f32 %v6967_v11, %v1231_v44 }
 0x1ab   : > { %v1401_v30 = vpop.f32.mrf.mxu0 }
 0x1ac   : > { %v1429_v6 = vadd.f32 %v1401_v30, %v6965_v4  ;;  %5053 = vmatmul.msk.bf16.gmra.mxu2 %vm1536_vm9, %v1487_v12  ;;  %v1642_v9 = vrot.slane %v1487_v12, 1  ;;  %v1499_v49 = vshll.u32 %v1487_v12, 16  ;;  %v1503_v41 = vshrl.u32 %v1487_v12, 16 }
 0x1ad   : > { %v768_v4 = vadd.f32 %v6879_v23, %v657_v45  ;;  %v1994_v14 = vrot.slane %v1487_v12, 3 }
 0x1ae   : > { %v1445_v60 = vadd.f32 %v7022_v38, %v1429_v6  ;;  %v1643_v8 = vsel %vm680_vm3, %v1641_v18, %v1642_v9  ;;  %v1501_v15 = vrot.slane %v1499_v49, 1  ;;  %v2068_v20 = vrot.slane %v1503_v41, 3 }
 0x1af   : > { %v2069_v34 = vrot.slane %v1499_v49, 4  ;;  %5061 = vmatmul.msk.bf16.vlgmr.msra.gmra.mxu3 %vm1536_vm9, %v1643_v8  ;;  %v922_v13 = vadd.f32 %v6889_v56, %v768_v4  ;;  %v662_v56 = vadd.f32 %v6891_v42, %v6896_v7 }
 0x1b0   : > { %v1458_v62 = vmax.f32 %v1445_v60, 0.0  ;;  %v1502_v55 = vsel %vm485_vm2, %v1497_v25, %v1501_v15 }
 0x1b1   : > { %v2070_v22 = vor.u32 %v2069_v34, %v2068_v20  ;;  %5043 = vmatmul.msk.bf16.vlgmr.msra.gmra.mxu1 %vm1536_vm9, %v1502_v55  ;;  %v1023_v51 = vadd.f32 %v6974_v40, %v922_v13  ;;  %v1505_v40 = vor.u32 %v1503_v41, %v1501_v15  ;;  %v770_v7 = vadd.f32 %v6898_v59, %v662_v56 }
 0x1b2   : > { %v7063_v27 = vpack.c.bf16 %v1458_v62, %v1457_v1 }
 0x1b3   : > { %v1403_v47 = vpop.f32.mrf.mxu0  ;;  %v1135_v23 = vadd.f32 %v6970_v50, %v1023_v51 }
 0x1b4   : > { %v1430_v61 = vadd.f32 %v1403_v47, %v1353_v28 }
 0x1b5   : > { %v1233_v17 = vadd.f32 %v6976_v57, %v1135_v23 }
 0x1b6   : > { %v1446_v33 = vadd.f32 %v7022_v38, %v1430_v61 }
 0x1b7   : > { %v1355_v49 = vadd.f32 %v6982_v46, %v1233_v17 }
 0x1b8   : > { %v1459_v52 = vmax.f32 %v1446_v33, 0.0 }
 0x1ba   : > { %v1488_v37 = vpack.c.bf16 %v1459_v52, %v1458_v62 }
 0x1bb   : > { %v1406_v5 = vpop.f32.mrf.mxu0 }
 0x1bc   : > { %v1431_v11 = vadd.f32 %v1406_v5, %v6978_v58  ;;  %v1644_v1 = vrot.slane %v1488_v37, 1  ;;  %v1995_v54 = vrot.slane %v1488_v37, 3  ;;  %v1507_v2 = vshll.u32 %v1488_v37, 16  ;;  %5054 = vmatmul.msk.bf16.gmra.mxu2 %vm1536_vm9, %v1488_v37 }
 0x1bd   : > { %v1511_v30 = vshrl.u32 %v1488_v37, 16 }
 0x1be   : > { %v1447_v45 = vadd.f32 %v7022_v38, %v1431_v11  ;;  %v1645_v50 = vsel %vm680_vm3, %v1642_v9, %v1644_v1  ;;  %v1996_v12 = vsel %vm1145_vm5, %v1994_v14, %v1995_v54  ;;  %v1509_v36 = vrot.slane %v1507_v2, 1 }
 0x1bf   : > { %5097 = vmatmul.msk.bf16.vlgmr.msrb.gmra.mxu0 %vm1536_vm9, %v1996_v12  ;;  %v2072_v58 = vrot.slane %v1507_v2, 4  ;;  %v2071_v6 = vrot.slane %v1511_v30, 3  ;;  %5062 = vmatmul.msk.bf16.gmra.mxu3 %vm1536_vm9, %v1645_v50  ;;  %v924_v9 = vadd.f32 %v6904_v10, %v770_v7  ;;  %v667_v10 = vadd.f32 %v6906_v3, %v6910_v39 }
 0x1c0   : > { %v1460_v18 = vmax.f32 %v1447_v45, 0.0  ;;  %v1510_v42 = vsel %vm485_vm2, %v1505_v40, %v1509_v36 }
 0x1c1   : > { %v2073_v57 = vor.u32 %v2072_v58, %v2071_v6  ;;  %5044 = vmatmul.msk.bf16.gmra.mxu1 %vm1536_vm9, %v1510_v42  ;;  %v1025_v8 = vadd.f32 %v6988_v35, %v924_v9  ;;  %v1513_v35 = vor.u32 %v1511_v30, %v1509_v36  ;;  %v772_v39 = vadd.f32 %v6912_v29, %v667_v10 }
 0x1c2   : > { %v7083_v41 = vpack.c.bf16 %v1460_v18, %v1459_v52 }
 0x1c3   : > { %v1408_v44 = vpop.f32.mrf.mxu0  ;;  %v7088_v60 = vsel %vm1239_vm8, %v2070_v22, %v2073_v57  ;;  %v1137_v59 = vadd.f32 %v6985_v43, %v1025_v8  ;;  %v926_v5 = vadd.f32 %v6916_v31, %v772_v39 }
 0x1c4   : > { %v1432_v25 = vadd.f32 %v1408_v44, %v1355_v49 }
 0x1c5   : > { %v1235_v22 = vadd.f32 %v6990_v0, %v1137_v59 }
 0x1c6   : > { %v1448_v15 = vadd.f32 %v7022_v38, %v1432_v25 }
 0x1c7   : > { %v1357_v23 = vadd.f32 %v6995_v53, %v1235_v22 }
 0x1c8   : > { %v1461_v20 = vmax.f32 %v1448_v15, 0.0 }
 0x1ca   : > { %v1489_v34 = vpack.c.bf16 %v1461_v20, %v1460_v18 }
 0x1cb   : > { %v1411_v46 = vpop.f32.mrf.mxu0 }
 0x1cc   : > { %v1433_v62 = vadd.f32 %v1411_v46, %v6992_v32  ;;  %v1646_v4 = vrot.slane %v1489_v34, 1  ;;  %v1997_v55 = vrot.slane %v1489_v34, 3  ;;  %v1515_v28 = vshll.u32 %v1489_v34, 16  ;;  %5055 = vmatmul.msk.bf16.gmra.mxu2 %vm1536_vm9, %v1489_v34 }
 0x1cd   : > { %v1519_v13 = vshrl.u32 %v1489_v34, 16  ;;  %v1834_v34 = vrot.slane %v7040_v24, 2 }
 0x1ce   : > { %v1449_v47 = vadd.f32 %v7022_v38, %v1433_v62  ;;  %v1647_v43 = vsel %vm680_vm3, %v1644_v1, %v1646_v4  ;;  %v1998_v61 = vsel %vm1145_vm5, %v1995_v54, %v1997_v55  ;;  %v1517_v51 = vrot.slane %v1515_v28, 1 }
 0x1cf   : > { %5098 = vmatmul.msk.bf16.gmra.mxu0 %vm1536_vm9, %v1998_v61  ;;  %v2075_v32 = vrot.slane %v1519_v13, 3  ;;  %v2076_v33 = vrot.slane %v1515_v28, 4  ;;  %5063 = vmatmul.msk.bf16.gmra.mxu3 %vm1536_vm9, %v1647_v43  ;;  %v1027_v54 = vadd.f32 %v7001_v26, %v926_v5  ;;  %v6038_v26 = vld [vmem:[%s7976_s3 + $0x28] sm:$0xff] }
 0x1d0   : > { %v1462_v52 = vmax.f32 %v1449_v47, 0.0  ;;  %v1518_v3 = vsel %vm485_vm2, %v1513_v35, %v1517_v51  ;;  %v1521_v12 = vor.u32 %v1519_v13, %v1517_v51  ;;  %1955 = vmatpush.bf16.msrb.mxu3 %v6038_v26  ;;  %v1741_v26 = vshll.u32 %v7083_v41, 16 }
 0x1d1   : > { %v2077_v0 = vor.u32 %v2076_v33, %v2075_v32  ;;  %5045 = vmatmul.msk.bf16.gmra.mxu1 %vm1536_vm9, %v1518_v3  ;;  %v1139_v29 = vadd.f32 %v6998_v48, %v1027_v54  ;;  %v6040_v32 = vld [vmem:[%s7976_s3 + $0x38] sm:$0xff]  ;;  %v1732_v3 = vshll.u32 %v7063_v27, 16 }
 0x1d2   : > { %v7106_v37 = vpack.c.bf16 %v1462_v52, %v1461_v20  ;;  %v1835_v20 = vrot.slane %v7063_v27, 2  ;;  %2120 = vmatpush.bf16.msra.mxu1 %v6040_v32 }
 0x1d3   : > { %v1413_v14 = vpop.f32.mrf.mxu0  ;;  %v7111_v11 = vsel %vm1239_vm8, %v2073_v57, %v2077_v0  ;;  %v1237_v31 = vadd.f32 %v7003_v19, %v1139_v29  ;;  %v1734_v29 = vrot.slane %v1732_v3, 2 }
 0x1d4   : > { %v1434_v1 = vadd.f32 %v1413_v14, %v1357_v23  ;;  %v1724_v23 = vshll.u32 %v7040_v24, 16  ;;  %v1912_v14 = vrot.slane %v1732_v3, 3 }
 0x1d5   : > { %v1359_v49 = vadd.f32 %v7007_v16, %v1237_v31  ;;  %v1836_v16 = vsel %vm935_vm7, %v1834_v34, %v1835_v20 }
 0x1d6   : > { %v1450_v2 = vadd.f32 %v7022_v38, %v1434_v1  ;;  %v1837_v1 = vrot.slane %v7083_v41, 2 }
 0x1d8   : > { %v1463_v56 = vmax.f32 %v1450_v2, 0.0  ;;  %v1909_v2 = vrot.slane %v1724_v23, 3 }
 0x1da   : > { %v1490_v17 = vpack.c.bf16 %v1463_v56, %v1462_v52  ;;  %v1729_v52 = vshrl.u32 %v7063_v27, 16 }
 0x1db   : > { %v1416_v53 = vpop.f32.mrf.mxu0 }
 0x1dc   : > { %v1435_v40 = vadd.f32 %v1416_v53, %v7005_v21  ;;  %v1648_v30 = vrot.slane %v1490_v17, 1  ;;  %v1999_v45 = vrot.slane %v1490_v17, 3  ;;  %v1523_v50 = vshll.u32 %v1490_v17, 16  ;;  %5056 = vmatmul.msk.bf16.gmra.mxu2 %vm1536_vm9, %v1490_v17 }
 0x1dd   : > { %v1527_v36 = vshrl.u32 %v1490_v17, 16  ;;  %v1911_v5 = vrot.slane %v1729_v52, 2  ;;  %v1726_v53 = vrot.slane %v1724_v23, 2 }
 0x1de   : > { %v1451_v58 = vadd.f32 %v7022_v38, %v1435_v40  ;;  %v1649_v48 = vsel %vm680_vm3, %v1646_v4, %v1648_v30  ;;  %v2000_v6 = vsel %vm1145_vm5, %v1997_v55, %v1999_v45  ;;  %v1525_v21 = vrot.slane %v1523_v50, 1 }
 0x1df   : > { %5099 = vmatmul.msk.bf16.gmra.mxu0 %vm1536_vm9, %v2000_v6  ;;  %v2079_v18 = vrot.slane %v1527_v36, 3  ;;  %v2080_v19 = vrot.slane %v1523_v50, 4  ;;  %5064 = vmatmul.msk.bf16.gmra.mxu3 %vm1536_vm9, %v1649_v48  ;;  %v1913_v40 = vor.u32 %v1912_v14, %v1911_v5  ;;  %v1916_v48 = vrot.slane %v1741_v26, 3 }
 0x1e0   : > { %v1464_v42 = vmax.f32 %v1451_v58, 0.0  ;;  %v1526_v7 = vsel %vm485_vm2, %v1521_v12, %v1525_v21  ;;  %v1529_v61 = vor.u32 %v1527_v36, %v1525_v21  ;;  %v1738_v36 = vshrl.u32 %v7083_v41, 16 }
 0x1e1   : > { %v2081_v57 = vor.u32 %v2080_v19, %v2079_v18  ;;  %5046 = vmatmul.msk.bf16.gmra.mxu1 %vm1536_vm9, %v1526_v7  ;;  %v1839_v6 = vrot.slane %v7106_v37, 2  ;;  %v1743_v18 = vrot.slane %v1741_v26, 2 }
 0x1e2   : > { %v7129_v9 = vpack.c.bf16 %v1464_v42, %v1463_v56  ;;  %v1731_v56 = vrot.slane %v1729_v52, 1  ;;  %v1915_v58 = vrot.slane %v1738_v36, 2  ;;  %v1740_v21 = vrot.slane %v1738_v36, 1 }
 0x1e3   : > { %v1418_v44 = vpop.f32.mrf.mxu0  ;;  %v7133_v25 = vsel %vm1239_vm8, %v2077_v0, %v2081_v57  ;;  %v1721_v0 = vshrl.u32 %v7040_v24, 16 }
 0x1e4   : > { %v1436_v8 = vadd.f32 %v1418_v44, %v1359_v49  ;;  %v1735_v50 = vor.u32 %v1734_v29, %v1731_v56  ;;  %v1917_v19 = vor.u32 %v1916_v48, %v1915_v58  ;;  %v1744_v7 = vor.u32 %v1743_v18, %v1740_v21 }
 0x1e5   : > { %v1908_v54 = vrot.slane %v1721_v0, 2  ;;  %v1723_v17 = vrot.slane %v1721_v0, 1  ;;  %v1747_v44 = vshrl.u32 %v7106_v37, 16 }
 0x1e6   : > { %v1452_v15 = vadd.f32 %v7022_v38, %v1436_v8  ;;  %v1745_v49 = vsel %vm781_vm4, %v1735_v50, %v1744_v7  ;;  %v1750_v8 = vshll.u32 %v7106_v37, 16 }
 0x1e7   : > { %v1727_v24 = vor.u32 %v1726_v53, %v1723_v17  ;;  %v1749_v34 = vrot.slane %v1747_v44, 1 }
 0x1e8   : > { %v1465_v59 = vmax.f32 %v1452_v15, 0.0  ;;  %v1919_v15 = vrot.slane %v1747_v44, 2 }
 0x1e9   : > { %v1736_v12 = vsel %vm781_vm4, %v1727_v24, %v1735_v50 }
 0x1ea   : > { %v1992_v46 = vpack.c.bf16 %v1465_v59, %v1464_v42  ;;  %v1840_v42 = vsel %vm935_vm7, %v1837_v1, %v1839_v6 }
 0x1eb   : > { %v1421_v62 = vpop.f32.mrf.mxu0 }
 0x1ec   : > { %v1437_v4 = vadd.f32 %v1421_v62, %v7010_v63  ;;  %v2001_v55 = vrot.slane %v1992_v46, 3  ;;  %v2084_v28 = vshrl.u32 %v1992_v46, 16  ;;  %v2087_v10 = vshll.u32 %v1992_v46, 16  ;;  %5079 = vmatmul.msk.bf16.vlgmr.msrb.gmra.mxu2 %vm1536_vm9, %v1836_v16 }
 0x1ed   : > { %v1752_v46 = vrot.slane %v1750_v8, 2 }
 0x1ee   : > { %v1453_v22 = vadd.f32 %v7022_v38, %v1437_v4  ;;  %v2002_v35 = vsel %vm1145_vm5, %v1999_v45, %v2001_v55  ;;  %v2086_v13 = vrot.slane %v2084_v28, 3  ;;  %v2089_v47 = vrot.slane %v2087_v10, 4  ;;  %v6041_v38 = vld [vmem:[%s7976_s3 + $0x40] sm:$0xff] }
 0x1ef   : > { %5100 = vmatmul.msk.bf16.gmra.mxu0 %vm1536_vm9, %v2002_v35  ;;  %5065 = vmatmul.msk.bf16.gmra.mxu3 %vm1536_vm9, %v1648_v30  ;;  %v1838_v30 = vsel %vm935_vm7, %v1835_v20, %v1837_v1  ;;  %v1910_v45 = vor.u32 %v1909_v2, %v1908_v54  ;;  %v1920_v20 = vrot.slane %v1750_v8, 3  ;;  %v1753_v4 = vor.u32 %v1752_v46, %v1749_v34 }
 0x1f0   : > { %v1466_v43 = vmax.f32 %v1453_v22, 0.0  ;;  %v7145_v51 = vor.u32 %v2089_v47, %v2086_v13  ;;  %2182 = vmatpush.bf16.msra.mxu2 %v6041_v38  ;;  %v1756_v22 = vshrl.u32 %v7129_v9, 16  ;;  %v1759_v35 = vshll.u32 %v7129_v9, 16 }
 0x1f1   : > { %5047 = vmatmul.msk.bf16.gmra.mxu1 %vm1536_vm9, %v1529_v61  ;;  %v1914_v31 = vsel %vm1029_vm6, %v1910_v45, %v1913_v40  ;;  %v1921_v62 = vor.u32 %v1920_v20, %v1919_v15  ;;  %v1754_v10 = vsel %vm781_vm4, %v1744_v7, %v1753_v4 }
 0x1f2   : > { %v7147_v63 = vpack.c.bf16 %v1466_v43, %v1465_v59  ;;  %v7158_v33 = vsel %vm1239_vm8, %v2081_v57, %v7145_v51  ;;  %v1918_v57 = vsel %vm1029_vm6, %v1913_v40, %v1917_v19  ;;  %v1841_v59 = vrot.slane %v7129_v9, 2 }
 0x1f3   : > { %v1423_v39 = vpop.f32.mrf.mxu0  ;;  %v1922_v28 = vsel %vm1029_vm6, %v1917_v19, %v1921_v62  ;;  %v1923_v47 = vrot.slane %v1756_v22, 2  ;;  %v1924_v43 = vrot.slane %v1759_v35, 3  ;;  %v1758_v61 = vrot.slane %v1756_v22, 1 }
 0x1f4   : > { %v1842_v16 = vsel %vm935_vm7, %v1839_v6, %v1841_v59  ;;  %v1761_v38 = vrot.slane %v1759_v35, 2 }
 0x1f5   : > { %v1925_v32 = vor.u32 %v1924_v43, %v1923_v47 }
 0x1f6   : > { %v1762_v52 = vor.u32 %v1761_v38, %v1758_v61 }
 0x1f7   : > { %v1926_v39 = vsel %vm1029_vm6, %v1921_v62, %v1925_v32 }
 0x1f8   : > { %v1763_v5 = vsel %vm781_vm4, %v1753_v4, %v1762_v52 }
 0x1fc   : > { %5080 = vmatmul.msk.bf16.gmra.mxu2 %vm1536_vm9, %v1838_v30 }
 0x1ff   : > { %5101 = vmatmul.msk.bf16.gmra.mxu0 %vm1536_vm9, %v2001_v55  ;;  %5088 = vmatmul.msk.bf16.vlgmr.msrb.gmra.mxu3 %vm1536_vm9, %v1914_v31 }
 0x201   : > { %5070 = vmatmul.msk.bf16.vlgmr.msrb.gmra.mxu1 %vm1536_vm9, %v1736_v12 }
 0x20c   : > { %5081 = vmatmul.msk.bf16.gmra.mxu2 %vm1536_vm9, %v1840_v42 }
 0x20f   : > { %5089 = vmatmul.msk.bf16.gmra.mxu3 %vm1536_vm9, %v1918_v57 }
 0x211   : > { %5071 = vmatmul.msk.bf16.gmra.mxu1 %vm1536_vm9, %v1745_v49 }
 0x21c   : > { %5082 = vmatmul.msk.bf16.gmra.mxu2 %vm1536_vm9, %v1842_v16 }
 0x21f   : > { %v1611_v55 = vpop.f32.mrf.mxu2  ;;  %5090 = vmatmul.msk.bf16.gmra.mxu3 %vm1536_vm9, %v1922_v28 }
 0x221   : > { %5072 = vmatmul.msk.bf16.gmra.mxu1 %vm1536_vm9, %v1754_v10 }
 0x227   : > { %v1613_v13 = vpop.f32.mrf.mxu2 }
 0x22c   : > { %5083 = vmatmul.msk.bf16.gmra.mxu2 %vm1536_vm9, %v1841_v59 }
 0x22e   : > { %v1561_v3 = vpop.f32.mrf.mxu1 }
 0x22f   : > { %v1612_v0 = vadd.f32 %v1611_v55, %v1561_v3  ;;  %v1616_v23 = vpop.f32.mrf.mxu2  ;;  %5091 = vmatmul.msk.bf16.gmra.mxu3 %vm1536_vm9, %v1926_v39 }
 0x231   : > { %5073 = vmatmul.msk.bf16.gmra.mxu1 %vm1536_vm9, %v1763_v5 }
 0x232   : > { %v1680_v14 = vpop.f32.mrf.mxu3 }
 0x233   : > { %v1705_v1 = vadd.f32 %v1680_v14, %v1612_v0 }
 0x236   : > { %v1563_v54 = vpop.f32.mrf.mxu1 }
 0x237   : > { %v7197_v2 = vadd.f32 %v1613_v13, %v1563_v54  ;;  %v1618_v56 = vpop.f32.mrf.mxu2  ;;  %v6043_v54 = vld [vmem:[%s7978_s5 + $0x8] sm:$0xff] }
 0x238   : > { %2392 = vmatpush.bf16.msra.mxu0 %v6043_v54 }
 0x23a   : > { %v7199_v29 = vpop.f32.mrf.mxu3 }
 0x23c   : > { %5115 = vmatmul.msk.bf16.vlgmr.msra.gmra.mxu2 %vm1536_vm9, %v7063_v27 }
 0x23e   : > { %v1566_v17 = vpop.f32.mrf.mxu1 }
 0x23f   : > { %v1617_v53 = vadd.f32 %v1616_v23, %v1566_v17  ;;  %v1621_v40 = vpop.f32.mrf.mxu2  ;;  %5092 = vmatmul.msk.bf16.gmra.mxu3 %vm1536_vm9, %v1925_v32 }
 0x241   : > { %5074 = vmatmul.msk.bf16.gmra.mxu1 %vm1536_vm9, %v1762_v52 }
 0x242   : > { %v1685_v30 = vpop.f32.mrf.mxu3 }
 0x243   : > { %v1707_v45 = vadd.f32 %v1685_v30, %v1617_v53  ;;  %v6042_v53 = vld [vmem:[%s7978_s5] sm:$0xff] }
 0x244   : > { %2393 = vmatpush.bf16.msra.mxu0 %v6042_v53 }
 0x246   : > { %v1568_v50 = vpop.f32.mrf.mxu1 }
 0x247   : > { %v7205_v31 = vadd.f32 %v1618_v56, %v1568_v50  ;;  %v1623_v24 = vpop.f32.mrf.mxu2  ;;  %v2033_v56 = vpop.f32.mrf.mxu0 }
 0x24a   : > { %v7207_v12 = vpop.f32.mrf.mxu3 }
 0x24c   : > { %5116 = vmatmul.msk.bf16.gmra.mxu2 %vm1536_vm9, %v7083_v41 }
 0x24e   : > { %v1571_v36 = vpop.f32.mrf.mxu1 }
 0x24f   : > { %v1622_v27 = vadd.f32 %v1621_v40, %v1571_v36  ;;  %v1626_v26 = vpop.f32.mrf.mxu2 }
 0x251   : > { %5106 = vmatmul.msk.bf16.vlgmr.msra.gmra.mxu1 %vm1536_vm9, %v7088_v60 }
 0x252   : > { %v1690_v58 = vpop.f32.mrf.mxu3 }
 0x253   : > { %v1709_v48 = vadd.f32 %v1690_v58, %v1622_v27  ;;  %v1706_v27 = vadd.f32 %v7199_v29, %v7197_v2  ;;  %v7280_v2 = vld [vmem:[%s7977_s4] ss:$0 sm:$0xff] }
 0x256   : > { %v1573_v6 = vpop.f32.mrf.mxu1 }
 0x257   : > { %v7213_v21 = vadd.f32 %v1623_v24, %v1573_v6  ;;  %v7215_v18 = vpop.f32.mrf.mxu2  ;;  %v2035_v24 = vpop.f32.mrf.mxu0 }
 0x25a   : > { %v7217_v19 = vpop.f32.mrf.mxu3 }
 0x25c   : > { %5117 = vmatmul.msk.bf16.gmra.mxu2 %vm1536_vm9, %v7106_v37 }
 0x25e   : > { %v1576_v42 = vpop.f32.mrf.mxu1 }
 0x25f   : > { %v1627_v41 = vadd.f32 %v1626_v26, %v1576_v42  ;;  %v1631_v7 = vpop.f32.mrf.mxu2 }
 0x261   : > { %5107 = vmatmul.msk.bf16.gmra.mxu1 %vm1536_vm9, %v7111_v11 }
 0x262   : > { %v1695_v57 = vpop.f32.mrf.mxu3 }
 0x263   : > { %v1711_v60 = vadd.f32 %v1695_v57, %v1627_v41  ;;  %v2038_v57 = vpop.f32.mrf.mxu0 }
 0x266   : > { %v7223_v49 = vpop.f32.mrf.mxu1 }
 0x267   : > { %v7225_v44 = vpop.f32.mrf.mxu2 }
 0x26a   : > { %v7227_v8 = vpop.f32.mrf.mxu3 }
 0x26c   : > { %5118 = vmatmul.msk.bf16.gmra.mxu2 %vm1536_vm9, %v7129_v9 }
 0x26e   : > { %v1581_v15 = vpop.f32.mrf.mxu1 }
 0x26f   : > { %v1632_v20 = vadd.f32 %v1631_v7, %v1581_v15  ;;  %v1873_v37 = vpop.f32.mrf.mxu2 }
 0x271   : > { %5108 = vmatmul.msk.bf16.gmra.mxu1 %vm1536_vm9, %v7133_v25 }
 0x272   : > { %v1700_v59 = vpop.f32.mrf.mxu3 }
 0x273   : > { %v1713_v34 = vadd.f32 %v1700_v59, %v1632_v20 }
 0x276   : > { %v7233_v11 = vpop.f32.mrf.mxu1 }
 0x277   : > { %v1875_v46 = vpop.f32.mrf.mxu2 }
 0x27a   : > { %v7254_v3 = vpop.f32.mrf.mxu3 }
 0x27c   : > { %5119 = vmatmul.msk.bf16.gmra.mxu2 %vm1536_vm9, %v7147_v63 }
 0x27e   : > { %v1794_v62 = vpop.f32.mrf.mxu1 }
 0x27f   : > { %v1819_v16 = vadd.f32 %v1794_v62, %v1705_v1  ;;  %v1878_v4 = vpop.f32.mrf.mxu2 }
 0x281   : > { %5109 = vmatmul.msk.bf16.gmra.mxu1 %vm1536_vm9, %v7158_v33  ;;  %v1898_v9 = vadd.f32 %v1873_v37, %v1819_v16  ;;  %v6045_v33 = vld [vmem:[%s7978_s5 + $0x18] sm:$0xff]  ;;  %v1708_v16 = vadd.f32 %v7207_v12, %v7205_v31 }
 0x282   : > { %2344 = vmatpush.bf16.msra.mxu3 %v6045_v33  ;;  %v1957_v5 = vpop.f32.mrf.mxu3 }
 0x283   : > { %v1982_v6 = vadd.f32 %v1957_v5, %v1898_v9 }
 0x285   : > { %v2058_v7 = vadd.f32 %v2033_v56, %v1982_v6 }
 0x286   : > { %v1796_v55 = vpop.f32.mrf.mxu1 }
 0x287   : > { %v7239_v28 = vpop.f32.mrf.mxu2  ;;  %v1820_v26 = vadd.f32 %v1796_v55, %v1706_v27 }
 0x289   : > { %v1899_v42 = vadd.f32 %v1875_v46, %v1820_v26  ;;  %v6051_v46 = vld [vmem:[%s7978_s5 + $0x48] sm:$0xff] }
 0x28a   : > { %v1959_v40 = vpop.f32.mrf.mxu3  ;;  %2623 = vmatpush.bf16.msrb.mxu2 %v6051_v46 }
 0x28b   : > { %v1983_v15 = vadd.f32 %v1959_v40, %v1899_v42 }
 0x28d   : > { %v2059_v29 = vadd.f32 %v2035_v24, %v1983_v15  ;;  %v1710_v24 = vadd.f32 %v7217_v19, %v7213_v21 }
 0x28e   : > { %v1799_v10 = vpop.f32.mrf.mxu1 }
 0x28f   : > { %v1821_v25 = vadd.f32 %v1799_v10, %v1707_v45  ;;  %v1883_v22 = vpop.f32.mrf.mxu2 }
 0x291   : > { %5110 = vmatmul.msk.bf16.gmra.mxu1 %vm1536_vm9, %v7145_v51  ;;  %v1900_v35 = vadd.f32 %v1878_v4, %v1821_v25 }
 0x292   : > { %v1962_v58 = vpop.f32.mrf.mxu3 }
 0x293   : > { %v1984_v9 = vadd.f32 %v1962_v58, %v1900_v35 }
 0x295   : > { %v2060_v33 = vadd.f32 %v2038_v57, %v1984_v9 }
 0x296   : > { %v1801_v13 = vpop.f32.mrf.mxu1 }
 0x297   : > { %v7243_v47 = vpop.f32.mrf.mxu2  ;;  %v1822_v55 = vadd.f32 %v1801_v13, %v1708_v16 }
 0x299   : > { %v1901_v31 = vadd.f32 %v7239_v28, %v1822_v55 }
 0x29a   : > { %v1964_v37 = vpop.f32.mrf.mxu3 }
 0x29b   : > { %v1985_v56 = vadd.f32 %v1964_v37, %v1901_v31 }
 0x29e   : > { %v1804_v63 = vpop.f32.mrf.mxu1 }
 0x29f   : > { %v1823_v43 = vadd.f32 %v1804_v63, %v1709_v48  ;;  %v1888_v61 = vpop.f32.mrf.mxu2  ;;  %v6050_v63 = vld [vmem:[%s7978_s5 + $0x40] sm:$0xff] }
 0x2a0   : > { %2624 = vmatpush.bf16.msrb.mxu2 %v6050_v63 }
 0x2a1   : > { %v7248_v38 = vadd.f32 %v1883_v22, %v1823_v43  ;;  %v6049_v22 = vld [vmem:[%s7978_s5 + $0x38] sm:$0xff]  ;;  %v2040_v43 = vpop.f32.mrf.mxu0 }
 0x2a2   : > { %2553 = vmatpush.bf16.msrb.mxu1 %v6049_v22  ;;  %v1967_v12 = vpop.f32.mrf.mxu3 }
 0x2a3   : > { %v1986_v6 = vadd.f32 %v1967_v12, %v7248_v38 }
 0x2a6   : > { %v7250_v32 = vpop.f32.mrf.mxu1 }
 0x2a7   : > { %v7252_v52 = vpop.f32.mrf.mxu2  ;;  %v1824_v42 = vadd.f32 %v7250_v32, %v1710_v24 }
 0x2a9   : > { %v2043_v53 = vpop.f32.mrf.mxu0 }
 0x2aa   : > { %v1969_v27 = vpop.f32.mrf.mxu3  ;;  %v2062_v15 = vadd.f32 %v2043_v53, %v1986_v6 }
 0x2ae   : > { %v1809_v51 = vpop.f32.mrf.mxu1 }
 0x2af   : > { %v1825_v39 = vadd.f32 %v1809_v51, %v1711_v60  ;;  %v1893_v0 = vpop.f32.mrf.mxu2  ;;  %v6044_v60 = vld [vmem:[%s7978_s5 + $0x10] sm:$0xff] }
 0x2b0   : > { %2345 = vmatpush.bf16.msra.mxu3 %v6044_v60  ;;  %v6048_v51 = vld [vmem:[%s7978_s5 + $0x30] sm:$0xff]  ;;  %v1903_v60 = vadd.f32 %v7243_v47, %v1824_v42 }
 0x2b1   : > { %v7256_v23 = vadd.f32 %v1888_v61, %v1825_v39  ;;  %2554 = vmatpush.bf16.msrb.mxu1 %v6048_v51 }
 0x2b2   : > { %v1987_v38 = vadd.f32 %v1969_v27, %v1903_v60  ;;  %v1972_v46 = vpop.f32.mrf.mxu3 }
 0x2b6   : > { %v7258_v14 = vpop.f32.mrf.mxu1 }
 0x2b7   : > { %v7260_v1 = vpop.f32.mrf.mxu2 }
 0x2ba   : > { %v1974_v24 = vpop.f32.mrf.mxu3 }
 0x2be   : > { %v1814_v17 = vpop.f32.mrf.mxu1 }
 0x2bf   : > { %v1827_v30 = vadd.f32 %v1814_v17, %v1713_v34  ;;  %v2184_v45 = vpop.f32.mrf.mxu2 }
 0x2c1   : > { %v7268_v50 = vadd.f32 %v1893_v0, %v1827_v30  ;;  %v2061_v30 = vadd.f32 %v2040_v43, %v1985_v56 }
 0x2c6   : > { %v7270_v36 = vpop.f32.mrf.mxu1 }
 0x2c7   : > { %v2186_v48 = vpop.f32.mrf.mxu2 }
 0x2ce   : > { %v2122_v41 = vpop.f32.mrf.mxu1 }
 0x2cf   : > { %v2147_v20 = vadd.f32 %v2122_v41, %v2058_v7  ;;  %v2189_v59 = vpop.f32.mrf.mxu2 }
 0x2d1   : > { %v2209_v34 = vadd.f32 %v2184_v45, %v2147_v20  ;;  %v2045_v20 = vpop.f32.mrf.mxu0 }
 0x2d2   : > { %v2063_v12 = vadd.f32 %v2045_v20, %v1987_v38 }
 0x2d3   : > { %v2222_v10 = vadd.f32 %v7280_v2, %v2209_v34 }
 0x2d5   : > { %v2232_v35 = vmax.f32 %v2222_v10, 0.0 }
 0x2d6   : > { %v2124_v62 = vpop.f32.mrf.mxu1 }
 0x2d7   : > { %v2148_v4 = vadd.f32 %v2124_v62, %v2059_v29  ;;  %v2191_v39 = vpop.f32.mrf.mxu2  ;;  %v1629_v29 = vadd.f32 %v7215_v18, %v7223_v49 }
 0x2d9   : > { %v2210_v25 = vadd.f32 %v2186_v48, %v2148_v4  ;;  %v2048_v56 = vpop.f32.mrf.mxu0 }
 0x2db   : > { %v2223_v61 = vadd.f32 %v7280_v2, %v2210_v25 }
 0x2dd   : > { %v2233_v13 = vmax.f32 %v2223_v61, 0.0 }
 0x2de   : > { %v2127_v0 = vpop.f32.mrf.mxu1 }
 0x2df   : > { %v2279_v5 = vpack.c.bf16 %v2233_v13, %v2232_v35  ;;  %v2149_v54 = vadd.f32 %v2127_v0, %v2060_v33  ;;  %v2194_v48 = vpop.f32.mrf.mxu2  ;;  %v1712_v35 = vadd.f32 %v7227_v8, %v1629_v29 }
 0x2e1   : > { %v2211_v17 = vadd.f32 %v2189_v59, %v2149_v54  ;;  %5140 = vmatmul.msk.bf16.vlgmr.msra.gmra.mxu0 %vm2325_vm10, %v2279_v5  ;;  %v2286_v7 = vshll.u32 %v2279_v5, 16  ;;  %v2284_v62 = vshrl.u32 %v2279_v5, 16  ;;  %v2418_v9 = vrot.slane %v2279_v5, 1  ;;  %v6047_v54 = vld [vmem:[%s7978_s5 + $0x28] sm:$0xff] }
 0x2e2   : > { %v1826_v8 = vadd.f32 %v7258_v14, %v1712_v35  ;;  %2455 = vmatpush.bf16.msrb.mxu3 %v6047_v54  ;;  %v6053_v14 = vld [vmem:[%s7978_s5 + $0x58] sm:$0xff] }
 0x2e3   : > { %v2224_v28 = vadd.f32 %v7280_v2, %v2211_v17  ;;  %v2288_v19 = vrot.slane %v2286_v7, 1  ;;  %2697 = vmatpush.bf16.msrb.mxu0 %v6053_v14 }
 0x2e4   : > { %v1905_v42 = vadd.f32 %v7252_v52, %v1826_v8 }
 0x2e5   : > { %v2234_v40 = vmax.f32 %v2224_v28, 0.0  ;;  %v2289_v49 = vor.u32 %v2288_v19, %v2284_v62  ;;  %v2050_v62 = vpop.f32.mrf.mxu0 }
 0x2e6   : > { %v2129_v45 = vpop.f32.mrf.mxu1  ;;  %v1989_v19 = vadd.f32 %v1974_v24, %v1905_v42 }
 0x2e7   : > { %v7303_v26 = vpack.c.bf16 %v2234_v40, %v2233_v13  ;;  %v2150_v58 = vadd.f32 %v2129_v45, %v2061_v30  ;;  %v2196_v16 = vpop.f32.mrf.mxu2 }
 0x2e9   : > { %v2212_v41 = vadd.f32 %v2191_v39, %v2150_v58  ;;  %v2489_v10 = vshrl.u32 %v7303_v26, 16  ;;  %v2492_v25 = vshll.u32 %v7303_v26, 16  ;;  %v1988_v39 = vadd.f32 %v1972_v46, %v7256_v23 }
 0x2ea   : > { %v2586_v23 = vrot.slane %v7303_v26, 2 }
 0x2eb   : > { %v2225_v57 = vadd.f32 %v7280_v2, %v2212_v41  ;;  %v2491_v17 = vrot.slane %v2489_v10, 1  ;;  %v2494_v28 = vrot.slane %v2492_v25, 2 }
 0x2ed   : > { %v2235_v37 = vmax.f32 %v2225_v57, 0.0  ;;  %v2064_v57 = vadd.f32 %v2048_v56, %v1988_v39  ;;  %v2495_v60 = vor.u32 %v2494_v28, %v2491_v17 }
 0x2ee   : > { %v2132_v59 = vpop.f32.mrf.mxu1 }
 0x2ef   : > { %v2151_v21 = vadd.f32 %v2132_v59, %v2062_v15  ;;  %v7309_v34 = vpack.c.bf16 %v2235_v37, %v2234_v40  ;;  %v2199_v41 = vpop.f32.mrf.mxu2 }
 0x2f1   : > { %v2213_v32 = vadd.f32 %v2194_v48, %v2151_v21  ;;  %5141 = vmatmul.msk.bf16.gmra.mxu0 %vm2325_vm10, %v7309_v34  ;;  %v2291_v47 = vshll.u32 %v7309_v34, 16  ;;  %v2295_v4 = vshrl.u32 %v7309_v34, 16  ;;  %v2419_v55 = vrot.slane %v7309_v34, 1 }
 0x2f3   : > { %v2226_v18 = vadd.f32 %v7280_v2, %v2213_v32  ;;  %v2293_v22 = vrot.slane %v2291_v47, 1  ;;  %v7321_v63 = vrot.slane %v2295_v4, 3  ;;  %v7326_v43 = vsel %vm680_vm3, %v2418_v9, %v2419_v55 }
 0x2f4   : > { %v7328_v61 = vrot.slane %v2291_v47, 4  ;;  %v2730_v47 = vrot.slane %v7309_v34, 3 }
 0x2f5   : > { %v2236_v31 = vmax.f32 %v2226_v18, 0.0  ;;  %v2294_v33 = vsel %vm485_vm2, %v2289_v49, %v2293_v22 }
 0x2f6   : > { %v2134_v13 = vpop.f32.mrf.mxu1  ;;  %v2798_v51 = vor.u32 %v7328_v61, %v7321_v63  ;;  %5128 = vmatmul.msk.bf16.vlgmr.msra.gmra.mxu3 %vm2325_vm10, %v2294_v33  ;;  %v1977_v33 = vpop.f32.mrf.mxu3 }
 0x2f7   : > { %v7335_v0 = vpack.c.bf16 %v2236_v31, %v2235_v37  ;;  %v2152_v5 = vadd.f32 %v2134_v13, %v2063_v12  ;;  %v6052_v37 = vld [vmem:[%s7978_s5 + $0x50] sm:$0xff]  ;;  %v2201_v54 = vpop.f32.mrf.mxu2  ;;  %v1990_v28 = vadd.f32 %v1977_v33, %v7268_v50 }
 0x2f8   : > { %2698 = vmatpush.bf16.msrb.mxu0 %v6052_v37 }
 0x2f9   : > { %v2497_v53 = vshrl.u32 %v7335_v0, 16  ;;  %v2500_v40 = vshll.u32 %v7335_v0, 16  ;;  %v2214_v30 = vadd.f32 %v2196_v16, %v2152_v5  ;;  %v2587_v45 = vrot.slane %v7335_v0, 2 }
 0x2fa   : > { %v2297_v16 = vor.u32 %v2295_v4, %v2293_v22  ;;  %v2065_v4 = vadd.f32 %v2050_v62, %v1989_v19 }
 0x2fb   : > { %v2227_v27 = vadd.f32 %v7280_v2, %v2214_v30  ;;  %v2588_v58 = vsel %vm935_vm7, %v2586_v23, %v2587_v45  ;;  %v2499_v48 = vrot.slane %v2497_v53, 1  ;;  %v2502_v6 = vrot.slane %v2500_v40, 2 }
 0x2fc   : > { %5176 = vmatmul.msk.bf16.vlgmr.msrb.gmra.mxu2 %vm2325_vm10, %v2588_v58 }
 0x2fd   : > { %v2237_v7 = vmax.f32 %v2227_v27, 0.0  ;;  %v7361_v15 = vor.u32 %v2502_v6, %v2499_v48 }
 0x2fe   : > { %v2137_v20 = vpop.f32.mrf.mxu1 }
 0x2ff   : > { %v7366_v59 = vpack.c.bf16 %v2237_v7, %v2236_v31  ;;  %v2153_v21 = vadd.f32 %v2137_v20, %v2064_v57  ;;  %v2504_v52 = vsel %vm781_vm4, %v2495_v60, %v7361_v15 }
 0x300   : > { %5164 = vmatmul.msk.bf16.vlgmr.msrb.gmra.mxu1 %vm2325_vm10, %v2504_v52 }
 0x301   : > { %v2215_v29 = vadd.f32 %v2199_v41, %v2153_v21  ;;  %v2299_v38 = vshll.u32 %v7366_v59, 16  ;;  %v2303_v46 = vshrl.u32 %v7366_v59, 16  ;;  %v2421_v32 = vrot.slane %v7366_v59, 1  ;;  %5142 = vmatmul.msk.bf16.gmra.mxu0 %vm2325_vm10, %v7366_v59  ;;  %v6046_v41 = vld [vmem:[%s7978_s5 + $0x20] sm:$0xff] }
 0x302   : > { %v2731_v9 = vrot.slane %v7366_v59, 3  ;;  %2456 = vmatpush.bf16.msrb.mxu3 %v6046_v41 }
 0x303   : > { %v2228_v18 = vadd.f32 %v7280_v2, %v2215_v29  ;;  %v2301_v49 = vrot.slane %v2299_v38, 1  ;;  %v2800_v31 = vrot.slane %v2299_v38, 4  ;;  %v2799_v12 = vrot.slane %v2303_v46, 3  ;;  %v2204_v29 = vpop.f32.mrf.mxu2 }
 0x304   : > { %v7382_v35 = vsel %vm680_vm3, %v2419_v55, %v2421_v32  ;;  %v7385_v13 = vsel %vm1145_vm5, %v2730_v47, %v2731_v9 }
 0x305   : > { %v2238_v39 = vmax.f32 %v2228_v18, 0.0  ;;  %v2302_v22 = vsel %vm485_vm2, %v2297_v16, %v2301_v49  ;;  %v2801_v5 = vor.u32 %v2800_v31, %v2799_v12  ;;  %v2305_v6 = vor.u32 %v2303_v46, %v2301_v49  ;;  %v6059_v46 = vld [vmem:[%s7978_s5 + $0x88] sm:$0xff] }
 0x306   : > { %v2139_v56 = vpop.f32.mrf.mxu1  ;;  %5129 = vmatmul.msk.bf16.gmra.mxu3 %vm2325_vm10, %v2302_v22  ;;  %2910 = vmatpush.bf16.msra.mxu2 %v6059_v46 }
 0x307   : > { %v7388_v8 = vpack.c.bf16 %v2238_v39, %v2237_v7  ;;  %v2154_v17 = vadd.f32 %v2139_v56, %v2065_v4  ;;  %v7391_v34 = vpack.c.bf16 %v2238_v39, %v2238_v39  ;;  %v7397_v55 = vsel %vm1239_vm8, %v2798_v51, %v2801_v5  ;;  %v2053_v51 = vpop.f32.mrf.mxu0 }
 0x308   : > { %v2066_v57 = vadd.f32 %v2053_v51, %v1990_v28  ;;  %v6057_v28 = vld [vmem:[%s7978_s5 + $0x78] sm:$0xff]  ;;  %v2652_v51 = vrot.slane %v2489_v10, 2 }
 0x309   : > { %v2216_v23 = vadd.f32 %v2201_v54, %v2154_v17  ;;  %v2589_v30 = vrot.slane %v7388_v8, 2  ;;  %v2506_v14 = vshrl.u32 %v7388_v8, 16  ;;  %v2509_v24 = vshll.u32 %v7388_v8, 16  ;;  %2851 = vmatpush.bf16.msra.mxu1 %v6057_v28 }
 0x30a   : > { %v2307_v27 = vshll.u32 %v7391_v34, 16  ;;  %v2423_v58 = vrot.slane %v7391_v34, 1 }
 0x30b   : > { %v2229_v48 = vadd.f32 %v7280_v2, %v2216_v23  ;;  %v2590_v63 = vsel %vm935_vm7, %v2587_v45, %v2589_v30  ;;  %v2508_v61 = vrot.slane %v2506_v14, 1  ;;  %v2511_v50 = vrot.slane %v2509_v24, 2 }
 0x30c   : > { %5177 = vmatmul.msk.bf16.gmra.mxu2 %vm2325_vm10, %v2590_v63  ;;  %v2309_v42 = vrot.slane %v2307_v27, 1  ;;  %v7418_v7 = vsel %vm680_vm3, %v2421_v32, %v2423_v58  ;;  %v2655_v23 = vrot.slane %v2497_v53, 2 }
 0x30d   : > { %v7420_v45 = vmax.f32 %v2229_v48, 0.0  ;;  %v2512_v60 = vor.u32 %v2511_v50, %v2508_v61  ;;  %v2656_v48 = vrot.slane %v2500_v40, 3 }
 0x30e   : > { %v2142_v20 = vpop.f32.mrf.mxu1  ;;  %v2310_v37 = vsel %vm485_vm2, %v2305_v6, %v2309_v42  ;;  %v2653_v6 = vrot.slane %v2492_v25, 3 }
 0x30f   : > { %v7425_v59 = vpack.c.bf16 %v7420_v45, %v7420_v45  ;;  %v2726_v21 = vpack.c.bf16 %v7420_v45, %v2238_v39  ;;  %v2155_v52 = vadd.f32 %v2142_v20, %v2066_v57  ;;  %v2513_v19 = vsel %vm781_vm4, %v7361_v15, %v2512_v60  ;;  %v6056_v57 = vld [vmem:[%s7978_s5 + $0x70] sm:$0xff] }
 0x310   : > { %5165 = vmatmul.msk.bf16.gmra.mxu1 %vm2325_vm10, %v2513_v19  ;;  %v2657_v10 = vor.u32 %v2656_v48, %v2655_v23  ;;  %v2654_v25 = vor.u32 %v2653_v6, %v2652_v51 }
 0x311   : > { %v2217_v38 = vadd.f32 %v2204_v29, %v2155_v52  ;;  %5143 = vmatmul.msk.bf16.gmra.mxu0 %vm2325_vm10, %v7391_v34  ;;  %v2804_v32 = vshrl.u32 %v2726_v21, 16  ;;  %v2807_v62 = vshll.u32 %v2726_v21, 16  ;;  %v2733_v16 = vrot.slane %v2726_v21, 3  ;;  %2852 = vmatpush.bf16.msra.mxu1 %v6056_v57 }
 0x312   : > { %v2515_v18 = vshrl.u32 %v7425_v59, 16  ;;  %v2518_v15 = vshll.u32 %v7425_v59, 16  ;;  %v2591_v39 = vrot.slane %v7425_v59, 2  ;;  %v2311_v59 = vshrl.u32 %v7391_v34, 16 }
 0x313   : > { %v2230_v47 = vadd.f32 %v7280_v2, %v2217_v38  ;;  %v2806_v49 = vrot.slane %v2804_v32, 3  ;;  %v2809_v31 = vrot.slane %v2807_v62, 4  ;;  %v7442_v33 = vsel %vm1145_vm5, %v2731_v9, %v2733_v16  ;;  %v6058_v9 = vld [vmem:[%s7978_s5 + $0x80] sm:$0xff] }
 0x314   : > { %v2517_v56 = vrot.slane %v2515_v18, 1  ;;  %v2520_v17 = vrot.slane %v2518_v15, 2  ;;  %2911 = vmatpush.bf16.msra.mxu2 %v6058_v9  ;;  %v2592_v53 = vsel %vm935_vm7, %v2589_v30, %v2591_v39  ;;  %v2659_v21 = vrot.slane %v2506_v14, 2 }
 0x315   : > { %v7439_v12 = vmax.f32 %v2230_v47, 0.0  ;;  %v2810_v4 = vor.u32 %v2809_v31, %v2806_v49  ;;  %v2660_v52 = vrot.slane %v2509_v24, 3  ;;  %v2663_v14 = vrot.slane %v2515_v18, 2 }
 0x316   : > { %5130 = vmatmul.msk.bf16.gmra.mxu3 %vm2325_vm10, %v2310_v37  ;;  %v2658_v37 = vsel %vm1029_vm6, %v2654_v25, %v2657_v10  ;;  %v2664_v38 = vrot.slane %v2518_v15, 3  ;;  %v1634_v32 = vadd.f32 %v7225_v44, %v7233_v11  ;;  %v2055_v11 = vpop.f32.mrf.mxu0 }
 0x317   : > { %v7447_v22 = vpack.c.bf16 %v7439_v12, %v7439_v12  ;;  %v2880_v54 = vpack.c.bf16 %v7439_v12, %v7420_v45  ;;  %v2811_v27 = vsel %vm1239_vm8, %v2801_v5, %v2810_v4  ;;  %v2521_v5 = vor.u32 %v2520_v17, %v2517_v56 }
 0x318   : > { %v2661_v19 = vor.u32 %v2660_v52, %v2659_v21  ;;  %v2665_v24 = vor.u32 %v2664_v38, %v2663_v14 }
 0x319   : > { %v2813_v63 = vshrl.u32 %v7447_v22, 16  ;;  %v2816_v61 = vshll.u32 %v7447_v22, 16  ;;  %v2735_v50 = vrot.slane %v7447_v22, 3  ;;  %v2522_v26 = vsel %vm781_vm4, %v2512_v60, %v2521_v5  ;;  %v6055_v60 = vld [vmem:[%s7978_s5 + $0x68] sm:$0xff] }
 0x31a   : > { %2767 = vmatpush.bf16.msra.mxu3 %v6055_v60  ;;  %v2662_v29 = vsel %vm1029_vm6, %v2657_v10, %v2661_v19  ;;  %v2666_v46 = vsel %vm1029_vm6, %v2661_v19, %v2665_v24 }
 0x31b   : > { %v2815_v42 = vrot.slane %v2813_v63, 3  ;;  %v2818_v41 = vrot.slane %v2816_v61, 4  ;;  %v7474_v40 = vsel %vm1145_vm5, %v2733_v16, %v2735_v50  ;;  %v1979_v16 = vpop.f32.mrf.mxu3 }
 0x31c   : > { %5178 = vmatmul.msk.bf16.gmra.mxu2 %vm2325_vm10, %v2592_v53 }
 0x31d   : > { %v2819_v20 = vor.u32 %v2818_v41, %v2815_v42 }
 0x31f   : > { %v2820_v30 = vsel %vm1239_vm8, %v2810_v4, %v2819_v20 }
 0x320   : > { %5166 = vmatmul.msk.bf16.gmra.mxu1 %vm2325_vm10, %v2522_v26 }
 0x321   : > { %5188 = vmatmul.msk.bf16.vlgmr.msrb.gmra.mxu0 %vm2325_vm10, %v2658_v37 }
 0x326   : > { %5131 = vmatmul.msk.bf16.gmra.mxu3 %vm2325_vm10, %v2311_v59 }
 0x32c   : > { %5179 = vmatmul.msk.bf16.gmra.mxu2 %vm2325_vm10, %v2591_v39 }
 0x330   : > { %5167 = vmatmul.msk.bf16.gmra.mxu1 %vm2325_vm10, %v2517_v56 }
 0x331   : > { %5189 = vmatmul.msk.bf16.gmra.mxu0 %vm2325_vm10, %v2662_v29 }
 0x336   : > { %5152 = vmatmul.msk.bf16.vlgmr.msrb.gmra.mxu3 %vm2325_vm10, %v7326_v43  ;;  %v1714_v43 = vadd.f32 %v7254_v3, %v1634_v32  ;;  %v2144_v3 = vpop.f32.mrf.mxu1 }
 0x338   : > { %v1828_v62 = vadd.f32 %v7270_v36, %v1714_v43 }
 0x33c   : > { %5224 = vmatmul.msk.bf16.vlgmr.msra.gmra.mxu2 %vm2325_vm10, %v7335_v0  ;;  %v6054_v0 = vld [vmem:[%s7978_s5 + $0x60] sm:$0xff] }
 0x33d   : > { %2768 = vmatpush.bf16.msra.mxu3 %v6054_v0 }
 0x340   : > { %5212 = vmatmul.msk.bf16.vlgmr.msra.gmra.mxu1 %vm2325_vm10, %v7397_v55  ;;  %v1907_v55 = vadd.f32 %v7260_v1, %v1828_v62  ;;  %v2206_v1 = vpop.f32.mrf.mxu2 }
 0x341   : > { %5190 = vmatmul.msk.bf16.gmra.mxu0 %vm2325_vm10, %v2666_v46 }
 0x342   : > { %v1991_v44 = vadd.f32 %v1979_v16, %v1907_v55 }
 0x344   : > { %v2067_v36 = vadd.f32 %v2055_v11, %v1991_v44 }
 0x346   : > { %5153 = vmatmul.msk.bf16.gmra.mxu3 %vm2325_vm10, %v7382_v35  ;;  %v2156_v35 = vadd.f32 %v2144_v3, %v2067_v36 }
 0x34c   : > { %5225 = vmatmul.msk.bf16.gmra.mxu2 %vm2325_vm10, %v7388_v8  ;;  %v2218_v8 = vadd.f32 %v2206_v1, %v2156_v35 }
 0x34e   : > { %v2231_v18 = vadd.f32 %v7280_v2, %v2218_v8 }
 0x350   : > { %5213 = vmatmul.msk.bf16.gmra.mxu1 %vm2325_vm10, %v2811_v27  ;;  %v2241_v15 = vmax.f32 %v2231_v18, 0.0 }
 0x351   : > { %5191 = vmatmul.msk.bf16.gmra.mxu0 %vm2325_vm10, %v2663_v14 }
 0x356   : > { %5154 = vmatmul.msk.bf16.gmra.mxu3 %vm2325_vm10, %v7418_v7  ;;  %v2881_v7 = vpack.c.bf16 %v2241_v15, %v2241_v15 }
 0x35c   : > { %5226 = vmatmul.msk.bf16.gmra.mxu2 %vm2325_vm10, %v2880_v54 }
 0x35e   : > { %v2395_v47 = vpop.f32.mrf.mxu0 }
 0x360   : > { %5214 = vmatmul.msk.bf16.gmra.mxu1 %vm2325_vm10, %v2820_v30 }
 0x366   : > { %v7528_v49 = vpop.f32.mrf.mxu0  ;;  %5155 = vmatmul.msk.bf16.gmra.mxu3 %vm2325_vm10, %v2423_v58 }
 0x36c   : > { %5227 = vmatmul.msk.bf16.gmra.mxu2 %vm2325_vm10, %v2881_v7 }
 0x36e   : > { %v2400_v45 = vpop.f32.mrf.mxu0 }
 0x370   : > { %5215 = vmatmul.msk.bf16.gmra.mxu1 %vm2325_vm10, %v2815_v42 }
 0x376   : > { %v7535_v31 = vpop.f32.mrf.mxu0  ;;  %5200 = vmatmul.msk.bf16.vlgmr.msra.gmra.mxu3 %vm2325_vm10, %v7385_v13 }
 0x379   : > { %v2347_v12 = vpop.f32.mrf.mxu3 }
 0x37a   : > { %v2396_v2 = vadd.f32 %v2395_v47, %v2347_v12 }
 0x37d   : > { %v2556_v39 = vpop.f32.mrf.mxu1 }
 0x37e   : > { %v2405_v4 = vpop.f32.mrf.mxu0 }
 0x37f   : > { %v2626_v54 = vpop.f32.mrf.mxu2 }
 0x381   : > { %v7539_v56 = vpop.f32.mrf.mxu3 }
 0x385   : > { %v7541_v34 = vpop.f32.mrf.mxu1 }
 0x386   : > { %v7543_v58 = vpop.f32.mrf.mxu0  ;;  %5201 = vmatmul.msk.bf16.gmra.mxu3 %vm2325_vm10, %v7442_v33 }
 0x387   : > { %v7547_v17 = vpop.f32.mrf.mxu2 }
 0x389   : > { %v2352_v28 = vpop.f32.mrf.mxu3 }
 0x38a   : > { %v2401_v9 = vadd.f32 %v2400_v45, %v2352_v28 }
 0x38d   : > { %v2561_v23 = vpop.f32.mrf.mxu1 }
 0x38e   : > { %v2410_v13 = vpop.f32.mrf.mxu0 }
 0x38f   : > { %v2631_v27 = vpop.f32.mrf.mxu2 }
 0x391   : > { %v7549_v48 = vpop.f32.mrf.mxu3 }
 0x395   : > { %v7551_v63 = vpop.f32.mrf.mxu1 }
 0x396   : > { %v2412_v61 = vpop.f32.mrf.mxu0  ;;  %5202 = vmatmul.msk.bf16.gmra.mxu3 %vm2325_vm10, %v7474_v40 }
 0x397   : > { %v7555_v51 = vpop.f32.mrf.mxu2 }
 0x399   : > { %v2357_v6 = vpop.f32.mrf.mxu3 }
 0x39a   : > { %v2406_v53 = vadd.f32 %v2405_v4, %v2357_v6 }
 0x39d   : > { %v2566_v33 = vpop.f32.mrf.mxu1 }
 0x39e   : > { %v2700_v5 = vpop.f32.mrf.mxu0 }
 0x39f   : > { %v2636_v42 = vpop.f32.mrf.mxu2 }
 0x3a1   : > { %v7557_v41 = vpop.f32.mrf.mxu3 }
 0x3a5   : > { %v7559_v57 = vpop.f32.mrf.mxu1 }
 0x3a6   : > { %v7561_v10 = vpop.f32.mrf.mxu0  ;;  %5203 = vmatmul.msk.bf16.gmra.mxu3 %vm2325_vm10, %v2735_v50 }
 0x3a7   : > { %v7566_v20 = vpop.f32.mrf.mxu2 }
 0x3a9   : > { %v2362_v40 = vpop.f32.mrf.mxu3 }
 0x3aa   : > { %v2411_v26 = vadd.f32 %v2410_v13, %v2362_v40 }
 0x3ad   : > { %v2571_v25 = vpop.f32.mrf.mxu1 }
 0x3ae   : > { %v2705_v30 = vpop.f32.mrf.mxu0 }
 0x3af   : > { %v2641_v37 = vpop.f32.mrf.mxu2 }
 0x3b1   : > { %v2364_v59 = vpop.f32.mrf.mxu3 }
 0x3b2   : > { %v2398_v59 = vadd.f32 %v7528_v49, %v7539_v56  ;;  %v6069_v49 = vld [vmem:[%s7980_s7 + $0x48] sm:$0xff]  ;;  %v6079_v56 = vld [vmem:[%s7980_s7 + $0x98] sm:$0xff] }
 0x3b3   : > { %3312 = vmatpush.bf16.msrb.mxu2 %v6079_v56  ;;  %v6095_v56 = vld [vmem:[%s7980_s7 + $0x118] sm:$0xff] }
 0x3b5   : > { %v2573_v21 = vpop.f32.mrf.mxu1 }
 0x3b6   : > { %v7568_v52 = vpop.f32.mrf.mxu0 }
 0x3b7   : > { %v2643_v60 = vpop.f32.mrf.mxu2 }
 0x3b9   : > { %v2458_v19 = vpop.f32.mrf.mxu3 }
 0x3ba   : > { %v2477_v29 = vadd.f32 %v2458_v19, %v2396_v2 }
 0x3bc   : > { %v2575_v14 = vadd.f32 %v2556_v39, %v2477_v29 }
 0x3bd   : > { %v2854_v38 = vpop.f32.mrf.mxu1 }
 0x3be   : > { %v2710_v24 = vpop.f32.mrf.mxu0  ;;  %v2645_v50 = vadd.f32 %v2626_v54, %v2575_v14 }
 0x3bf   : > { %v7570_v22 = vpop.f32.mrf.mxu2 }
 0x3c0   : > { %v2719_v46 = vadd.f32 %v2700_v5, %v2645_v50 }
 0x3c1   : > { %v2460_v32 = vpop.f32.mrf.mxu3 }
 0x3c2   : > { %v2478_v21 = vadd.f32 %v2460_v32, %v2398_v59  ;;  %v6068_v32 = vld [vmem:[%s7980_s7 + $0x40] sm:$0xff] }
 0x3c4   : > { %v2576_v19 = vadd.f32 %v7541_v34, %v2478_v21 }
 0x3c5   : > { %v7572_v43 = vpop.f32.mrf.mxu1 }
 0x3c6   : > { %v7574_v62 = vpop.f32.mrf.mxu0  ;;  %v2646_v34 = vadd.f32 %v7547_v17, %v2576_v19  ;;  %v6064_v17 = vld [vmem:[%s7980_s7 + $0x20] sm:$0xff] }
 0x3c7   : > { %v7576_v0 = vpop.f32.mrf.mxu2 }
 0x3c9   : > { %v2463_v55 = vpop.f32.mrf.mxu3 }
 0x3ca   : > { %v2479_v16 = vadd.f32 %v2463_v55, %v2401_v9  ;;  %v6067_v9 = vld [vmem:[%s7980_s7 + $0x38] sm:$0xff] }
 0x3cb   : > { %3081 = vmatpush.bf16.msra.mxu0 %v6067_v9  ;;  %v6075_v55 = vld [vmem:[%s7980_s7 + $0x78] sm:$0xff] }
 0x3cc   : > { %v2577_v44 = vadd.f32 %v2561_v23, %v2479_v16  ;;  %3254 = vmatpush.bf16.msrb.mxu1 %v6075_v55 }
 0x3cd   : > { %v7578_v11 = vpop.f32.mrf.mxu1 }
 0x3ce   : > { %v2715_v3 = vpop.f32.mrf.mxu0  ;;  %v2647_v35 = vadd.f32 %v2631_v27, %v2577_v44 }
 0x3cf   : > { %v7580_v36 = vpop.f32.mrf.mxu2 }
 0x3d0   : > { %v7582_v1 = vadd.f32 %v2705_v30, %v2647_v35  ;;  %v6071_v30 = vld [vmem:[%s7980_s7 + $0x58] sm:$0xff]  ;;  %v6077_v35 = vld [vmem:[%s7980_s7 + $0x88] sm:$0xff] }
 0x3d1   : > { %v2465_v8 = vpop.f32.mrf.mxu3  ;;  %3182 = vmatpush.bf16.msrb.mxu3 %v6071_v30  ;;  %v2408_v30 = vadd.f32 %v7543_v58, %v7557_v41 }
 0x3d5   : > { %v7584_v47 = vpop.f32.mrf.mxu1 }
 0x3d6   : > { %v2717_v18 = vpop.f32.mrf.mxu0 }
 0x3d7   : > { %v7586_v15 = vpop.f32.mrf.mxu2 }
 0x3d9   : > { %v2468_v7 = vpop.f32.mrf.mxu3 }
 0x3da   : > { %v2481_v45 = vadd.f32 %v2468_v7, %v2406_v53 }
 0x3dc   : > { %v2579_v12 = vadd.f32 %v2566_v33, %v2481_v45 }
 0x3dd   : > { %v7588_v2 = vpop.f32.mrf.mxu1 }
 0x3de   : > { %v2649_v4 = vadd.f32 %v2636_v42, %v2579_v12  ;;  %v6076_v12 = vld [vmem:[%s7980_s7 + $0x80] sm:$0xff] }
 0x3df   : > { %v7590_v39 = vpop.f32.mrf.mxu2 }
 0x3e0   : > { %v7592_v54 = vadd.f32 %v2710_v24, %v2649_v4  ;;  %v6065_v24 = vld [vmem:[%s7980_s7 + $0x28] sm:$0xff] }
 0x3e1   : > { %v7594_v28 = vpop.f32.mrf.mxu3 }
 0x3e5   : > { %v7599_v23 = vpop.f32.mrf.mxu1 }
 0x3e7   : > { %v7601_v13 = vpop.f32.mrf.mxu2 }
 0x3e9   : > { %v2473_v27 = vpop.f32.mrf.mxu3 }
 0x3ea   : > { %v2483_v61 = vadd.f32 %v2473_v27, %v2411_v26  ;;  %v6070_v26 = vld [vmem:[%s7980_s7 + $0x50] sm:$0xff] }
 0x3eb   : > { %3183 = vmatpush.bf16.msrb.mxu3 %v6070_v26 }
 0x3ec   : > { %v2581_v6 = vadd.f32 %v2571_v25, %v2483_v61 }
 0x3ed   : > { %v7603_v53 = vpop.f32.mrf.mxu1 }
 0x3ee   : > { %v2651_v5 = vadd.f32 %v2641_v37, %v2581_v6  ;;  %v6066_v37 = vld [vmem:[%s7980_s7 + $0x30] sm:$0xff] }
 0x3ef   : > { %v7605_v33 = vpop.f32.mrf.mxu2  ;;  %3082 = vmatpush.bf16.msra.mxu0 %v6066_v37  ;;  %3184 = vmatpush.bf16.msrb.mxu3 %v6069_v49 }
 0x3f0   : > { %v7607_v42 = vadd.f32 %v2715_v3, %v2651_v5  ;;  %v6074_v3 = vld [vmem:[%s7980_s7 + $0x70] sm:$0xff] }
 0x3f1   : > { %v2475_v40 = vpop.f32.mrf.mxu3  ;;  %3255 = vmatpush.bf16.msrb.mxu1 %v6074_v3  ;;  %v6060_v3 = vld [vmem:[%s7980_s7] sm:$0xff] }
 0x3f3   : > { %3083 = vmatpush.bf16.msra.mxu0 %v6065_v24  ;;  %3185 = vmatpush.bf16.msrb.mxu3 %v6068_v32 }
 0x3f5   : > { %v2871_v60 = vpop.f32.mrf.mxu1 }
 0x3f7   : > { %v2930_v25 = vpop.f32.mrf.mxu2  ;;  %3084 = vmatpush.bf16.msra.mxu0 %v6064_v17 }
 0x3f9   : > { %v2770_v29 = vpop.f32.mrf.mxu3 }
 0x3fa   : > { %v2789_v14 = vadd.f32 %v2770_v29, %v2719_v46  ;;  %v6078_v46 = vld [vmem:[%s7980_s7 + $0x90] sm:$0xff] }
 0x3fb   : > { %3313 = vmatpush.bf16.msrb.mxu2 %v6078_v46 }
 0x3fc   : > { %v2873_v50 = vadd.f32 %v2854_v38, %v2789_v14  ;;  %v2720_v38 = vadd.f32 %v7561_v10, %v2646_v34  ;;  %v6073_v10 = vld [vmem:[%s7980_s7 + $0x68] sm:$0xff] }
 0x3fd   : > { %3256 = vmatpush.bf16.msrb.mxu1 %v6073_v10 }
 0x3fe   : > { %v2932_v16 = vadd.f32 %v7570_v22, %v2873_v50  ;;  %v2403_v22 = vadd.f32 %v7535_v31, %v7549_v48  ;;  %v6072_v48 = vld [vmem:[%s7980_s7 + $0x60] sm:$0xff] }
 0x3ff   : > { %3314 = vmatpush.bf16.msrb.mxu2 %v6077_v35 }
 0x400   : > { %v2480_v7 = vadd.f32 %v2465_v8, %v2403_v22 }
 0x401   : > { %v2772_v44 = vpop.f32.mrf.mxu3  ;;  %3257 = vmatpush.bf16.msrb.mxu1 %v6072_v48 }
 0x402   : > { %v2790_v18 = vadd.f32 %v2772_v44, %v2720_v38  ;;  %v2578_v4 = vadd.f32 %v7551_v63, %v2480_v7 }
 0x403   : > { %3315 = vmatpush.bf16.msrb.mxu2 %v6076_v12 }
 0x404   : > { %v2874_v45 = vadd.f32 %v7572_v43, %v2790_v18  ;;  %v7668_v43 = vld [vmem:[%s7979_s6] ss:$0 sm:$0xff] }
 0x405   : > { %v2942_v61 = vadd.f32 %v7668_v43, %v2932_v16  ;;  %v6084_v16 = vld [vmem:[%s7980_s7 + $0xc0] sm:$0xff] }
 0x406   : > { %v2933_v9 = vadd.f32 %v7576_v0, %v2874_v45  ;;  %v2648_v0 = vadd.f32 %v7555_v51, %v2578_v4  ;;  %v6063_v51 = vld [vmem:[%s7980_s7 + $0x18] sm:$0xff]  ;;  %v6093_v4 = vld [vmem:[%s7980_s7 + $0x108] sm:$0xff] }
 0x407   : > { %v2949_v21 = vmax.f32 %v2942_v61, 0.0  ;;  %3128 = vmatpush.bf16.msrb.mxu0 %v6063_v51  ;;  %3548 = vmatpush.bf16.msra.mxu2 %v6095_v56 }
 0x408   : > { %v2943_v27 = vadd.f32 %v7668_v43, %v2933_v9  ;;  %v2722_v40 = vadd.f32 %v7568_v52, %v2648_v0  ;;  %v6086_v52 = vld [vmem:[%s7980_s7 + $0xd0] sm:$0xff]  ;;  %v6092_v0 = vld [vmem:[%s7980_s7 + $0x100] sm:$0xff] }
 0x409   : > { %v2775_v31 = vpop.f32.mrf.mxu3 }
 0x40a   : > { %v2791_v8 = vadd.f32 %v2775_v31, %v7582_v1  ;;  %v2950_v5 = vmax.f32 %v2943_v27, 0.0  ;;  %v6087_v1 = vld [vmem:[%s7980_s7 + $0xd8] sm:$0xff] }
 0x40b   : > { %3430 = vmatpush.bf16.msra.mxu3 %v6087_v1 }
 0x40c   : > { %v2875_v63 = vadd.f32 %v7578_v11, %v2791_v8  ;;  %v2482_v11 = vadd.f32 %v7594_v28, %v2408_v30  ;;  %v6062_v28 = vld [vmem:[%s7980_s7 + $0x10] sm:$0xff]  ;;  %v6089_v8 = vld [vmem:[%s7980_s7 + $0xe8] sm:$0xff] }
 0x40d   : > { %3129 = vmatpush.bf16.msrb.mxu0 %v6062_v28 }
 0x40e   : > { %v2934_v6 = vadd.f32 %v7580_v36, %v2875_v63  ;;  %v7689_v36 = vpack.c.bf16 %v2950_v5, %v2949_v21  ;;  %v2580_v25 = vadd.f32 %v7559_v57, %v2482_v11  ;;  %v6061_v57 = vld [vmem:[%s7980_s7 + $0x8] sm:$0xff] }
 0x40f   : > { %3431 = vmatpush.bf16.msra.mxu3 %v6086_v52 }
 0x410   : > { %v2944_v41 = vadd.f32 %v7668_v43, %v2934_v6  ;;  %v3034_v19 = vshll.u32 %v7689_v36, 16  ;;  %v2650_v24 = vadd.f32 %v7566_v20, %v2580_v25  ;;  %v3145_v46 = vrot.slane %v7689_v36, 1  ;;  %v6091_v20 = vld [vmem:[%s7980_s7 + $0xf8] sm:$0xff] }
 0x411   : > { %v2777_v59 = vpop.f32.mrf.mxu3  ;;  %3130 = vmatpush.bf16.msrb.mxu0 %v6061_v57  ;;  %v3032_v38 = vshrl.u32 %v7689_v36, 16  ;;  %3495 = vmatpush.bf16.msra.mxu1 %v6091_v20 }
 0x412   : > { %v2792_v60 = vadd.f32 %v2777_v59, %v2722_v40  ;;  %v2951_v29 = vmax.f32 %v2944_v41, 0.0  ;;  %v3036_v32 = vrot.slane %v3034_v19, 1  ;;  %v2724_v35 = vadd.f32 %v7574_v62, %v2650_v24  ;;  %v6090_v62 = vld [vmem:[%s7980_s7 + $0xf0] sm:$0xff]  ;;  %v6088_v41 = vld [vmem:[%s7980_s7 + $0xe0] sm:$0xff] }
 0x414   : > { %v2876_v58 = vadd.f32 %v7584_v47, %v2792_v60  ;;  %v6085_v47 = vld [vmem:[%s7980_s7 + $0xc8] sm:$0xff]  ;;  %v3201_v55 = vpack.c.bf16 %v2951_v29, %v2950_v5  ;;  %v3037_v18 = vor.u32 %v3036_v32, %v3032_v38 }
 0x415   : > { %3432 = vmatpush.bf16.msra.mxu3 %v6085_v47  ;;  %3131 = vmatpush.bf16.msrb.mxu0 %v6060_v3 }
 0x416   : > { %v2935_v26 = vadd.f32 %v7586_v15, %v2876_v58  ;;  %v3204_v45 = vshrl.u32 %v3201_v55, 16  ;;  %v3207_v10 = vshll.u32 %v3201_v55, 16  ;;  %3496 = vmatpush.bf16.msra.mxu1 %v6090_v62  ;;  %v3275_v61 = vrot.slane %v3201_v55, 2  ;;  %v5514_v62 = vld [vmem:[#allocation2 + $0x78] sm:$0xf0] }
 0x418   : > { %v2945_v37 = vadd.f32 %v7668_v43, %v2935_v26  ;;  %v3206_v6 = vrot.slane %v3204_v45, 1  ;;  %v3209_v5 = vrot.slane %v3207_v10, 2  ;;  %v3331_v21 = vrot.slane %v3204_v45, 2  ;;  %v5512_v45 = vld [vmem:[#allocation2 + $0x70] sm:$0xf] }
 0x419   : > { %v2780_v49 = vpop.f32.mrf.mxu3  ;;  %3433 = vmatpush.bf16.msra.mxu3 %v6084_v16  ;;  %v3332_v60 = vrot.slane %v3207_v10, 3  ;;  %v6110_v10 = vld [vmem:[#allocation2 + $0x74] sm:$0xf] }
 0x41a   : > { %v2952_v15 = vmax.f32 %v2945_v37, 0.0  ;;  %v2793_v14 = vadd.f32 %v2780_v49, %v7592_v54  ;;  %v6094_v54 = vld [vmem:[%s7980_s7 + $0x110] sm:$0xff]  ;;  %3497 = vmatpush.bf16.msra.mxu1 %v6089_v8  ;;  %v3210_v19 = vor.u32 %v3209_v5, %v3206_v6  ;;  %v5506_v5 = vld [vmem:[#allocation2 + $0x68] sm:$0xf0] }
 0x41b   : > { %3549 = vmatpush.bf16.msra.mxu2 %v6094_v54  ;;  %v3333_v49 = vor.u32 %v3332_v60, %v3331_v21  ;;  %v6126_v8 = vld [vmem:[#allocation2 + $0xf4] sm:$0xf]  ;;  %v5442_v60 = vld [vmem:[#allocation2 + $0xe8] sm:$0xf0] }
 0x41c   : > { %v7711_v50 = vpack.c.bf16 %v2952_v15, %v2951_v29  ;;  %v2877_v34 = vadd.f32 %v7588_v2, %v2793_v14 }
 0x41e   : > { %v2936_v2 = vadd.f32 %v7590_v39, %v2877_v34  ;;  %v3146_v17 = vrot.slane %v7711_v50, 1  ;;  %v3039_v44 = vshll.u32 %v7711_v50, 16  ;;  %3498 = vmatpush.bf16.msra.mxu1 %v6088_v41  ;;  %v3393_v24 = vrot.slane %v7711_v50, 3  ;;  %v5432_v41 = vld [vmem:[#allocation2 + $0xd0] sm:$0xf] }
 0x41f   : > { %3550 = vmatpush.bf16.msra.mxu2 %v6093_v4  ;;  %v5448_v4 = vld [vmem:[#allocation2 + $0xf0] sm:$0xf] }
 0x420   : > { %v2946_v22 = vadd.f32 %v7668_v43, %v2936_v2  ;;  %v3147_v39 = vsel %vm680_vm3, %v3145_v46, %v3146_v17  ;;  %v7736_v7 = vrot.slane %v3039_v44, 1  ;;  %v3450_v34 = vrot.slane %v3039_v44, 4 }
 0x421   : > { %v2782_v12 = vpop.f32.mrf.mxu3  ;;  %5280 = vmatmul.msk.bf16.vlgmr.msrb.gmra.mxu3 %vm3070_vm11, %v3147_v39 }
 0x422   : > { %v2953_v9 = vmax.f32 %v2946_v22, 0.0  ;;  %v2794_v31 = vadd.f32 %v2782_v12, %v2724_v35  ;;  %v3042_v48 = vsel %vm485_vm2, %v3037_v18, %v7736_v7  ;;  %v6082_v18 = vld [vmem:[%s7980_s7 + $0xb0] sm:$0xff] }
 0x423   : > { %5244 = vmatmul.msk.bf16.vlgmr.msra.gmra.mxu0 %vm3070_vm11, %v3042_v48  ;;  %3551 = vmatpush.bf16.msra.mxu2 %v6092_v0  ;;  %v6109_v0 = vld [vmem:[#allocation2 + $0x64] sm:$0xf0] }
 0x424   : > { %v7751_v27 = vpack.c.bf16 %v2953_v9, %v2952_v15  ;;  %v2878_v63 = vadd.f32 %v7599_v23, %v2794_v31  ;;  %v5517_v31 = vor.u32 %v6110_v10, %v5514_v62  ;;  %v5474_v10 = vld [vmem:[#allocation2 + $0x28] sm:$0xf0]  ;;  %v5408_v62 = vld [vmem:[#allocation2 + $0xa0] sm:$0xf] }
 0x426   : > { %v2937_v40 = vadd.f32 %v7601_v13, %v2878_v63  ;;  %v3276_v30 = vrot.slane %v7751_v27, 2  ;;  %v3212_v59 = vshrl.u32 %v7751_v27, 16  ;;  %v3215_v1 = vshll.u32 %v7751_v27, 16  ;;  %v5504_v63 = vld [vmem:[#allocation2 + $0x60] sm:$0xf] }
 0x427   : > { %v3043_v13 = vshrl.u32 %v7711_v50, 16  ;;  %v5505_v6 = vor.u32 %v6109_v0, %v5504_v63  ;;  %v6098_v63 = vld [vmem:[#allocation2 + $0x14] sm:$0xf] }
 0x428   : > { %v2947_v23 = vadd.f32 %v7668_v43, %v2937_v40  ;;  %v3277_v11 = vsel %vm935_vm7, %v3275_v61, %v3276_v30  ;;  %v3214_v51 = vrot.slane %v3212_v59, 1  ;;  %v3217_v52 = vrot.slane %v3215_v1, 2  ;;  %v6108_v61 = vld [vmem:[#allocation2 + $0x64] sm:$0xf] }
 0x429   : > { %v2785_v58 = vpop.f32.mrf.mxu3  ;;  %5316 = vmatmul.msk.bf16.vlgmr.msrb.gmra.mxu2 %vm3070_vm11, %v3277_v11  ;;  %v3334_v28 = vrot.slane %v3212_v59, 2  ;;  %v3335_v26 = vrot.slane %v3215_v1, 3  ;;  %v3449_v14 = vrot.slane %v3043_v13, 3  ;;  %v3045_v44 = vor.u32 %v3043_v13, %v7736_v7  ;;  %v6080_v7 = vld [vmem:[%s7980_s7 + $0xa0] sm:$0xff]  ;;  %v6125_v59 = vld [vmem:[#allocation2 + $0xe4] sm:$0xf0] }
 0x42a   : > { %v2954_v25 = vmax.f32 %v2947_v23, 0.0  ;;  %v2795_v37 = vadd.f32 %v2785_v58, %v7607_v42  ;;  %v3218_v29 = vor.u32 %v3217_v52, %v3214_v51  ;;  %3927 = vmatpush.bf16.msrb.mxu2 %v5517_v31  ;;  %v5509_v40 = vor.u32 %v6108_v61, %v5506_v5  ;;  %v6124_v1 = vld [vmem:[#allocation2 + $0xe4] sm:$0xf]  ;;  %v5496_v11 = vld [vmem:[#allocation2 + $0x50] sm:$0xf] }
 0x42b   : > { %v3336_v47 = vor.u32 %v3335_v26, %v3334_v28  ;;  %v3451_v35 = vor.u32 %v3450_v34, %v3449_v14  ;;  %v5445_v23 = vor.u32 %v6124_v1, %v5442_v60  ;;  %v6107_v51 = vld [vmem:[#allocation2 + $0x54] sm:$0xf0]  ;;  %v6106_v52 = vld [vmem:[#allocation2 + $0x54] sm:$0xf]  ;;  %v5498_v13 = vld [vmem:[#allocation2 + $0x58] sm:$0xf0] }
 0x42c   : > { %v3391_v56 = vpack.c.bf16 %v2954_v25, %v2953_v9  ;;  %v2879_v57 = vadd.f32 %v7603_v53, %v2795_v37  ;;  %v3219_v15 = vsel %vm781_vm4, %v3210_v19, %v3218_v29  ;;  %v6127_v9 = vld [vmem:[#allocation2 + $0xf4] sm:$0xf0]  ;;  %v5497_v58 = vor.u32 %v6107_v51, %v5496_v11  ;;  %v6122_v37 = vld [vmem:[#allocation2 + $0xd4] sm:$0xf]  ;;  %v5434_v19 = vld [vmem:[#allocation2 + $0xd8] sm:$0xf0] }
 0x42d   : > { %5298 = vmatmul.msk.bf16.vlgmr.msrb.gmra.mxu1 %vm3070_vm11, %v3219_v15  ;;  %v3337_v32 = vsel %vm1029_vm6, %v3333_v49, %v3336_v47  ;;  %v5449_v48 = vor.u32 %v6127_v9, %v5448_v4  ;;  %v6123_v28 = vld [vmem:[#allocation2 + $0xd4] sm:$0xf0]  ;;  %v5501_v26 = vor.u32 %v6106_v52, %v5498_v13  ;;  %v5488_v49 = vld [vmem:[#allocation2 + $0x40] sm:$0xf]  ;;  %v5490_v14 = vld [vmem:[#allocation2 + $0x48] sm:$0xf0] }
 0x42e   : > { %v3453_v55 = vshrl.u32 %v3391_v56, 16  ;;  %v3456_v42 = vshll.u32 %v3391_v56, 16  ;;  %v2938_v46 = vadd.f32 %v7605_v33, %v2879_v57  ;;  %v3394_v16 = vrot.slane %v3391_v56, 3  ;;  %v6083_v33 = vld [vmem:[%s7980_s7 + $0xb8] sm:$0xff]  ;;  %3928 = vmatpush.bf16.msrb.mxu2 %v5509_v40  ;;  %v6104_v56 = vld [vmem:[#allocation2 + $0x44] sm:$0xf] }
 0x42f   : > { %3372 = vmatpush.bf16.msra.mxu0 %v6083_v33  ;;  %v5424_v34 = vld [vmem:[#allocation2 + $0xc0] sm:$0xf]  ;;  %v6118_v33 = vld [vmem:[#allocation2 + $0xb4] sm:$0xf]  ;;  %v6117_v4 = vld [vmem:[#allocation2 + $0xa4] sm:$0xf0] }
 0x430   : > { %v3455_v20 = vrot.slane %v3453_v55, 3  ;;  %v3458_v54 = vrot.slane %v3456_v42, 4  ;;  %v2948_v2 = vadd.f32 %v7668_v43, %v2938_v46  ;;  %v3395_v53 = vsel %vm1145_vm5, %v3393_v24, %v3394_v16  ;;  %v6120_v55 = vld [vmem:[#allocation2 + $0xc4] sm:$0xf]  ;;  %v5426_v46 = vld [vmem:[#allocation2 + $0xc8] sm:$0xf0] }
 0x431   : > { %v2787_v38 = vpop.f32.mrf.mxu3  ;;  %5281 = vmatmul.msk.bf16.gmra.mxu3 %vm3070_vm11, %v3146_v17  ;;  %v6081_v17 = vld [vmem:[%s7980_s7 + $0xa8] sm:$0xff]  ;;  %v5493_v24 = vor.u32 %v6104_v56, %v5490_v14  ;;  %v6116_v9 = vld [vmem:[#allocation2 + $0xa4] sm:$0xf]  ;;  %v5409_v31 = vor.u32 %v6117_v4, %v5408_v62  ;;  %v5466_v61 = vld [vmem:[#allocation2 + $0x18] sm:$0xf0] }
 0x432   : > { %v2955_v3 = vmax.f32 %v2948_v2, 0.0  ;;  %v3459_v22 = vor.u32 %v3458_v54, %v3455_v20  ;;  %3929 = vmatpush.bf16.msrb.mxu2 %v5501_v26  ;;  %v5480_v20 = vld [vmem:[#allocation2 + $0x30] sm:$0xf]  ;;  %v6103_v54 = vld [vmem:[#allocation2 + $0x34] sm:$0xf0]  ;;  %v5469_v40 = vor.u32 %v6098_v63, %v5466_v61 }
 0x433   : > { %5245 = vmatmul.msk.bf16.gmra.mxu0 %vm3070_vm11, %v3045_v44  ;;  %v6102_v2 = vld [vmem:[#allocation2 + $0x34] sm:$0xf]  ;;  %v5482_v38 = vld [vmem:[#allocation2 + $0x38] sm:$0xf0]  ;;  %v5416_v44 = vld [vmem:[#allocation2 + $0xb0] sm:$0xf] }
 0x434   : > { %v3460_v43 = vsel %vm1239_vm8, %v3451_v35, %v3459_v22  ;;  %v3514_v39 = vpack.c.bf16 %v2955_v3, %v2954_v25  ;;  %3373 = vmatpush.bf16.msra.mxu0 %v6082_v18  ;;  %v5433_v25 = vor.u32 %v6123_v28, %v5432_v41  ;;  %v6119_v3 = vld [vmem:[#allocation2 + $0xb4] sm:$0xf0]  ;;  %v5485_v35 = vor.u32 %v6102_v2, %v5482_v38  ;;  %v5472_v18 = vld [vmem:[#allocation2 + $0x20] sm:$0xf]  ;;  %v5402_v1 = vld [vmem:[#allocation2 + $0x98] sm:$0xf0] }
 0x435   : > { %v6115_v5 = vld [vmem:[#allocation2 + $0x94] sm:$0xf0]  ;;  %v5456_v60 = vld [vmem:[#allocation2] sm:$0xf]  ;;  %v6096_v11 = vld [vmem:[#allocation2 + $0x4] sm:$0xf] }
 0x436   : > { %3930 = vmatpush.bf16.msrb.mxu2 %v5493_v24  ;;  %v5640_v13 = vld [vmem:[#allocation2 + $0x1f0] sm:$0xf]  ;;  %v6159_v41 = vld [vmem:[#allocation2 + $0x1f4] sm:$0xf0]  ;;  %v5394_v56 = vld [vmem:[#allocation2 + $0x88] sm:$0xf0] }
 0x437   : > { %v5641_v26 = vor.u32 %v6159_v41, %v5640_v13  ;;  %v5576_v24 = vld [vmem:[#allocation2 + $0x170] sm:$0xf]  ;;  %v5634_v38 = vld [vmem:[#allocation2 + $0x1e8] sm:$0xf0]  ;;  %v5626_v4 = vld [vmem:[#allocation2 + $0x1d8] sm:$0xf0] }
 0x438   : > { %3374 = vmatpush.bf16.msra.mxu0 %v6081_v17  ;;  %v6101_v17 = vld [vmem:[#allocation2 + $0x24] sm:$0xf0]  ;;  %v5608_v41 = vld [vmem:[#allocation2 + $0x1b0] sm:$0xf] }
 0x439   : > { %5317 = vmatmul.msk.bf16.gmra.mxu2 %vm3070_vm11, %v3276_v30  ;;  %v5440_v30 = vld [vmem:[#allocation2 + $0xe0] sm:$0xf]  ;;  %v6153_v61 = vld [vmem:[#allocation2 + $0x1c4] sm:$0xf0] }
 0x43a   : > { %v5441_v21 = vor.u32 %v6125_v59, %v5440_v30  ;;  %3931 = vmatpush.bf16.msrb.mxu2 %v5485_v35  ;;  %v6114_v59 = vld [vmem:[#allocation2 + $0x94] sm:$0xf]  ;;  %v5568_v35 = vld [vmem:[#allocation2 + $0x160] sm:$0xf] }
 0x43c   : > { %3375 = vmatpush.bf16.msra.mxu0 %v6080_v7  ;;  %v6100_v7 = vld [vmem:[#allocation2 + $0x24] sm:$0xf] }
 0x43d   : > { %5299 = vmatmul.msk.bf16.gmra.mxu1 %vm3070_vm11, %v3218_v29  ;;  %v5437_v29 = vor.u32 %v6122_v37, %v5434_v19  ;;  %v5642_v37 = vld [vmem:[#allocation2 + $0x1f8] sm:$0xf0]  ;;  %v5392_v19 = vld [vmem:[#allocation2 + $0x80] sm:$0xf] }
 0x441   : > { %5352 = vmatmul.msk.bf16.vlgmr.msra.gmra.mxu3 %vm3070_vm11, %v3395_v53  ;;  %v5481_v53 = vor.u32 %v6103_v54, %v5480_v20  ;;  %v6157_v20 = vld [vmem:[#allocation2 + $0x1e4] sm:$0xf0] }
 0x443   : > { %5262 = vmatmul.msk.bf16.vlgmr.msrb.gmra.mxu0 %vm3070_vm11, %v7689_v36  ;;  %v6111_v36 = vld [vmem:[#allocation2 + $0x74] sm:$0xf0] }
 0x444   : > { %v5513_v12 = vor.u32 %v6111_v36, %v5512_v45  ;;  %3808 = vmatpush.bf16.msrb.mxu0 %v5449_v48  ;;  %v5473_v36 = vor.u32 %v6101_v17, %v5472_v18  ;;  %v5410_v48 = vld [vmem:[#allocation2 + $0xa8] sm:$0xf0] }
 0x446   : > { %3914 = vmatpush.bf16.msrb.mxu1 %v5513_v12  ;;  %v5477_v12 = vor.u32 %v6100_v7, %v5474_v10  ;;  %v6155_v10 = vld [vmem:[#allocation2 + $0x1d4] sm:$0xf0] }
 0x448   : > { %3809 = vmatpush.bf16.msrb.mxu0 %v5441_v21  ;;  %3932 = vmatpush.bf16.msrb.mxu2 %v5477_v12  ;;  %v5405_v21 = vor.u32 %v6114_v59, %v5402_v1  ;;  %v6154_v12 = vld [vmem:[#allocation2 + $0x1d4] sm:$0xf]  ;;  %v5552_v1 = vld [vmem:[#allocation2 + $0x140] sm:$0xf] }
 0x449   : > { %5388 = vmatmul.msk.bf16.vlgmr.msra.gmra.mxu2 %vm3070_vm11, %v7751_v27  ;;  %v5450_v27 = vld [vmem:[#allocation2 + $0xf8] sm:$0xf0] }
 0x44a   : > { %3915 = vmatpush.bf16.msrb.mxu1 %v5505_v6  ;;  %v5400_v6 = vld [vmem:[#allocation2 + $0x90] sm:$0xf] }
 0x44b   : > { %v5401_v30 = vor.u32 %v6115_v5, %v5400_v6  ;;  %v6152_v6 = vld [vmem:[#allocation2 + $0x1c4] sm:$0xf] }
 0x44c   : > { %3810 = vmatpush.bf16.msrb.mxu0 %v5433_v25  ;;  %3933 = vmatpush.bf16.msrb.mxu2 %v5469_v40  ;;  %v6158_v25 = vld [vmem:[#allocation2 + $0x1f4] sm:$0xf]  ;;  %v5618_v40 = vld [vmem:[#allocation2 + $0x1c8] sm:$0xf0] }
 0x44d   : > { %5370 = vmatmul.msk.bf16.vlgmr.msra.gmra.mxu1 %vm3070_vm11, %v3460_v43  ;;  %v5418_v43 = vld [vmem:[#allocation2 + $0xb8] sm:$0xf0]  ;;  %v5621_v59 = vor.u32 %v6152_v6, %v5618_v40 }
 0x44e   : > { %3916 = vmatpush.bf16.msrb.mxu1 %v5497_v58  ;;  %v5458_v58 = vld [vmem:[#allocation2 + $0x8] sm:$0xf0] }
 0x44f   : > { %v5461_v28 = vor.u32 %v6096_v11, %v5458_v58  ;;  %v5554_v11 = vld [vmem:[#allocation2 + $0x148] sm:$0xf0] }
 0x451   : > { %5353 = vmatmul.msk.bf16.gmra.mxu3 %vm3070_vm11, %v3394_v16  ;;  %v5429_v16 = vor.u32 %v6120_v55, %v5426_v46  ;;  %3934 = vmatpush.bf16.msrb.mxu2 %v5461_v28  ;;  %v5578_v46 = vld [vmem:[#allocation2 + $0x178] sm:$0xf0]  ;;  %v6151_v28 = vld [vmem:[#allocation2 + $0x1b4] sm:$0xf0] }
 0x453   : > { %5263 = vmatmul.msk.bf16.gmra.mxu0 %vm3070_vm11, %v7711_v50  ;;  %v5453_v50 = vor.u32 %v6126_v8, %v5450_v27  ;;  %v5413_v8 = vor.u32 %v6116_v9, %v5410_v48  ;;  %v5464_v27 = vld [vmem:[#allocation2 + $0x10] sm:$0xf]  ;;  %v5629_v9 = vor.u32 %v6154_v12, %v5626_v4  ;;  %v6139_v48 = vld [vmem:[#allocation2 + $0x154] sm:$0xf0] }
 0x454   : > { %v5528_v4 = vld [vmem:[#allocation2 + $0x110] sm:$0xf] }
 0x455   : > { %3821 = vmatpush.bf16.msrb.mxu3 %v5453_v50  ;;  %v6099_v50 = vld [vmem:[#allocation2 + $0x14] sm:$0xf0] }
 0x456   : > { %v5465_v0 = vor.u32 %v6099_v50, %v5464_v27  ;;  %v5562_v50 = vld [vmem:[#allocation2 + $0x158] sm:$0xf0] }
 0x459   : > { %5389 = vmatmul.msk.bf16.gmra.mxu2 %vm3070_vm11, %v3514_v39  ;;  %3822 = vmatpush.bf16.msrb.mxu3 %v5445_v23  ;;  %v5421_v39 = vor.u32 %v6118_v33, %v5418_v43  ;;  %v6097_v23 = vld [vmem:[#allocation2 + $0x4] sm:$0xf0]  ;;  %v6140_v33 = vld [vmem:[#allocation2 + $0x164] sm:$0xf] }
 0x45a   : > { %v5457_v52 = vor.u32 %v6097_v23, %v5456_v60  ;;  %v6136_v60 = vld [vmem:[#allocation2 + $0x144] sm:$0xf] }
 0x45b   : > { %v5557_v13 = vor.u32 %v6136_v60, %v5554_v11  ;;  %v5522_v60 = vld [vmem:[#allocation2 + $0x108] sm:$0xf0] }
 0x45d   : > { %5371 = vmatmul.msk.bf16.gmra.mxu1 %vm3070_vm11, %v3459_v22  ;;  %3823 = vmatpush.bf16.msrb.mxu3 %v5437_v29  ;;  %v5417_v22 = vor.u32 %v6119_v3, %v5416_v44  ;;  %v5645_v29 = vor.u32 %v6158_v25, %v5642_v37  ;;  %v5609_v25 = vor.u32 %v6151_v28, %v5608_v41  ;;  %v5610_v37 = vld [vmem:[#allocation2 + $0x1b8] sm:$0xf0] }
 0x45f   : > { %4150 = vmatpush.bf16.msra.mxu2 %v5645_v29 }
 0x461   : > { %3824 = vmatpush.bf16.msrb.mxu3 %v5429_v16  ;;  %v5632_v16 = vld [vmem:[#allocation2 + $0x1e0] sm:$0xf] }
 0x462   : > { %v5633_v2 = vor.u32 %v6157_v20, %v5632_v16  ;;  %v5602_v16 = vld [vmem:[#allocation2 + $0x1a8] sm:$0xf0] }
 0x463   : > { %5334 = vmatmul.msk.bf16.vlgmr.msra.gmra.mxu0 %vm3070_vm11, %v3337_v32  ;;  %v6121_v32 = vld [vmem:[#allocation2 + $0xc4] sm:$0xf0] }
 0x464   : > { %v5425_v42 = vor.u32 %v6121_v32, %v5424_v34  ;;  %v6143_v34 = vld [vmem:[#allocation2 + $0x174] sm:$0xf0]  ;;  %v6142_v32 = vld [vmem:[#allocation2 + $0x174] sm:$0xf] }
 0x465   : > { %3825 = vmatpush.bf16.msrb.mxu3 %v5421_v39  ;;  %v5581_v54 = vor.u32 %v6142_v32, %v5578_v46  ;;  %v5570_v39 = vld [vmem:[#allocation2 + $0x168] sm:$0xf0]  ;;  %v6149_v32 = vld [vmem:[#allocation2 + $0x1a4] sm:$0xf0] }
 0x466   : > { %3811 = vmatpush.bf16.msrb.mxu0 %v5425_v42  ;;  %v5577_v42 = vor.u32 %v6143_v34, %v5576_v24  ;;  %v5573_v7 = vor.u32 %v6140_v33, %v5570_v39  ;;  %v5600_v34 = vld [vmem:[#allocation2 + $0x1a0] sm:$0xf]  ;;  %v6147_v39 = vld [vmem:[#allocation2 + $0x194] sm:$0xf0] }
 0x467   : > { %v5601_v46 = vor.u32 %v6149_v32, %v5600_v34 }
 0x469   : > { %3826 = vmatpush.bf16.msrb.mxu3 %v5413_v8  ;;  %v6138_v8 = vld [vmem:[#allocation2 + $0x154] sm:$0xf] }
 0x46a   : > { %3812 = vmatpush.bf16.msrb.mxu0 %v5417_v22  ;;  %v6141_v22 = vld [vmem:[#allocation2 + $0x164] sm:$0xf0]  ;;  %v5565_v63 = vor.u32 %v6138_v8, %v5562_v50  ;;  %v5530_v8 = vld [vmem:[#allocation2 + $0x118] sm:$0xf0] }
 0x46b   : > { %v5569_v43 = vor.u32 %v6141_v22, %v5568_v35 }
 0x46d   : > { %3827 = vmatpush.bf16.msrb.mxu3 %v5405_v21  ;;  %v6137_v21 = vld [vmem:[#allocation2 + $0x144] sm:$0xf0] }
 0x46e   : > { %3813 = vmatpush.bf16.msrb.mxu0 %v5409_v31  ;;  %v5560_v31 = vld [vmem:[#allocation2 + $0x150] sm:$0xf]  ;;  %v5553_v23 = vor.u32 %v6137_v21, %v5552_v1  ;;  %v6129_v1 = vld [vmem:[#allocation2 + $0x104] sm:$0xf0]  ;;  %v6128_v21 = vld [vmem:[#allocation2 + $0x104] sm:$0xf] }
 0x46f   : > { %v5561_v27 = vor.u32 %v6139_v48, %v5560_v31  ;;  %v6130_v31 = vld [vmem:[#allocation2 + $0x114] sm:$0xf] }
 0x470   : > { %v5533_v50 = vor.u32 %v6130_v31, %v5530_v8  ;;  %v5760_v8 = vld [vmem:[#allocation2 + $0x2e0] sm:$0xf] }
 0x472   : > { %3814 = vmatpush.bf16.msrb.mxu0 %v5401_v30 }
 0x473   : > { %5335 = vmatmul.msk.bf16.gmra.mxu0 %vm3070_vm11, %v3336_v47  ;;  %v6105_v47 = vld [vmem:[#allocation2 + $0x44] sm:$0xf0] }
 0x474   : > { %v5489_v15 = vor.u32 %v6105_v47, %v5488_v49  ;;  %v6113_v49 = vld [vmem:[#allocation2 + $0x84] sm:$0xf0]  ;;  %v6112_v47 = vld [vmem:[#allocation2 + $0x84] sm:$0xf] }
 0x475   : > { %v5397_v14 = vor.u32 %v6112_v47, %v5394_v56  ;;  %v6135_v47 = vld [vmem:[#allocation2 + $0x134] sm:$0xf0]  ;;  %v6134_v56 = vld [vmem:[#allocation2 + $0x134] sm:$0xf] }
 0x476   : > { %3917 = vmatpush.bf16.msrb.mxu1 %v5489_v15  ;;  %v5393_v15 = vor.u32 %v6113_v49, %v5392_v19  ;;  %v5544_v49 = vld [vmem:[#allocation2 + $0x130] sm:$0xf] }
 0x477   : > { %3828 = vmatpush.bf16.msrb.mxu3 %v5397_v14  ;;  %v5546_v14 = vld [vmem:[#allocation2 + $0x138] sm:$0xf0] }
 0x478   : > { %3815 = vmatpush.bf16.msrb.mxu0 %v5393_v15  ;;  %v5545_v15 = vor.u32 %v6135_v47, %v5544_v49  ;;  %v5549_v24 = vor.u32 %v6134_v56, %v5546_v14 }
 0x47a   : > { %3918 = vmatpush.bf16.msrb.mxu1 %v5481_v53  ;;  %v6156_v53 = vld [vmem:[#allocation2 + $0x1e4] sm:$0xf] }
 0x47b   : > { %v5637_v3 = vor.u32 %v6156_v53, %v5634_v38  ;;  %4036 = vmatpush.bf16.msra.mxu3 %v5581_v54  ;;  %v5536_v54 = vld [vmem:[#allocation2 + $0x120] sm:$0xf]  ;;  %v6132_v53 = vld [vmem:[#allocation2 + $0x124] sm:$0xf] }
 0x47c   : > { %4023 = vmatpush.bf16.msra.mxu0 %v5577_v42  ;;  %v6148_v42 = vld [vmem:[#allocation2 + $0x1a4] sm:$0xf] }
 0x47d   : > { %4151 = vmatpush.bf16.msra.mxu2 %v5637_v3  ;;  %v5605_v20 = vor.u32 %v6148_v42, %v5602_v16  ;;  %v5538_v3 = vld [vmem:[#allocation2 + $0x128] sm:$0xf0] }
 0x47e   : > { %3919 = vmatpush.bf16.msrb.mxu1 %v5473_v36  ;;  %v5624_v36 = vld [vmem:[#allocation2 + $0x1d0] sm:$0xf]  ;;  %v5541_v33 = vor.u32 %v6132_v53, %v5538_v3 }
 0x47f   : > { %v5625_v62 = vor.u32 %v6155_v10, %v5624_v36  ;;  %4037 = vmatpush.bf16.msra.mxu3 %v5573_v7  ;;  %v6146_v7 = vld [vmem:[#allocation2 + $0x194] sm:$0xf]  ;;  %v5594_v10 = vld [vmem:[#allocation2 + $0x198] sm:$0xf0] }
 0x480   : > { %4024 = vmatpush.bf16.msra.mxu0 %v5569_v43  ;;  %v5592_v43 = vld [vmem:[#allocation2 + $0x190] sm:$0xf] }
 0x481   : > { %4152 = vmatpush.bf16.msra.mxu2 %v5629_v9  ;;  %v5593_v36 = vor.u32 %v6147_v39, %v5592_v43  ;;  %v6131_v9 = vld [vmem:[#allocation2 + $0x114] sm:$0xf0]  ;;  %v6190_v39 = vld [vmem:[#allocation2 + $0x2f4] sm:$0xf] }
 0x482   : > { %3920 = vmatpush.bf16.msrb.mxu1 %v5465_v0  ;;  %v5616_v0 = vld [vmem:[#allocation2 + $0x1c0] sm:$0xf]  ;;  %v5529_v48 = vor.u32 %v6131_v9, %v5528_v4  ;;  %v6191_v43 = vld [vmem:[#allocation2 + $0x2f4] sm:$0xf0]  ;;  %v6174_v4 = vld [vmem:[#allocation2 + $0x274] sm:$0xf] }
 0x483   : > { %v5617_v5 = vor.u32 %v6153_v61, %v5616_v0  ;;  %4038 = vmatpush.bf16.msra.mxu3 %v5565_v63  ;;  %v5584_v63 = vld [vmem:[#allocation2 + $0x180] sm:$0xf]  ;;  %v6145_v0 = vld [vmem:[#allocation2 + $0x184] sm:$0xf0]  ;;  %v6144_v61 = vld [vmem:[#allocation2 + $0x184] sm:$0xf] }
 0x484   : > { %4025 = vmatpush.bf16.msra.mxu0 %v5561_v27  ;;  %v5585_v6 = vor.u32 %v6145_v0, %v5584_v63  ;;  %v5706_v9 = vld [vmem:[#allocation2 + $0x278] sm:$0xf0]  ;;  %v6188_v63 = vld [vmem:[#allocation2 + $0x2e4] sm:$0xf]  ;;  %v5762_v0 = vld [vmem:[#allocation2 + $0x2e8] sm:$0xf0] }
 0x485   : > { %4153 = vmatpush.bf16.msra.mxu2 %v5621_v59  ;;  %v5520_v59 = vld [vmem:[#allocation2 + $0x100] sm:$0xf] }
 0x486   : > { %3921 = vmatpush.bf16.msrb.mxu1 %v5457_v52  ;;  %v5521_v11 = vor.u32 %v6129_v1, %v5520_v59 }
 0x487   : > { %4039 = vmatpush.bf16.msra.mxu3 %v5557_v13  ;;  %v5525_v13 = vor.u32 %v6128_v21, %v5522_v60  ;;  %v6172_v21 = vld [vmem:[#allocation2 + $0x264] sm:$0xf]  ;;  %v5698_v60 = vld [vmem:[#allocation2 + $0x268] sm:$0xf0] }
 0x488   : > { %4026 = vmatpush.bf16.msra.mxu0 %v5553_v23 }
 0x48a   : > { %4137 = vmatpush.bf16.msra.mxu1 %v5641_v26  ;;  %v6150_v26 = vld [vmem:[#allocation2 + $0x1b4] sm:$0xf] }
 0x48b   : > { %v5613_v29 = vor.u32 %v6150_v26, %v5610_v37  ;;  %4040 = vmatpush.bf16.msra.mxu3 %v5549_v24 }
 0x48c   : > { %4027 = vmatpush.bf16.msra.mxu0 %v5545_v15 }
 0x48d   : > { %4154 = vmatpush.bf16.msra.mxu2 %v5613_v29 }
 0x48e   : > { %4138 = vmatpush.bf16.msra.mxu1 %v5633_v2  ;;  %v6133_v2 = vld [vmem:[#allocation2 + $0x124] sm:$0xf0] }
 0x48f   : > { %v5537_v38 = vor.u32 %v6133_v2, %v5536_v54  ;;  %4041 = vmatpush.bf16.msra.mxu3 %v5541_v33 }
 0x491   : > { %4155 = vmatpush.bf16.msra.mxu2 %v5605_v20  ;;  %4028 = vmatpush.bf16.msra.mxu0 %v5537_v38 }
 0x492   : > { %4139 = vmatpush.bf16.msra.mxu1 %v5625_v62  ;;  %v5597_v62 = vor.u32 %v6146_v7, %v5594_v10  ;;  %v5770_v7 = vld [vmem:[#allocation2 + $0x2f8] sm:$0xf0]  ;;  %v6175_v10 = vld [vmem:[#allocation2 + $0x274] sm:$0xf0] }
 0x493   : > { %4042 = vmatpush.bf16.msra.mxu3 %v5533_v50  ;;  %v6189_v50 = vld [vmem:[#allocation2 + $0x2e4] sm:$0xf0] }
 0x495   : > { %4156 = vmatpush.bf16.msra.mxu2 %v5597_v62  ;;  %4029 = vmatpush.bf16.msra.mxu0 %v5529_v48  ;;  %v5773_v48 = vor.u32 %v6190_v39, %v5770_v7 }
 0x496   : > { %4140 = vmatpush.bf16.msra.mxu1 %v5617_v5  ;;  %v5586_v5 = vld [vmem:[#allocation2 + $0x188] sm:$0xf0] }
 0x497   : > { %v5589_v40 = vor.u32 %v6144_v61, %v5586_v5  ;;  %4043 = vmatpush.bf16.msra.mxu3 %v5525_v13  ;;  %v5696_v5 = vld [vmem:[#allocation2 + $0x260] sm:$0xf]  ;;  %v5761_v13 = vor.u32 %v6189_v50, %v5760_v8  ;;  %v5674_v8 = vld [vmem:[#allocation2 + $0x238] sm:$0xf0] }
 0x499   : > { %4157 = vmatpush.bf16.msra.mxu2 %v5589_v40  ;;  %4030 = vmatpush.bf16.msra.mxu0 %v5521_v11  ;;  %v6173_v40 = vld [vmem:[#allocation2 + $0x264] sm:$0xf0] }
 0x49a   : > { %4141 = vmatpush.bf16.msra.mxu1 %v5609_v25 }
 0x49e   : > { %4142 = vmatpush.bf16.msra.mxu1 %v5601_v46 }
 0x4a0   : > { %v7810_v57 = vpop.f32.mrf.mxu0 }
 0x4a2   : > { %4143 = vmatpush.bf16.msra.mxu1 %v5593_v36  ;;  %v5704_v36 = vld [vmem:[#allocation2 + $0x270] sm:$0xf] }
 0x4a3   : > { %v5705_v61 = vor.u32 %v6175_v10, %v5704_v36  ;;  %v5738_v36 = vld [vmem:[#allocation2 + $0x2b8] sm:$0xf0] }
 0x4a4   : > { %v7816_v55 = vpop.f32.mrf.mxu3 }
 0x4a6   : > { %4144 = vmatpush.bf16.msra.mxu1 %v5585_v6  ;;  %v5709_v6 = vor.u32 %v6174_v4, %v5706_v9  ;;  %v5672_v4 = vld [vmem:[#allocation2 + $0x230] sm:$0xf] }
 0x4a8   : > { %v7812_v45 = vpop.f32.mrf.mxu0 }
 0x4aa   : > { %v7818_v44 = vpop.f32.mrf.mxu1 }
 0x4ac   : > { %v7820_v18 = vpop.f32.mrf.mxu2  ;;  %v7824_v30 = vpop.f32.mrf.mxu3 }
 0x4b0   : > { %v7814_v51 = vpop.f32.mrf.mxu0 }
 0x4b2   : > { %v7826_v52 = vpop.f32.mrf.mxu1 }
 0x4b4   : > { %v7830_v19 = vpop.f32.mrf.mxu2  ;;  %v3192_v35 = vpop.f32.mrf.mxu3 }
 0x4b8   : > { %v7822_v17 = vpop.f32.mrf.mxu0 }
 0x4ba   : > { %v3264_v12 = vpop.f32.mrf.mxu1 }
 0x4bc   : > { %v3322_v27 = vpop.f32.mrf.mxu2  ;;  %v3194_v28 = vpop.f32.mrf.mxu3 }
 0x4c0   : > { %v7828_v58 = vpop.f32.mrf.mxu0 }
 0x4c1   : > { %v3134_v26 = vadd.f32 %v7828_v58, %v7810_v57 }
 0x4c2   : > { %v3266_v37 = vpop.f32.mrf.mxu1 }
 0x4c3   : > { %v3197_v47 = vadd.f32 %v7816_v55, %v3134_v26 }
 0x4c4   : > { %v3324_v49 = vpop.f32.mrf.mxu2  ;;  %v3435_v32 = vpop.f32.mrf.mxu3 }
 0x4c5   : > { %v3269_v34 = vadd.f32 %v7818_v44, %v3197_v47  ;;  %v5697_v47 = vor.u32 %v6173_v40, %v5696_v5  ;;  %v6180_v5 = vld [vmem:[#allocation2 + $0x2a4] sm:$0xf]  ;;  %v5730_v40 = vld [vmem:[#allocation2 + $0x2a8] sm:$0xf0] }
 0x4c7   : > { %v3327_v46 = vadd.f32 %v7820_v18, %v3269_v34  ;;  %v6170_v34 = vld [vmem:[#allocation2 + $0x254] sm:$0xf] }
 0x4c8   : > { %v3135_v22 = vpop.f32.mrf.mxu0 }
 0x4c9   : > { %v3136_v24 = vadd.f32 %v3135_v22, %v7812_v45  ;;  %v7849_v45 = vld [vmem:[%s7981_s8] ss:$0 sm:$0xff] }
 0x4ca   : > { %v3500_v57 = vpop.f32.mrf.mxu1 }
 0x4cb   : > { %v3198_v58 = vadd.f32 %v7824_v30, %v3136_v24  ;;  %v6171_v24 = vld [vmem:[#allocation2 + $0x254] sm:$0xf0] }
 0x4cc   : > { %v3553_v55 = vpop.f32.mrf.mxu2  ;;  %v3437_v44 = vpop.f32.mrf.mxu3 }
 0x4d0   : > { %v3138_v23 = vpop.f32.mrf.mxu0 }
 0x4d1   : > { %v3139_v41 = vadd.f32 %v3138_v23, %v7814_v51 }
 0x4d2   : > { %v3502_v3 = vpop.f32.mrf.mxu1 }
 0x4d3   : > { %v3199_v25 = vadd.f32 %v3192_v35, %v3139_v41  ;;  %v5768_v35 = vld [vmem:[#allocation2 + $0x2f0] sm:$0xf]  ;;  %v5765_v41 = vor.u32 %v6188_v63, %v5762_v0  ;;  %v5728_v0 = vld [vmem:[#allocation2 + $0x2a0] sm:$0xf] }
 0x4d4   : > { %v5769_v31 = vor.u32 %v6191_v43, %v5768_v35  ;;  %v7858_v23 = vpop.f32.mrf.mxu3  ;;  %v6183_v43 = vld [vmem:[#allocation2 + $0x2b4] sm:$0xf0] }
 0x4d5   : > { %v3271_v29 = vadd.f32 %v3264_v12, %v3199_v25  ;;  %v6187_v25 = vld [vmem:[#allocation2 + $0x2d4] sm:$0xf0] }
 0x4d7   : > { %v7836_v56 = vadd.f32 %v3322_v27, %v3271_v29  ;;  %v5754_v29 = vld [vmem:[#allocation2 + $0x2d8] sm:$0xf0] }
 0x4d8   : > { %v3140_v15 = vpop.f32.mrf.mxu0 }
 0x4d9   : > { %v3141_v14 = vadd.f32 %v3140_v15, %v7822_v17  ;;  %v3270_v17 = vadd.f32 %v7826_v52, %v3198_v58  ;;  %v3555_v52 = vpop.f32.mrf.mxu2  ;;  %v5701_v15 = vor.u32 %v6172_v21, %v5698_v60  ;;  %v5664_v60 = vld [vmem:[#allocation2 + $0x220] sm:$0xf] }
 0x4db   : > { %v3200_v51 = vadd.f32 %v3194_v28, %v3141_v14  ;;  %v3328_v30 = vadd.f32 %v7830_v19, %v3270_v17  ;;  %v5752_v28 = vld [vmem:[#allocation2 + $0x2d0] sm:$0xf] }
 0x4dc   : > { %v5688_v14 = vld [vmem:[#allocation2 + $0x250] sm:$0xf]  ;;  %v3442_v10 = vpop.f32.mrf.mxu3 }
 0x4dd   : > { %v3272_v42 = vadd.f32 %v3266_v37, %v3200_v51  ;;  %v6186_v37 = vld [vmem:[#allocation2 + $0x2d4] sm:$0xf]  ;;  %v5689_v17 = vor.u32 %v6171_v24, %v5688_v14  ;;  %v6179_v14 = vld [vmem:[#allocation2 + $0x294] sm:$0xf0] }
 0x4de   : > { %v5757_v58 = vor.u32 %v6186_v37, %v5754_v29  ;;  %v5733_v29 = vor.u32 %v6180_v5, %v5730_v40  ;;  %v6178_v24 = vld [vmem:[#allocation2 + $0x294] sm:$0xf]  ;;  %v5824_v40 = vld [vmem:[#allocation2 + $0x360] sm:$0xf] }
 0x4df   : > { %v7843_v16 = vadd.f32 %v3324_v49, %v3272_v42  ;;  %v7863_v49 = vpop.f32.mrf.mxu1 }
 0x4e0   : > { %v3377_v20 = vpop.f32.mrf.mxu0 }
 0x4e1   : > { %v3387_v54 = vadd.f32 %v3377_v20, %v3327_v46  ;;  %v7865_v42 = vpop.f32.mrf.mxu2  ;;  %v5744_v46 = vld [vmem:[#allocation2 + $0x2c0] sm:$0xf]  ;;  %v6185_v20 = vld [vmem:[#allocation2 + $0x2c4] sm:$0xf0] }
 0x4e2   : > { %v5745_v35 = vor.u32 %v6185_v20, %v5744_v46  ;;  %v5658_v46 = vld [vmem:[#allocation2 + $0x218] sm:$0xf0]  ;;  %v5712_v20 = vld [vmem:[#allocation2 + $0x280] sm:$0xf] }
 0x4e3   : > { %v3445_v2 = vadd.f32 %v3435_v32, %v3387_v54  ;;  %v5690_v32 = vld [vmem:[#allocation2 + $0x258] sm:$0xf0]  ;;  %v6184_v54 = vld [vmem:[#allocation2 + $0x2c4] sm:$0xf] }
 0x4e5   : > { %v3510_v53 = vadd.f32 %v3500_v57, %v3445_v2  ;;  %v5753_v57 = vor.u32 %v6187_v25, %v5752_v28  ;;  %v5746_v2 = vld [vmem:[#allocation2 + $0x2c8] sm:$0xf0] }
 0x4e6   : > { %v5666_v25 = vld [vmem:[#allocation2 + $0x228] sm:$0xf0] }
 0x4e7   : > { %v3563_v38 = vadd.f32 %v3553_v55, %v3510_v53  ;;  %v5693_v53 = vor.u32 %v6170_v34, %v5690_v32 }
 0x4e8   : > { %v3379_v18 = vpop.f32.mrf.mxu0 }
 0x4e9   : > { %v3570_v22 = vadd.f32 %v7849_v45, %v3563_v38  ;;  %v3388_v33 = vadd.f32 %v3379_v18, %v3328_v30  ;;  %v6169_v38 = vld [vmem:[#allocation2 + $0x244] sm:$0xf0]  ;;  %v6168_v30 = vld [vmem:[#allocation2 + $0x244] sm:$0xf] }
 0x4eb   : > { %v3574_v12 = vmax.f32 %v3570_v22, 0.0  ;;  %v3446_v62 = vadd.f32 %v3437_v44, %v3388_v33  ;;  %v5680_v44 = vld [vmem:[#allocation2 + $0x240] sm:$0xf]  ;;  %v5749_v22 = vor.u32 %v6184_v54, %v5746_v2  ;;  %v5736_v33 = vld [vmem:[#allocation2 + $0x2b0] sm:$0xf] }
 0x4ec   : > { %v5737_v50 = vor.u32 %v6183_v43, %v5736_v33  ;;  %v5648_v33 = vld [vmem:[#allocation2 + $0x200] sm:$0xf]  ;;  %v6161_v43 = vld [vmem:[#allocation2 + $0x204] sm:$0xf0] }
 0x4ed   : > { %v7853_v19 = vpack.c.bf16 %v3574_v12, %v3574_v12  ;;  %v3511_v27 = vadd.f32 %v3502_v3, %v3446_v62  ;;  %v5682_v3 = vld [vmem:[#allocation2 + $0x248] sm:$0xf0]  ;;  %v5681_v12 = vor.u32 %v6169_v38, %v5680_v44  ;;  %v5896_v38 = vld [vmem:[#allocation2 + $0x3f0] sm:$0xf] }
 0x4ee   : > { %v5685_v62 = vor.u32 %v6168_v30, %v5682_v3  ;;  %v5714_v44 = vld [vmem:[#allocation2 + $0x288] sm:$0xf0]  ;;  %v6223_v30 = vld [vmem:[#allocation2 + $0x3f4] sm:$0xf0]  ;;  %v6222_v3 = vld [vmem:[#allocation2 + $0x3f4] sm:$0xf] }
 0x4ef   : > { %v3564_v59 = vadd.f32 %v3555_v52, %v3511_v27  ;;  %3922 = vmatmul.bf16.vlgmr.msrb.gmra.mxu1 %v7853_v19  ;;  %3935 = vmatmul.bf16.vlgmr.msrb.gmra.mxu2 %v7853_v19  ;;  %v3725_v1 = vshrl.u32 %v7853_v19, 16  ;;  %v6182_v52 = vld [vmem:[#allocation2 + $0x2b4] sm:$0xf]  ;;  %v3507_v27 = vpop.f32.mrf.mxu1  ;;  %v3941_v28 = vrot.slane %v7853_v19, 1  ;;  %v5656_v19 = vld [vmem:[#allocation2 + $0x210] sm:$0xf] }
 0x4f0   : > { %4358 = vmatpush.bf16.msrb.mxu1 %v5769_v31  ;;  %4371 = vmatpush.bf16.msrb.mxu2 %v5773_v48  ;;  %v7860_v11 = vpop.f32.mrf.mxu0  ;;  %v6167_v31 = vld [vmem:[#allocation2 + $0x234] sm:$0xf0]  ;;  %v6166_v48 = vld [vmem:[#allocation2 + $0x234] sm:$0xf]  ;;  %v5741_v63 = vor.u32 %v6182_v52, %v5738_v36  ;;  %v5650_v52 = vld [vmem:[#allocation2 + $0x208] sm:$0xf0] }
 0x4f1   : > { %v3571_v26 = vadd.f32 %v7849_v45, %v3564_v59  ;;  %3816 = vmatmul.bf16.vlgmr.msrb.gmra.mxu0 %v3725_v1  ;;  %3829 = vmatmul.bf16.vlgmr.msrb.gmra.mxu3 %v3725_v1  ;;  %v3560_v59 = vpop.f32.mrf.mxu2  ;;  %v5673_v1 = vor.u32 %v6167_v31, %v5672_v4  ;;  %v5677_v21 = vor.u32 %v6166_v48, %v5674_v8  ;;  %v5832_v36 = vld [vmem:[#allocation2 + $0x370] sm:$0xf]  ;;  %v6206_v4 = vld [vmem:[#allocation2 + $0x374] sm:$0xf] }
 0x4f2   : > { %4248 = vmatpush.bf16.msrb.mxu0 %v5705_v61  ;;  %4261 = vmatpush.bf16.msrb.mxu3 %v5709_v6  ;;  %v6181_v61 = vld [vmem:[#allocation2 + $0x2a4] sm:$0xf0]  ;;  %v3389_v31 = vadd.f32 %v7860_v11, %v7836_v56  ;;  %v5897_v48 = vor.u32 %v6223_v30, %v5896_v38  ;;  %v5864_v30 = vld [vmem:[#allocation2 + $0x3b0] sm:$0xf] }
 0x4f3   : > { %v3575_v51 = vmax.f32 %v3571_v26, 0.0  ;;  %v6164_v26 = vld [vmem:[#allocation2 + $0x224] sm:$0xf]  ;;  %v5729_v37 = vor.u32 %v6181_v61, %v5728_v0  ;;  %v6221_v0 = vld [vmem:[#allocation2 + $0x3e4] sm:$0xf0] }
 0x4f4   : > { %4359 = vmatpush.bf16.msrb.mxu1 %v5761_v13  ;;  %4372 = vmatpush.bf16.msrb.mxu2 %v5765_v41  ;;  %v6165_v13 = vld [vmem:[#allocation2 + $0x224] sm:$0xf0]  ;;  %v5669_v32 = vor.u32 %v6164_v26, %v5666_v25  ;;  %v6220_v61 = vld [vmem:[#allocation2 + $0x3e4] sm:$0xf]  ;;  %v3447_v56 = vadd.f32 %v7858_v23, %v3389_v31  ;;  %v6218_v26 = vld [vmem:[#allocation2 + $0x3d4] sm:$0xf] }
 0x4f5   : > { %v7867_v55 = vpack.c.bf16 %v3575_v51, %v3575_v51  ;;  %v5722_v51 = vld [vmem:[#allocation2 + $0x298] sm:$0xf0]  ;;  %v5665_v34 = vor.u32 %v6165_v13, %v5664_v60  ;;  %v5880_v13 = vld [vmem:[#allocation2 + $0x3d0] sm:$0xf]  ;;  %v5858_v31 = vld [vmem:[#allocation2 + $0x3a8] sm:$0xf0] }
 0x4f6   : > { %4249 = vmatpush.bf16.msrb.mxu0 %v5697_v47  ;;  %4262 = vmatpush.bf16.msrb.mxu3 %v5701_v15  ;;  %v5720_v47 = vld [vmem:[#allocation2 + $0x290] sm:$0xf]  ;;  %v5725_v2 = vor.u32 %v6178_v24, %v5722_v51  ;;  %v5882_v25 = vld [vmem:[#allocation2 + $0x3d8] sm:$0xf0]  ;;  %v6202_v24 = vld [vmem:[#allocation2 + $0x354] sm:$0xf] }
 0x4f7   : > { %v4053_v39 = vshrl.u32 %v7867_v55, 16  ;;  %v5721_v54 = vor.u32 %v6179_v14, %v5720_v47  ;;  %v5816_v47 = vld [vmem:[#allocation2 + $0x350] sm:$0xf]  ;;  %v6203_v14 = vld [vmem:[#allocation2 + $0x354] sm:$0xf0]  ;;  %v4166_v23 = vrot.slane %v7867_v55, 2 }
 0x4f8   : > { %4360 = vmatpush.bf16.msrb.mxu1 %v5753_v57  ;;  %4373 = vmatpush.bf16.msrb.mxu2 %v5757_v58  ;;  %v3384_v18 = vpop.f32.mrf.mxu0  ;;  %v6163_v57 = vld [vmem:[#allocation2 + $0x214] sm:$0xf0]  ;;  %v6162_v58 = vld [vmem:[#allocation2 + $0x214] sm:$0xf]  ;;  %v5818_v51 = vld [vmem:[#allocation2 + $0x358] sm:$0xf0] }
 0x4f9   : > { %v3390_v7 = vadd.f32 %v3384_v18, %v7843_v16  ;;  %v4055_v6 = vrot.slane %v4053_v39, 1  ;;  %v5657_v18 = vor.u32 %v6163_v57, %v5656_v19  ;;  %v5872_v19 = vld [vmem:[#allocation2 + $0x3c0] sm:$0xf]  ;;  %v6217_v57 = vld [vmem:[#allocation2 + $0x3c4] sm:$0xf0]  ;;  %v5821_v55 = vor.u32 %v6202_v24, %v5818_v51 }
 0x4fa   : > { %4250 = vmatpush.bf16.msrb.mxu0 %v5689_v17  ;;  %4263 = vmatpush.bf16.msrb.mxu3 %v5693_v53  ;;  %v6177_v17 = vld [vmem:[#allocation2 + $0x284] sm:$0xf0]  ;;  %v6176_v53 = vld [vmem:[#allocation2 + $0x284] sm:$0xf]  ;;  %v5776_v24 = vld [vmem:[#allocation2 + $0x300] sm:$0xf] }
 0x4fb   : > { %v3448_v9 = vadd.f32 %v3442_v10, %v3390_v7  ;;  %v6160_v7 = vld [vmem:[#allocation2 + $0x204] sm:$0xf]  ;;  %v5713_v10 = vor.u32 %v6177_v17, %v5712_v20  ;;  %v5817_v20 = vor.u32 %v6203_v14, %v5816_v47  ;;  %v5842_v47 = vld [vmem:[#allocation2 + $0x388] sm:$0xf0]  ;;  %v6193_v51 = vld [vmem:[#allocation2 + $0x304] sm:$0xf0] }
 0x4fc   : > { %4361 = vmatpush.bf16.msrb.mxu1 %v5745_v35  ;;  %4374 = vmatpush.bf16.msrb.mxu2 %v5749_v22  ;;  %v5661_v35 = vor.u32 %v6162_v58, %v5658_v46  ;;  %v5898_v22 = vld [vmem:[#allocation2 + $0x3f8] sm:$0xf0]  ;;  %v6216_v58 = vld [vmem:[#allocation2 + $0x3c4] sm:$0xf]  ;;  %v5874_v46 = vld [vmem:[#allocation2 + $0x3c8] sm:$0xf0] }
 0x4fd   : > { %v3513_v16 = vadd.f32 %v3507_v27, %v3448_v9  ;;  %v5834_v9 = vld [vmem:[#allocation2 + $0x378] sm:$0xf0]  ;;  %v5901_v8 = vor.u32 %v6222_v3, %v5898_v22  ;;  %v5888_v27 = vld [vmem:[#allocation2 + $0x3e0] sm:$0xf]  ;;  %v6200_v17 = vld [vmem:[#allocation2 + $0x344] sm:$0xf]  ;;  %v5877_v38 = vor.u32 %v6216_v58, %v5874_v46 }
 0x4fe   : > { %4251 = vmatpush.bf16.msrb.mxu0 %v5681_v12  ;;  %4264 = vmatpush.bf16.msrb.mxu3 %v5685_v62  ;;  %v5717_v12 = vor.u32 %v6176_v53, %v5714_v44  ;;  %v6207_v62 = vld [vmem:[#allocation2 + $0x374] sm:$0xf0]  ;;  %v5837_v5 = vor.u32 %v6206_v4, %v5834_v9  ;;  %v5889_v11 = vor.u32 %v6221_v0, %v5888_v27  ;;  %v5810_v53 = vld [vmem:[#allocation2 + $0x348] sm:$0xf0]  ;;  %v6213_v4 = vld [vmem:[#allocation2 + $0x3a4] sm:$0xf0] }
 0x4ff   : > { %v3566_v41 = vadd.f32 %v3560_v59, %v3513_v16  ;;  %4145 = vmatmul.bf16.vlgmr.msra.gmra.mxu1 %v4055_v6  ;;  %4158 = vmatmul.bf16.vlgmr.msra.gmra.mxu2 %v4055_v6  ;;  %v5890_v16 = vld [vmem:[#allocation2 + $0x3e8] sm:$0xf0]  ;;  %v5833_v6 = vor.u32 %v6207_v62, %v5832_v36  ;;  %v6205_v59 = vld [vmem:[#allocation2 + $0x364] sm:$0xf0]  ;;  %v5873_v44 = vor.u32 %v6217_v57, %v5872_v19  ;;  %v6215_v3 = vld [vmem:[#allocation2 + $0x3b4] sm:$0xf0] }
 0x500   : > { %4362 = vmatpush.bf16.msrb.mxu1 %v5737_v50  ;;  %4375 = vmatpush.bf16.msrb.mxu2 %v5741_v63  ;;  %v5649_v50 = vor.u32 %v6161_v43, %v5648_v33  ;;  %v5653_v63 = vor.u32 %v6160_v7, %v5650_v52  ;;  %v5893_v60 = vor.u32 %v6220_v61, %v5890_v16  ;;  %v5800_v43 = vld [vmem:[#allocation2 + $0x330] sm:$0xf]  ;;  %v6199_v7 = vld [vmem:[#allocation2 + $0x334] sm:$0xf0]  ;;  %v6198_v52 = vld [vmem:[#allocation2 + $0x334] sm:$0xf] }
 0x501   : > { %v7875_v15 = vadd.f32 %v7849_v45, %v3566_v41  ;;  %4031 = vmatmul.bf16.vlgmr.msra.gmra.mxu0 %v3941_v28  ;;  %4044 = vmatmul.bf16.vlgmr.msra.gmra.mxu3 %v3941_v28  ;;  %v6219_v41 = vld [vmem:[#allocation2 + $0x3d4] sm:$0xf0]  ;;  %v4276_v28 = vrot.slane %v4053_v39, 2  ;;  %v5885_v39 = vor.u32 %v6218_v26, %v5882_v25  ;;  %v5813_v33 = vor.u32 %v6200_v17, %v5810_v53  ;;  %v5802_v36 = vld [vmem:[#allocation2 + $0x338] sm:$0xf0] }
 0x502   : > { %4252 = vmatpush.bf16.msrb.mxu0 %v5673_v1  ;;  %4265 = vmatpush.bf16.msrb.mxu3 %v5677_v21  ;;  %v6204_v1 = vld [vmem:[#allocation2 + $0x364] sm:$0xf]  ;;  %v5826_v21 = vld [vmem:[#allocation2 + $0x368] sm:$0xf0]  ;;  %v5856_v62 = vld [vmem:[#allocation2 + $0x3a0] sm:$0xf] }
 0x503   : > { %v6212_v9 = vld [vmem:[#allocation2 + $0x3a4] sm:$0xf]  ;;  %v5792_v27 = vld [vmem:[#allocation2 + $0x320] sm:$0xf]  ;;  %v5794_v0 = vld [vmem:[#allocation2 + $0x328] sm:$0xf0] }
 0x504   : > { %4363 = vmatpush.bf16.msrb.mxu1 %v5729_v37  ;;  %4376 = vmatpush.bf16.msrb.mxu2 %v5733_v29  ;;  %v5825_v37 = vor.u32 %v6205_v59, %v5824_v40  ;;  %v5829_v29 = vor.u32 %v6204_v1, %v5826_v21  ;;  %v5861_v16 = vor.u32 %v6212_v9, %v5858_v31  ;;  %v6210_v40 = vld [vmem:[#allocation2 + $0x394] sm:$0xf]  ;;  %v5850_v59 = vld [vmem:[#allocation2 + $0x398] sm:$0xf0]  ;;  %v5840_v25 = vld [vmem:[#allocation2 + $0x380] sm:$0xf] }
 0x505   : > { %v5853_v26 = vor.u32 %v6210_v40, %v5850_v59  ;;  %v5960_v58 = vld [vmem:[#allocation2 + $0x470] sm:$0xf]  ;;  %v6239_v46 = vld [vmem:[#allocation2 + $0x474] sm:$0xf0] }
 0x506   : > { %4253 = vmatpush.bf16.msrb.mxu0 %v5665_v34  ;;  %4266 = vmatpush.bf16.msrb.mxu3 %v5669_v32  ;;  %v3512_v34 = vadd.f32 %v7863_v49, %v3447_v56  ;;  %v5881_v32 = vor.u32 %v6219_v41, %v5880_v13  ;;  %v5784_v56 = vld [vmem:[#allocation2 + $0x310] sm:$0xf]  ;;  %v5786_v13 = vld [vmem:[#allocation2 + $0x318] sm:$0xf0]  ;;  %v5961_v53 = vor.u32 %v6239_v46, %v5960_v58 }
 0x507   : > { %v5912_v59 = vld [vmem:[#allocation2 + $0x410] sm:$0xf] }
 0x508   : > { %4364 = vmatpush.bf16.msrb.mxu1 %v5721_v54  ;;  %4377 = vmatpush.bf16.msrb.mxu2 %v5725_v2  ;;  %v5808_v54 = vld [vmem:[#allocation2 + $0x340] sm:$0xf]  ;;  %v6201_v2 = vld [vmem:[#allocation2 + $0x344] sm:$0xf0]  ;;  %v3565_v49 = vadd.f32 %v7865_v42, %v3512_v34  ;;  %v5865_v42 = vor.u32 %v6215_v3, %v5864_v30  ;;  %v6192_v34 = vld [vmem:[#allocation2 + $0x304] sm:$0xf] }
 0x509   : > { %v5809_v22 = vor.u32 %v6201_v2, %v5808_v54  ;;  %v5777_v54 = vor.u32 %v6193_v51, %v5776_v24  ;;  %v6236_v30 = vld [vmem:[#allocation2 + $0x464] sm:$0xf]  ;;  %v5954_v3 = vld [vmem:[#allocation2 + $0x468] sm:$0xf0] }
 0x50a   : > { %4254 = vmatpush.bf16.msrb.mxu0 %v5657_v18  ;;  %4267 = vmatpush.bf16.msrb.mxu3 %v5661_v35  ;;  %v6214_v18 = vld [vmem:[#allocation2 + $0x3b4] sm:$0xf]  ;;  %v5866_v35 = vld [vmem:[#allocation2 + $0x3b8] sm:$0xf0] }
 0x50c   : > { %4365 = vmatpush.bf16.msrb.mxu1 %v5713_v10  ;;  %4378 = vmatpush.bf16.msrb.mxu2 %v5717_v12  ;;  %v3572_v10 = vadd.f32 %v7849_v45, %v3565_v49  ;;  %v5869_v12 = vor.u32 %v6214_v18, %v5866_v35  ;;  %v5857_v45 = vor.u32 %v6213_v4, %v5856_v62  ;;  %v6232_v62 = vld [vmem:[#allocation2 + $0x444] sm:$0xf]  ;;  %v5938_v4 = vld [vmem:[#allocation2 + $0x448] sm:$0xf0] }
 0x50d   : > { %v5941_v31 = vor.u32 %v6232_v62, %v5938_v4  ;;  %v6244_v62 = vld [vmem:[%s7984_s11 + $0x20] sm:$0xff] }
 0x50e   : > { %4255 = vmatpush.bf16.msrb.mxu0 %v5649_v50  ;;  %4268 = vmatpush.bf16.msrb.mxu3 %v5653_v63  ;;  %v6197_v50 = vld [vmem:[#allocation2 + $0x324] sm:$0xf0]  ;;  %v6196_v63 = vld [vmem:[#allocation2 + $0x324] sm:$0xf]  ;;  %v3576_v61 = vmax.f32 %v3572_v10, 0.0 }
 0x50f   : > { %4366 = vmatmul.bf16.vlgmr.msrb.gmra.mxu1 %v4276_v28  ;;  %4379 = vmatmul.bf16.vlgmr.msrb.gmra.mxu2 %v4276_v28  ;;  %v5793_v1 = vor.u32 %v6197_v50, %v5792_v27  ;;  %v5797_v21 = vor.u32 %v6196_v63, %v5794_v0  ;;  %v6230_v27 = vld [vmem:[#allocation2 + $0x434] sm:$0xf]  ;;  %v5930_v50 = vld [vmem:[#allocation2 + $0x438] sm:$0xf0] }
 0x510   : > { %4583 = vmatpush.bf16.msra.mxu1 %v5897_v48  ;;  %4596 = vmatpush.bf16.msra.mxu2 %v5901_v8  ;;  %v5801_v48 = vor.u32 %v6199_v7, %v5800_v43  ;;  %v5805_v8 = vor.u32 %v6198_v52, %v5802_v36  ;;  %v4386_v41 = vpack.c.bf16 %v3576_v61, %v3576_v61  ;;  %v6235_v43 = vld [vmem:[#allocation2 + $0x454] sm:$0xf0]  ;;  %v6234_v7 = vld [vmem:[#allocation2 + $0x454] sm:$0xf]  ;;  %v5946_v52 = vld [vmem:[#allocation2 + $0x458] sm:$0xf0] }
 0x511   : > { %4256 = vmatmul.bf16.vlgmr.msrb.gmra.mxu0 %v4166_v23  ;;  %4269 = vmatmul.bf16.vlgmr.msrb.gmra.mxu3 %v4166_v23  ;;  %v5949_v10 = vor.u32 %v6234_v7, %v5946_v52  ;;  %v5933_v0 = vor.u32 %v6230_v27, %v5930_v50  ;;  %v5920_v61 = vld [vmem:[#allocation2 + $0x420] sm:$0xf]  ;;  %v6251_v27 = vld [vmem:[%s7984_s11 + $0x58] sm:$0xff] }
 0x512   : > { %4470 = vmatpush.bf16.msra.mxu0 %v5833_v6  ;;  %4483 = vmatpush.bf16.msra.mxu3 %v5837_v5  ;;  %v5848_v6 = vld [vmem:[#allocation2 + $0x390] sm:$0xf]  ;;  %v6211_v5 = vld [vmem:[#allocation2 + $0x394] sm:$0xf0]  ;;  %v4388_v18 = vrot.slane %v4386_v41, 3 }
 0x513   : > { %v5849_v28 = vor.u32 %v6211_v5, %v5848_v6  ;;  %v5922_v6 = vld [vmem:[#allocation2 + $0x428] sm:$0xf0] }
 0x514   : > { %4584 = vmatpush.bf16.msra.mxu1 %v5889_v11  ;;  %4597 = vmatpush.bf16.msra.mxu2 %v5893_v60  ;;  %v6195_v11 = vld [vmem:[#allocation2 + $0x314] sm:$0xf0]  ;;  %v6194_v60 = vld [vmem:[#allocation2 + $0x314] sm:$0xf] }
 0x515   : > { %v5785_v14 = vor.u32 %v6195_v11, %v5784_v56  ;;  %v5789_v23 = vor.u32 %v6194_v60, %v5786_v13  ;;  %v5914_v56 = vld [vmem:[#allocation2 + $0x418] sm:$0xf0]  ;;  %v5904_v13 = vld [vmem:[#allocation2 + $0x400] sm:$0xf] }
 0x516   : > { %4471 = vmatpush.bf16.msra.mxu0 %v5825_v37  ;;  %4484 = vmatpush.bf16.msra.mxu3 %v5829_v29  ;;  %v6209_v37 = vld [vmem:[#allocation2 + $0x384] sm:$0xf0]  ;;  %v6208_v29 = vld [vmem:[#allocation2 + $0x384] sm:$0xf] }
 0x517   : > { %v5841_v19 = vor.u32 %v6209_v37, %v5840_v25  ;;  %v5845_v57 = vor.u32 %v6208_v29, %v5842_v47  ;;  %v3577_v29 = vmax.f32 %v7875_v15, 0.0 }
 0x518   : > { %4585 = vmatpush.bf16.msra.mxu1 %v5881_v32  ;;  %4598 = vmatpush.bf16.msra.mxu2 %v5885_v39  ;;  %v5778_v32 = vld [vmem:[#allocation2 + $0x308] sm:$0xf0]  ;;  %v4499_v39 = vshrl.u32 %v4386_v41, 16  ;;  %v6225_v41 = vld [vmem:[#allocation2 + $0x404] sm:$0xf0] }
 0x519   : > { %v5781_v2 = vor.u32 %v6192_v34, %v5778_v32  ;;  %v5905_v25 = vor.u32 %v6225_v41, %v5904_v13  ;;  %v4611_v47 = vpack.c.bf16 %v3577_v29, %v3577_v29 }
 0x51a   : > { %4472 = vmatpush.bf16.msra.mxu0 %v5817_v20  ;;  %4485 = vmatpush.bf16.msra.mxu3 %v5821_v55  ;;  %v6238_v20 = vld [vmem:[#allocation2 + $0x474] sm:$0xf]  ;;  %v5962_v55 = vld [vmem:[#allocation2 + $0x478] sm:$0xf0]  ;;  %v4501_v17 = vrot.slane %v4499_v39, 3 }
 0x51b   : > { %v5965_v49 = vor.u32 %v6238_v20, %v5962_v55 }
 0x51c   : > { %4586 = vmatpush.bf16.msra.mxu1 %v5873_v44  ;;  %4599 = vmatpush.bf16.msra.mxu2 %v5877_v38  ;;  %v5952_v44 = vld [vmem:[#allocation2 + $0x460] sm:$0xf]  ;;  %v6237_v38 = vld [vmem:[#allocation2 + $0x464] sm:$0xf0] }
 0x51d   : > { %v5953_v35 = vor.u32 %v6237_v38, %v5952_v44 }
 0x51e   : > { %4473 = vmatpush.bf16.msra.mxu0 %v5809_v22  ;;  %4486 = vmatpush.bf16.msra.mxu3 %v5813_v33  ;;  %v5957_v22 = vor.u32 %v6236_v30, %v5954_v3  ;;  %v5944_v33 = vld [vmem:[#allocation2 + $0x450] sm:$0xf] }
 0x51f   : > { %v5945_v36 = vor.u32 %v6235_v43, %v5944_v33  ;;  %v6246_v33 = vld [vmem:[%s7984_s11 + $0x30] sm:$0xff] }
 0x520   : > { %4587 = vmatpush.bf16.msra.mxu1 %v5865_v42  ;;  %4600 = vmatpush.bf16.msra.mxu2 %v5869_v12  ;;  %v5936_v42 = vld [vmem:[#allocation2 + $0x440] sm:$0xf]  ;;  %v6233_v12 = vld [vmem:[#allocation2 + $0x444] sm:$0xf0] }
 0x521   : > { %v5937_v9 = vor.u32 %v6233_v12, %v5936_v42  ;;  %v6254_v42 = vld [vmem:[%s7984_s11 + $0x70] sm:$0xff] }
 0x522   : > { %4474 = vmatpush.bf16.msra.mxu0 %v5801_v48  ;;  %4487 = vmatpush.bf16.msra.mxu3 %v5805_v8  ;;  %v5928_v48 = vld [vmem:[#allocation2 + $0x430] sm:$0xf]  ;;  %v6231_v8 = vld [vmem:[#allocation2 + $0x434] sm:$0xf0] }
 0x523   : > { %v5929_v63 = vor.u32 %v6231_v8, %v5928_v48  ;;  %v6252_v48 = vld [vmem:[%s7984_s11 + $0x60] sm:$0xff]  ;;  %v6242_v8 = vld [vmem:[%s7984_s11 + $0x10] sm:$0xff] }
 0x524   : > { %4588 = vmatpush.bf16.msra.mxu1 %v5857_v45  ;;  %4601 = vmatpush.bf16.msra.mxu2 %v5861_v16  ;;  %v6229_v45 = vld [vmem:[#allocation2 + $0x424] sm:$0xf0]  ;;  %v6228_v16 = vld [vmem:[#allocation2 + $0x424] sm:$0xf] }
 0x525   : > { %v5921_v5 = vor.u32 %v6229_v45, %v5920_v61  ;;  %v5925_v40 = vor.u32 %v6228_v16, %v5922_v6  ;;  %v6250_v61 = vld [vmem:[%s7984_s11 + $0x50] sm:$0xff]  ;;  %v6240_v45 = vld [vmem:[%s7984_s11] sm:$0xff]  ;;  %v6249_v6 = vld [vmem:[%s7984_s11 + $0x48] sm:$0xff] }
 0x526   : > { %4475 = vmatpush.bf16.msra.mxu0 %v5793_v1  ;;  %4488 = vmatpush.bf16.msra.mxu3 %v5797_v21  ;;  %v6227_v1 = vld [vmem:[#allocation2 + $0x414] sm:$0xf0]  ;;  %v6226_v21 = vld [vmem:[#allocation2 + $0x414] sm:$0xf] }
 0x527   : > { %v5913_v11 = vor.u32 %v6227_v1, %v5912_v59  ;;  %v5917_v60 = vor.u32 %v6226_v21, %v5914_v56  ;;  %v6248_v1 = vld [vmem:[%s7984_s11 + $0x40] sm:$0xff] }
 0x528   : > { %4589 = vmatpush.bf16.msra.mxu1 %v5849_v28  ;;  %4602 = vmatpush.bf16.msra.mxu2 %v5853_v26  ;;  %v6224_v28 = vld [vmem:[#allocation2 + $0x404] sm:$0xf]  ;;  %v5906_v26 = vld [vmem:[#allocation2 + $0x408] sm:$0xf0] }
 0x529   : > { %v5909_v37 = vor.u32 %v6224_v28, %v5906_v26  ;;  %v3722_v28 = vld [vmem:[%s7983_s10] sm:$0x3] }
 0x52a   : > { %4476 = vmatpush.bf16.msra.mxu0 %v5785_v14  ;;  %4489 = vmatpush.bf16.msra.mxu3 %v5789_v23 }
 0x52c   : > { %4590 = vmatpush.bf16.msra.mxu1 %v5841_v19  ;;  %4603 = vmatpush.bf16.msra.mxu2 %v5845_v57 }
 0x52e   : > { %4477 = vmatpush.bf16.msra.mxu0 %v5777_v54  ;;  %4490 = vmatpush.bf16.msra.mxu3 %v5781_v2 }
 0x52f   : > { %4591 = vmatmul.bf16.vlgmr.msra.gmra.mxu1 %v4501_v17  ;;  %4604 = vmatmul.bf16.vlgmr.msra.gmra.mxu2 %v4501_v17 }
 0x531   : > { %4478 = vmatmul.bf16.vlgmr.msra.gmra.mxu0 %v4388_v18  ;;  %4491 = vmatmul.bf16.vlgmr.msra.gmra.mxu3 %v4388_v18 }
 0x532   : > { %4692 = vmatpush.bf16.msrb.mxu0 %v5961_v53  ;;  %4705 = vmatpush.bf16.msrb.mxu3 %v5965_v49 }
 0x536   : > { %4693 = vmatpush.bf16.msrb.mxu0 %v5953_v35  ;;  %4706 = vmatpush.bf16.msrb.mxu3 %v5957_v22  ;;  %v6247_v35 = vld [vmem:[%s7984_s11 + $0x38] sm:$0xff] }
 0x537   : > { %4860 = vmatpush.bf16.msrb.mxu1 %v6247_v35 }
 0x53a   : > { %4694 = vmatpush.bf16.msrb.mxu0 %v5945_v36  ;;  %4707 = vmatpush.bf16.msrb.mxu3 %v5949_v10  ;;  %v6255_v36 = vld [vmem:[%s7984_s11 + $0x78] sm:$0xff]  ;;  %v6245_v10 = vld [vmem:[%s7984_s11 + $0x28] sm:$0xff] }
 0x53b   : > { %4861 = vmatpush.bf16.msrb.mxu1 %v6246_v33  ;;  %4873 = vmatpush.bf16.msrb.mxu2 %v6255_v36 }
 0x53e   : > { %4695 = vmatpush.bf16.msrb.mxu0 %v5937_v9  ;;  %4708 = vmatpush.bf16.msrb.mxu3 %v5941_v31  ;;  %v6253_v9 = vld [vmem:[%s7984_s11 + $0x68] sm:$0xff]  ;;  %v6243_v31 = vld [vmem:[%s7984_s11 + $0x18] sm:$0xff] }
 0x53f   : > { %4862 = vmatpush.bf16.msrb.mxu1 %v6245_v10  ;;  %4874 = vmatpush.bf16.msrb.mxu2 %v6254_v42 }
 0x542   : > { %4696 = vmatpush.bf16.msrb.mxu0 %v5929_v63  ;;  %4709 = vmatpush.bf16.msrb.mxu3 %v5933_v0  ;;  %v6241_v63 = vld [vmem:[%s7984_s11 + $0x8] sm:$0xff] }
 0x543   : > { %4863 = vmatpush.bf16.msrb.mxu1 %v6244_v62  ;;  %4875 = vmatpush.bf16.msrb.mxu2 %v6253_v9 }
 0x546   : > { %4697 = vmatpush.bf16.msrb.mxu0 %v5921_v5  ;;  %4710 = vmatpush.bf16.msrb.mxu3 %v5925_v40 }
 0x547   : > { %4864 = vmatpush.bf16.msrb.mxu1 %v6243_v31  ;;  %4876 = vmatpush.bf16.msrb.mxu2 %v6252_v48 }
 0x54a   : > { %4698 = vmatpush.bf16.msrb.mxu0 %v5913_v11  ;;  %4711 = vmatpush.bf16.msrb.mxu3 %v5917_v60 }
 0x54b   : > { %4865 = vmatpush.bf16.msrb.mxu1 %v6242_v8  ;;  %4877 = vmatpush.bf16.msrb.mxu2 %v6251_v27 }
 0x54e   : > { %4699 = vmatpush.bf16.msrb.mxu0 %v5905_v25  ;;  %4712 = vmatpush.bf16.msrb.mxu3 %v5909_v37  ;;  %v4721_v37 = vperm.slane %v3722_v28, 0 }
 0x54f   : > { %4866 = vmatpush.bf16.msrb.mxu1 %v6241_v63  ;;  %4878 = vmatpush.bf16.msrb.mxu2 %v6250_v61 }
 0x551   : > { %4700 = vmatmul.bf16.vlgmr.msrb.gmra.mxu0 %v4611_v47  ;;  %4713 = vmatmul.bf16.vlgmr.msrb.gmra.mxu3 %v4611_v47 }
 0x553   : > { %4867 = vmatpush.bf16.msrb.mxu1 %v6240_v45  ;;  %4879 = vmatpush.bf16.msrb.mxu2 %v6249_v6 }
 0x557   : > { %4880 = vmatpush.bf16.msrb.mxu2 %v6248_v1 }
 0x56c   : > { %v3923_v14 = vpop.f32.mrf.mxu1 }
 0x56e   : > { %v3817_v23 = vpop.f32.mrf.mxu0 }
 0x56f   : > { %v3924_v24 = vadd.f32 %v3923_v14, %v3817_v23 }
 0x572   : > { %v3936_v51 = vpop.f32.mrf.mxu2 }
 0x574   : > { %v3830_v34 = vpop.f32.mrf.mxu3  ;;  %v3925_v32 = vpop.f32.mrf.mxu1 }
 0x575   : > { %v3937_v39 = vadd.f32 %v3936_v51, %v3830_v34  ;;  %v4722_v34 = vperm.slane %v3722_v28, 1 }
 0x576   : > { %v3819_v19 = vpop.f32.mrf.mxu0 }
 0x57a   : > { %v3938_v57 = vpop.f32.mrf.mxu2 }
 0x57c   : > { %v3832_v58 = vpop.f32.mrf.mxu3  ;;  %v4146_v46 = vpop.f32.mrf.mxu1 }
 0x57e   : > { %v4032_v20 = vpop.f32.mrf.mxu0 }
 0x57f   : > { %v4049_v55 = vadd.f32 %v4032_v20, %v3924_v24 }
 0x581   : > { %v4163_v54 = vadd.f32 %v4146_v46, %v4049_v55 }
 0x582   : > { %v4159_v15 = vpop.f32.mrf.mxu2 }
 0x584   : > { %v4045_v2 = vpop.f32.mrf.mxu3  ;;  %v4148_v17 = vpop.f32.mrf.mxu1 }
 0x585   : > { %v4050_v53 = vadd.f32 %v4045_v2, %v3937_v39 }
 0x586   : > { %v4034_v49 = vpop.f32.mrf.mxu0 }
 0x587   : > { %v4164_v44 = vadd.f32 %v4159_v15, %v4050_v53  ;;  %v4763_v15 = vld [vmem:[%s7985_s12] sm:$0x1] }
 0x58a   : > { %v4161_v38 = vpop.f32.mrf.mxu2 }
 0x58c   : > { %v4047_v30 = vpop.f32.mrf.mxu3  ;;  %v4367_v3 = vpop.f32.mrf.mxu1 }
 0x58e   : > { %v4257_v18 = vpop.f32.mrf.mxu0 }
 0x58f   : > { %v4274_v11 = vadd.f32 %v4257_v18, %v4163_v54 }
 0x591   : > { %v4384_v60 = vadd.f32 %v4367_v3, %v4274_v11 }
 0x592   : > { %v4380_v22 = vpop.f32.mrf.mxu2 }
 0x594   : > { %v4270_v43 = vpop.f32.mrf.mxu3  ;;  %v4369_v7 = vpop.f32.mrf.mxu1 }
 0x595   : > { %v4275_v13 = vadd.f32 %v4270_v43, %v4164_v44 }
 0x596   : > { %v4259_v52 = vpop.f32.mrf.mxu0 }
 0x597   : > { %v4385_v26 = vadd.f32 %v4380_v22, %v4275_v13 }
 0x59a   : > { %v4382_v12 = vpop.f32.mrf.mxu2 }
 0x59c   : > { %v4272_v4 = vpop.f32.mrf.mxu3 }
 0x5ac   : > { %v4592_v50 = vpop.f32.mrf.mxu1 }
 0x5ae   : > { %v4479_v0 = vpop.f32.mrf.mxu0 }
 0x5af   : > { %v4496_v41 = vadd.f32 %v4479_v0, %v4384_v60 }
 0x5b1   : > { %v4609_v25 = vadd.f32 %v4592_v50, %v4496_v41 }
 0x5b2   : > { %v4605_v16 = vpop.f32.mrf.mxu2 }
 0x5b4   : > { %v4492_v5 = vpop.f32.mrf.mxu3  ;;  %v4594_v40 = vpop.f32.mrf.mxu1 }
 0x5b5   : > { %v4497_v47 = vadd.f32 %v4492_v5, %v4385_v26 }
 0x5b6   : > { %v4481_v59 = vpop.f32.mrf.mxu0 }
 0x5b7   : > { %v4610_v51 = vadd.f32 %v4605_v16, %v4497_v47 }
 0x5ba   : > { %v4607_v21 = vpop.f32.mrf.mxu2 }
 0x5bc   : > { %v4494_v56 = vpop.f32.mrf.mxu3 }
 0x5ce   : > { %v4701_v29 = vpop.f32.mrf.mxu0 }
 0x5cf   : > { %v4718_v14 = vadd.f32 %v4701_v29, %v4609_v25 }
 0x5d1   : > { %v4725_v23 = vadd.f32 %v4721_v37, %v4718_v14 }
 0x5d3   : > { %v4727_v24 = vmax.f32 %v4725_v23, 0.0 }
 0x5d4   : > { %v4714_v32 = vpop.f32.mrf.mxu3 }
 0x5d5   : > { %v4729_v39 = vpack.c.bf16 %v4727_v24, %v4727_v24  ;;  %v4719_v19 = vadd.f32 %v4714_v32, %v4610_v51 }
 0x5d6   : > { %v4703_v57 = vpop.f32.mrf.mxu0 }
 0x5d7   : > { %v4726_v58 = vadd.f32 %v4722_v34, %v4719_v19  ;;  %4868 = vmatmul.bf16.vlgmr.msrb.gmra.mxu1 %v4729_v39 }
 0x5d9   : > { %v4728_v46 = vmax.f32 %v4726_v58, 0.0 }
 0x5db   : > { %v4730_v20 = vpack.c.bf16 %v4728_v46, %v4728_v46 }
 0x5dc   : > { %v4716_v55 = vpop.f32.mrf.mxu3 }
 0x5dd   : > { %4881 = vmatmul.bf16.vlgmr.msrb.gmra.mxu2 %v4730_v20 }
 0x654   : > { %v4869_v54 = vpop.f32.mrf.mxu1 }
 0x655   : > { %v4870_v17 = vadd.f32 %v4869_v54, %v4763_v15 }
 0x65c   : > { %v4871_v2 = vpop.f32.mrf.mxu1 }
 0x660   : > { %v4882_v53 = vpop.f32.mrf.mxu2 }
 0x661   : > { %v4883_v49 = vadd.f32 %v4882_v53, %v4870_v17 }
 0x663   : > { %4887 = vst.msk [vmem:[%s449_s20] sm:$0x1] %vm4886_vm12, %v4883_v49 }
 0x664   : > { %6369 = shalt.err (!%p6366_p8)
}
 0x665   : > { %6260 = dma.vmem_to_hbm [thread:$0]  (%p6521_p5), %s4900_s9, 16, %s4902_s21, %s4889_s0  }
 0x668   : > { %v4884_v44 = vpop.f32.mrf.mxu2 }
 0x669 PF: > { %p6272_p9 = scmp.ge.s32.totalorder %s6408_s28, 2  ;;  %s4913_s23 = sand.u32 1, %s6396_s25  }
 0x66a   : > { %s4914_s20 = scalar_lea.sflag [#allocation4], %s4913_s23 }
 0x66b   : > { %p6267_p10 = pnand %p6272_p9, %p6525_p6 }
 0x66d   : > { %p6268_p11 = pneg %p6267_p10 }
 0x66f   : > { %6391 = dma.done.wait (%p6268_p11), %s4914_s20, 16  }
 0x670   : > { %6393 = vsyncadd (%p6268_p11), %s4914_s20, 4294967280  ;;  %p24_p12 = scmp.ge.s32.totalorder %s6508_s14, 4   ;;  %s7995_s25 = smov %s6400_s26 }
 0x671   : > { %s7996_s26 = smov %s6404_s27  ;;  %s7997_s27 = smov %s6519_s17 }
 0x672   : > { %s7998_s28 = smov %s6508_s14  ;;  %26 = sbr.rel (!%p24_p12) target bundleno = 8 (0x8), region = 112 }
 0x677   :  { %4919 = vsyncpa [#allocation3], 1 }
 0x678   :  { %4921 = vsyncpa [#allocation3 + $0x1], 1 }
 0x679   :  { %4922 = vsyncpa [#allocation4], 1 }
 0x67a   :  { %4924 = vsyncpa [#allocation4 + $0x1], 1 }

</bundles_post_ra>
